<compile_context>
chip_gen: v7x
topology: tpu7x:2x2x1
jax: 0.10.0
libtpu: 0.0.40
codegen_flags: <defaults>
</compile_context>

<pallas_src>
import jax
import jax.numpy as jnp
from jax.experimental import pallas as pl
from jax.experimental.pallas import tpu as pltpu

LANE = 128
SUBLANE = 8
BN_EPS = 1e-5


def _round_up(x, m):
    return (x + m - 1) // m * m


# ----------------------------------------------------------------------------
# JAX glue: AddCoords(rank=2, with_r=True) and im2col for 3x3 / stride 2 / pad 1
# ----------------------------------------------------------------------------
def add_coords_with_r(x):  # x: [N, H, W, C] (NHWC); torch ref is NCHW with H=Ty, W=n_mels
    n, h, w, _ = x.shape
    xx = (jnp.arange(h, dtype=jnp.float32) / (h - 1)) * 2.0 - 1.0   # varies along H (dim_y)
    yy = (jnp.arange(w, dtype=jnp.float32) / (w - 1)) * 2.0 - 1.0   # varies along W (dim_x)
    xx_ch = jnp.broadcast_to(xx[None, :, None, None], (n, h, w, 1))
    yy_ch = jnp.broadcast_to(yy[None, None, :, None], (n, h, w, 1))
    rr = jnp.sqrt((xx_ch - 0.5) ** 2 + (yy_ch - 0.5) ** 2)
    return jnp.concatenate([x, xx_ch, yy_ch, rr], axis=-1)          # channel order [x, xx, yy, rr]


def im2col_k3_s2_p1(x):  # x: [N, H, W, C] -> ([N*Ho*Wo, 9*C], (N, Ho, Wo))
    # TODO(synk): for large Ty/n_mels, fuse this 9x gather into the conv kernel
    # (shifted VMEM slices) instead of materializing patches in HBM.
    n, h, w, c = x.shape
    ho = (h - 1) // 2 + 1
    wo = (w - 1) // 2 + 1
    xp = jnp.pad(x, ((0, 0), (1, 1), (1, 1), (0, 0)))
    cols = []
    for kh in range(3):
        for kw in range(3):
            cols.append(xp[:, kh:kh + 2 * ho:2, kw:kw + 2 * wo:2, :])
    p = jnp.stack(cols, axis=3)                      # [N, Ho, Wo, 9, C]
    return p.reshape(n * ho * wo, 9 * c), (n, ho, wo)


# ----------------------------------------------------------------------------
# Pallas kernels: (1) matmul + sublane-partial batch stats, (2) matmul + BN + ReLU
# ----------------------------------------------------------------------------
def _conv_stats_kernel(p_ref, w_ref, sum_ref, sq_ref):
    """Per-tile y = P@W (f32 accumulate); per-tile (8, Cp) sublane-partial stats.

    No per-tile activation is written back to HBM — only the tiny partials.
    The conv bias is omitted: it is cancelled by the BN mean subtraction."""
    y = jnp.dot(p_ref[...], w_ref[...], preferred_element_type=jnp.float32)
    tm, cp = y.shape
    y3 = y.reshape(tm // SUBLANE, SUBLANE, cp)       # (8,128)-aligned regrouping
    sum_ref[...] = jnp.sum(y3, axis=0)               # pure vreg adds (VPU)
    sq_ref[...] = jnp.sum(y3 * y3, axis=0)


def _conv_bn_relu_kernel(p_ref, w_ref, scale_ref, bias_ref, o_ref):
    """Recompute y = P@W (K <= 72, cheap) and apply fused BN (scale/bias) + ReLU."""
    y = jnp.dot(p_ref[...], w_ref[...], preferred_element_type=jnp.float32)
    o_ref[...] = jnp.maximum(y * scale_ref[...] + bias_ref[...], 0.0)


def conv_bn_relu(x_nhwc, w_pad_bf16, gamma_pad, beta_pad, cout):
    """3x3 / stride-2 / pad-1 conv (im2col matmul) + BatchNorm(batch stats) + ReLU."""
    patches, (n, ho, wo) = im2col_k3_s2_p1(x_nhwc.astype(jnp.bfloat16))
    m, k = patches.shape
    cp = w_pad_bf16.shape[1]                         # Cout padded to 128 lanes

    tm = min(2048, _round_up(m, 16))                 # large M-tile (bf16 sublane multiple)
    m_pad = _round_up(m, tm)
    if m_pad != m:
        # Zero rows contribute 0 to sum/sumsq; we divide by the real M below.
        patches = jnp.pad(patches, ((0, m_pad - m), (0, 0)))
    n_tiles = m_pad // tm
    grid = (n_tiles,)

    # Pass 1: per-tile partial stats only (M axis fully parallel -> both v7x TCs).
    psum, psq = pl.pallas_call(
        _conv_stats_kernel,
        out_shape=(jax.ShapeDtypeStruct((n_tiles * SUBLANE, cp), jnp.float32),
                   jax.ShapeDtypeStruct((n_tiles * SUBLANE, cp), jnp.float32)),
        grid=grid,
        in_specs=[pl.BlockSpec((tm, k), lambda i: (i, 0)),
                  pl.BlockSpec((k, cp), lambda i: (0, 0))],
        out_specs=(pl.BlockSpec((SUBLANE, cp), lambda i: (i, 0)),
                   pl.BlockSpec((SUBLANE, cp), lambda i: (i, 0))),
        compiler_params=pltpu.CompilerParams(dimension_semantics=("parallel",)),
    )(patches, w_pad_bf16)

    # Tiny XLA finalize: mean / var / fused BN scale+bias (per channel).
    # NOTE: one-pass variance (E[y^2]-mean^2) in f32, clamped at 0.
    inv_m = 1.0 / m
    mean = jnp.sum(psum, axis=0, keepdims=True) * inv_m               # (1, Cp)
    var = jnp.maximum(jnp.sum(psq, axis=0, keepdims=True) * inv_m - mean * mean, 0.0)
    scale = gamma_pad * jax.lax.rsqrt(var + BN_EPS)                   # (1, Cp)
    bias = beta_pad - mean * scale                                    # (1, Cp)

    # Pass 2: recompute y, normalize, ReLU — lane-dense stores, M axis parallel.
    out = pl.pallas_call(
        _conv_bn_relu_kernel,
        out_shape=jax.ShapeDtypeStruct((m_pad, cp), jnp.float32),
        grid=grid,
        in_specs=[pl.BlockSpec((tm, k), lambda i: (i, 0)),
                  pl.BlockSpec((k, cp), lambda i: (0, 0)),
                  pl.BlockSpec((1, cp), lambda i: (0, 0)),
                  pl.BlockSpec((1, cp), lambda i: (0, 0))],
        out_specs=pl.BlockSpec((tm, cp), lambda i: (i, 0)),
        compiler_params=pltpu.CompilerParams(dimension_semantics=("parallel",)),
    )(patches, w_pad_bf16, scale, bias)

    # TODO(synk): for large shapes, fold this slice/reshape (and the final NHWC->NTCW
    # transpose feeding the GRU) into the BN kernel's output layout.
    return out[:m, :cout].reshape(n, ho, wo, cout)


# ----------------------------------------------------------------------------
# GRU: one kernel, grid over time blocks, hidden state resident in VMEM scratch
# ----------------------------------------------------------------------------
def _make_gru_kernel(t_actual, tb, npad, hdp, n_blocks):
    last_steps = t_actual - (n_blocks - 1) * tb      # static, in 1..tb

    def kernel(x_ref, wih_ref, bih_ref, whh_ref, bhhn_ref, o_ref, gi_ref, h_ref):
        blk = pl.program_id(0)

        @pl.when(blk == 0)
        def _():
            h_ref[...] = jnp.zeros_like(h_ref)

        # Hoisted input projection for the whole time block: ONE bf16 MXU matmul.
        # b_ih already has b_hr / b_hz folded in (done once at parameter prep).
        gi_ref[...] = jnp.dot(x_ref[...], wih_ref[...],
                              preferred_element_type=jnp.float32) + bih_ref[...]

        whh = whh_ref[...]                            # (hdp, 3*hdp) f32, resident
        bhh_n = bhhn_ref[...]                         # (1, hdp)

        def one_step(tt, h):                          # tt is a static Python int
            gi = gi_ref[tt * npad:(tt + 1) * npad, :]               # (npad, 3*hdp)
            gh = jnp.dot(h, whh, preferred_element_type=jnp.float32)
            r = jax.nn.sigmoid(gi[:, 0:hdp] + gh[:, 0:hdp])         # 128-aligned slices
            z = jax.nn.sigmoid(gi[:, hdp:2 * hdp] + gh[:, hdp:2 * hdp])
            cand = jnp.tanh(gi[:, 2 * hdp:3 * hdp] + r * (gh[:, 2 * hdp:3 * hdp] + bhh_n))
            return (1.0 - z) * cand + z * h

        if n_blocks == 1:
            h = h_ref[...]
            for tt in range(last_steps):              # padded steps never executed
                h = one_step(tt, h)
            h_ref[...] = h
            o_ref[...] = h
        else:
            @pl.when(blk != n_blocks - 1)
            def _():
                h = h_ref[...]
                for tt in range(tb):                  # full blocks: no masking at all
                    h = one_step(tt, h)
                h_ref[...] = h

            @pl.when(blk == n_blocks - 1)
            def _():
                h = h_ref[...]
                for tt in range(last_steps):          # tail block: run only valid steps
                    h = one_step(tt, h)
                h_ref[...] = h
                o_ref[...] = h
    return kernel


def gru_last_hidden(feats_ntf, gru_params, gru_size):
    n, t, f = feats_ntf.shape
    wih_p, whh_p, bih_p, bhhn_p = gru_params
    hdp = whh_p.shape[0]                         # hidden padded to 128 lanes per gate
    npad = SUBLANE                               # batch padded to 8 sublanes
    tb = min(64, _round_up(t, SUBLANE))          # timesteps per grid step
    t_pad = _round_up(t, tb)
    n_blocks = t_pad // tb

    x = jnp.zeros((t_pad, npad, f), jnp.float32)
    x = x.at[:t, :n].set(jnp.transpose(feats_ntf, (1, 0, 2)))   # time-major, padded
    x_flat = x.reshape(t_pad * npad, f).astype(jnp.bfloat16)

    out = pl.pallas_call(
        _make_gru_kernel(t, tb, npad, hdp, n_blocks),
        out_shape=jax.ShapeDtypeStruct((npad, hdp), jnp.float32),
        grid=(n_blocks,),
        in_specs=[pl.BlockSpec((tb * npad, f), lambda b: (b, 0)),
                  pl.BlockSpec((f, 3 * hdp), lambda b: (0, 0)),
                  pl.BlockSpec((1, 3 * hdp), lambda b: (0, 0)),
                  pl.BlockSpec((hdp, 3 * hdp), lambda b: (0, 0)),
                  pl.BlockSpec((1, hdp), lambda b: (0, 0))],
        out_specs=pl.BlockSpec((npad, hdp), lambda b: (0, 0)),
        scratch_shapes=[pltpu.VMEM((tb * npad, 3 * hdp), jnp.float32),   # gi block
                        pltpu.VMEM((npad, hdp), jnp.float32)],           # hidden state
        compiler_params=pltpu.CompilerParams(dimension_semantics=("arbitrary",)),
    )(x_flat, wih_p, bih_p, whh_p, bhhn_p)
    return out[:n, :gru_size]


# ----------------------------------------------------------------------------
# ReferenceEncoderNew parameters + forward
# ----------------------------------------------------------------------------
def init_params(key, ref_enc_filters, n_mel_channels, gru_size):
    k_layers = len(ref_enc_filters)
    filters = [1] + list(ref_enc_filters)
    params = {"convs": [], "gru_size": gru_size}
    keys = jax.random.split(key, k_layers + 4)

    for i in range(k_layers):
        cin = filters[i] + (3 if i == 0 else 0)          # CoordConv(with_r=True): +xx,+yy,+rr
        cout = filters[i + 1]
        fan_in = 9 * cin
        w = jax.random.normal(keys[i], (fan_in, cout), jnp.float32) / jnp.sqrt(float(fan_in))
        # NOTE: conv bias omitted — a per-channel constant is exactly cancelled by the
        # training-mode BatchNorm mean subtraction, so the forward output is identical.
        gamma = 1.0 + 0.1 * jnp.arange(cout, dtype=jnp.float32) / cout
        beta = 0.05 * jnp.arange(cout, dtype=jnp.float32) / cout
        cpad = _round_up(cout, LANE)                     # lane-dense (128) channel padding
        w_p = jnp.zeros((fan_in, cpad), jnp.float32).at[:, :cout].set(w).astype(jnp.bfloat16)
        gamma_p = jnp.zeros((1, cpad), jnp.float32).at[0, :cout].set(gamma)
        beta_p = jnp.zeros((1, cpad), jnp.float32).at[0, :cout].set(beta)
        params["convs"].append((w_p, gamma_p, beta_p, cout))

    feat_w = n_mel_channels
    for _ in range(k_layers):
        feat_w = (feat_w - 3 + 2) // 2 + 1
    f = ref_enc_filters[-1] * feat_w
    hd = gru_size
    hdp = _round_up(hd, LANE)
    s = 1.0 / (hd ** 0.5)
    kw_ih, kw_hh, kb_ih, kb_hh = keys[k_layers:k_layers + 4]
    wih = jax.random.normal(kw_ih, (f, 3, hd), jnp.float32) * s      # gate order r|z|n
    whh = jax.random.normal(kw_hh, (hd, 3, hd), jnp.float32) * s
    bih = jax.random.normal(kb_ih, (3, hd), jnp.float32) * s
    bhh = jax.random.normal(kb_hh, (3, hd), jnp.float32) * s
    # Fold b_hr / b_hz into b_ih (valid: they appear only as gi+gh sums); keep b_hn apart.
    bih_fold = bih.at[0:2].add(bhh[0:2])
    wih_p = (jnp.zeros((f, 3, hdp), jnp.float32).at[:, :, :hd].set(wih)
             .reshape(f, 3 * hdp).astype(jnp.bfloat16))
    whh_p = jnp.zeros((hdp, 3, hdp), jnp.float32).at[:hd, :, :hd].set(whh).reshape(hdp, 3 * hdp)
    bih_p = jnp.zeros((1, 3, hdp), jnp.float32).at[0, :, :hd].set(bih_fold).reshape(1, 3 * hdp)
    bhhn_p = jnp.zeros((1, hdp), jnp.float32).at[0, :hd].set(bhh[2])
    params["gru"] = (wih_p, whh_p, bih_p, bhhn_p)
    return params


def reference_encoder_forward(inputs, params, n_mels):
    # inputs: [N, Ty, n_mels] -> torch view(N,1,-1,n_mels) NCHW == NHWC [N, Ty, n_mels, 1]
    n = inputs.shape[0]
    x = inputs.reshape(n, -1, n_mels)[..., None].astype(jnp.float32)

    for i, (w_p, gamma_p, beta_p, cout) in enumerate(params["convs"]):
        if i == 0:
            x = add_coords_with_r(x)                     # CoordConv2d(with_r=True)
        x = conv_bn_relu(x, w_p, gamma_p, beta_p, cout)  # Pallas: matmul + BN + ReLU

    nf, t, wf, c = x.shape
    # NCHW .transpose(1,2).view(N,T,-1)  ==  (N, T, C*W) with C-major ordering.
    feats = jnp.transpose(x, (0, 1, 3, 2)).reshape(nf, t, c * wf)
    return gru_last_hidden(feats, params["gru"], params["gru_size"])   # [N, gru_size]


# TODO(synk): BatchNorm running-statistics buffer updates are not modeled; the forward
# output matches PyTorch training-mode BN which uses batch statistics.

if __name__ == "__main__":
    ref_enc_filters = [4, 8, 16]
    n_mels = 32
    gru_size = 32
    batch, ty = 2, 64

    key = jax.random.PRNGKey(0)
    k_in, k_par = jax.random.split(key)
    inputs = jax.random.normal(k_in, (batch, ty, n_mels), jnp.float32)
    params = init_params(k_par, ref_enc_filters, n_mels, gru_size)

    fwd = jax.jit(lambda x: reference_encoder_forward(x, params, n_mels))
    out = jax.block_until_ready(fwd(inputs))

    assert out.shape == (batch, gru_size), out.shape
    assert bool(jnp.all(jnp.isfinite(out)))
    print("KERNEL_OK")
</pallas_src>

<mosaic_0001>
module attributes {stable_mosaic.version = 11 : i64} {
  func.func @_conv_stats_kernel(%arg0: i32, %arg1: memref<1024x36xbf16, #tpu.memory_space<vmem>>, %arg2: memref<36x128xbf16, #tpu.memory_space<vmem>>, %arg3: memref<8x128xf32, #tpu.memory_space<vmem>>, %arg4: memref<8x128xf32, #tpu.memory_space<vmem>>) attributes {dimension_semantics = [#tpu.dimension_semantics<parallel>], iteration_bounds = array<i64: 1>, scalar_prefetch = 0 : i64, scratch_operands = 0 : i64, tpu.core_type = #tpu.core_type<tc>, window_params = [{transform_indices = @transform_0, window_bounds = array<i64: 1024, 36>}, {pipeline_mode = #tpu.pipeline_mode<synchronous>, transform_indices = @transform_1, window_bounds = array<i64: 36, 128>}, {transform_indices = @transform_2, window_bounds = array<i64: 8, 128>}, {transform_indices = @transform_3, window_bounds = array<i64: 8, 128>}]} {
    %c0 = arith.constant 0 : index
    %c0_0 = arith.constant 0 : index
    %0 = vector.load %arg1[%c0, %c0_0] : memref<1024x36xbf16, #tpu.memory_space<vmem>>, vector<1024x36xbf16>
    %c0_1 = arith.constant 0 : index
    %c0_2 = arith.constant 0 : index
    %1 = vector.load %arg2[%c0_1, %c0_2] : memref<36x128xbf16, #tpu.memory_space<vmem>>, vector<36x128xbf16>
    %cst = arith.constant dense<0.000000e+00> : vector<1024x128xf32>
    %2 = tpu.matmul %0, %1, %cst {dimension_numbers = #tpu.dot_dimension_numbers<[1], [0], [0], [1], [0, 0, 1, 1], [], []>} : vector<1024x36xbf16>, vector<36x128xbf16>, vector<1024x128xf32> -> vector<1024x128xf32>
    %3 = vector.shape_cast %2 : vector<1024x128xf32> to vector<128x8x128xf32>
    %cst_3 = arith.constant dense<0.000000e+00> : vector<8x128xf32>
    %4 = vector.multi_reduction <add>, %3, %cst_3 [0] : vector<128x8x128xf32> to vector<8x128xf32>
    %c0_4 = arith.constant 0 : index
    %c0_5 = arith.constant 0 : index
    %5 = vector.load %arg3[%c0_4, %c0_5] : memref<8x128xf32, #tpu.memory_space<vmem>>, vector<8x128xf32>
    tpu.vector_store %arg3[%c0_4, %c0_5], %4 {strides = array<i32>} : memref<8x128xf32, #tpu.memory_space<vmem>>, vector<8x128xf32>,
    %6 = arith.mulf %3, %3 : vector<128x8x128xf32>
    %cst_6 = arith.constant dense<0.000000e+00> : vector<8x128xf32>
    %7 = vector.multi_reduction <add>, %6, %cst_6 [0] : vector<128x8x128xf32> to vector<8x128xf32>
    %c0_7 = arith.constant 0 : index
    %c0_8 = arith.constant 0 : index
    %8 = vector.load %arg4[%c0_7, %c0_8] : memref<8x128xf32, #tpu.memory_space<vmem>>, vector<8x128xf32>
    tpu.vector_store %arg4[%c0_7, %c0_8], %7 {strides = array<i32>} : memref<8x128xf32, #tpu.memory_space<vmem>>, vector<8x128xf32>,
    return
  }
  func.func @transform_0(%arg0: i32) -> (i32, i32) {
    %c0_i32 = arith.constant 0 : i32
    %c0_i32_0 = arith.constant 0 : i32
    return %arg0, %c0_i32 : i32, i32
  }
  func.func @transform_1(%arg0: i32) -> (i32, i32) {
    %c0_i32 = arith.constant 0 : i32
    %c0_i32_0 = arith.constant 0 : i32
    %c0_i32_1 = arith.constant 0 : i32
    return %c0_i32, %c0_i32_0 : i32, i32
  }
  func.func @transform_2(%arg0: i32) -> (i32, i32) {
    %c0_i32 = arith.constant 0 : i32
    %c0_i32_0 = arith.constant 0 : i32
    return %arg0, %c0_i32 : i32, i32
  }
  func.func @transform_3(%arg0: i32) -> (i32, i32) {
    %c0_i32 = arith.constant 0 : i32
    %c0_i32_0 = arith.constant 0 : i32
    return %arg0, %c0_i32 : i32, i32
  }
}

module attributes {stable_mosaic.version = 11 : i64} {
  func.func @_conv_bn_relu_kernel(%arg0: i32, %arg1: memref<1024x36xbf16, #tpu.memory_space<vmem>>, %arg2: memref<36x128xbf16, #tpu.memory_space<vmem>>, %arg3: memref<1x128xf32, #tpu.memory_space<vmem>>, %arg4: memref<1x128xf32, #tpu.memory_space<vmem>>, %arg5: memref<1024x128xf32, #tpu.memory_space<vmem>>) attributes {dimension_semantics = [#tpu.dimension_semantics<parallel>], iteration_bounds = array<i64: 1>, scalar_prefetch = 0 : i64, scratch_operands = 0 : i64, tpu.core_type = #tpu.core_type<tc>, window_params = [{transform_indices = @transform_0, window_bounds = array<i64: 1024, 36>}, {pipeline_mode = #tpu.pipeline_mode<synchronous>, transform_indices = @transform_1, window_bounds = array<i64: 36, 128>}, {pipeline_mode = #tpu.pipeline_mode<synchronous>, transform_indices = @transform_2, window_bounds = array<i64: 1, 128>}, {pipeline_mode = #tpu.pipeline_mode<synchronous>, transform_indices = @transform_3, window_bounds = array<i64: 1, 128>}, {transform_indices = @transform_4, window_bounds = array<i64: 1024, 128>}]} {
    %c0 = arith.constant 0 : index
    %c0_0 = arith.constant 0 : index
    %0 = vector.load %arg1[%c0, %c0_0] : memref<1024x36xbf16, #tpu.memory_space<vmem>>, vector<1024x36xbf16>
    %c0_1 = arith.constant 0 : index
    %c0_2 = arith.constant 0 : index
    %1 = vector.load %arg2[%c0_1, %c0_2] : memref<36x128xbf16, #tpu.memory_space<vmem>>, vector<36x128xbf16>
    %cst = arith.constant dense<0.000000e+00> : vector<1024x128xf32>
    %2 = tpu.matmul %0, %1, %cst {dimension_numbers = #tpu.dot_dimension_numbers<[1], [0], [0], [1], [0, 0, 1, 1], [], []>} : vector<1024x36xbf16>, vector<36x128xbf16>, vector<1024x128xf32> -> vector<1024x128xf32>
    %c0_3 = arith.constant 0 : index
    %c0_4 = arith.constant 0 : index
    %3 = vector.load %arg3[%c0_3, %c0_4] : memref<1x128xf32, #tpu.memory_space<vmem>>, vector<1x128xf32>
    %4 = vector.broadcast %3 : vector<1x128xf32> to vector<1024x128xf32>
    %5 = arith.mulf %2, %4 : vector<1024x128xf32>
    %c0_5 = arith.constant 0 : index
    %c0_6 = arith.constant 0 : index
    %6 = vector.load %arg4[%c0_5, %c0_6] : memref<1x128xf32, #tpu.memory_space<vmem>>, vector<1x128xf32>
    %7 = vector.broadcast %6 : vector<1x128xf32> to vector<1024x128xf32>
    %8 = arith.addf %5, %7 : vector<1024x128xf32>
    %cst_7 = arith.constant 0.000000e+00 : f32
    %9 = vector.broadcast %cst_7 : f32 to vector<1024x128xf32>
    %10 = arith.maximumf %8, %9 : vector<1024x128xf32>
    %c0_8 = arith.constant 0 : index
    %c0_9 = arith.constant 0 : index
    %11 = vector.load %arg5[%c0_8, %c0_9] : memref<1024x128xf32, #tpu.memory_space<vmem>>, vector<1024x128xf32>
    tpu.vector_store %arg5[%c0_8, %c0_9], %10 {strides = array<i32>} : memref<1024x128xf32, #tpu.memory_space<vmem>>, vector<1024x128xf32>,
    return
  }
  func.func @transform_0(%arg0: i32) -> (i32, i32) {
    %c0_i32 = arith.constant 0 : i32
    %c0_i32_0 = arith.constant 0 : i32
    return %arg0, %c0_i32 : i32, i32
  }
  func.func @transform_1(%arg0: i32) -> (i32, i32) {
    %c0_i32 = arith.constant 0 : i32
    %c0_i32_0 = arith.constant 0 : i32
    %c0_i32_1 = arith.constant 0 : i32
    return %c0_i32, %c0_i32_0 : i32, i32
  }
  func.func @transform_2(%arg0: i32) -> (i32, i32) {
    %c0_i32 = arith.constant 0 : i32
    %c0_i32_0 = arith.constant 0 : i32
    %c0_i32_1 = arith.constant 0 : i32
    return %c0_i32, %c0_i32_0 : i32, i32
  }
  func.func @transform_3(%arg0: i32) -> (i32, i32) {
    %c0_i32 = arith.constant 0 : i32
    %c0_i32_0 = arith.constant 0 : i32
    %c0_i32_1 = arith.constant 0 : i32
    return %c0_i32, %c0_i32_0 : i32, i32
  }
  func.func @transform_4(%arg0: i32) -> (i32, i32) {
    %c0_i32 = arith.constant 0 : i32
    %c0_i32_0 = arith.constant 0 : i32
    return %arg0, %c0_i32 : i32, i32
  }
}

module attributes {stable_mosaic.version = 11 : i64} {
  func.func @_conv_stats_kernel(%arg0: i32, %arg1: memref<256x36xbf16, #tpu.memory_space<vmem>>, %arg2: memref<36x128xbf16, #tpu.memory_space<vmem>>, %arg3: memref<8x128xf32, #tpu.memory_space<vmem>>, %arg4: memref<8x128xf32, #tpu.memory_space<vmem>>) attributes {dimension_semantics = [#tpu.dimension_semantics<parallel>], iteration_bounds = array<i64: 1>, scalar_prefetch = 0 : i64, scratch_operands = 0 : i64, tpu.core_type = #tpu.core_type<tc>, window_params = [{transform_indices = @transform_0, window_bounds = array<i64: 256, 36>}, {pipeline_mode = #tpu.pipeline_mode<synchronous>, transform_indices = @transform_1, window_bounds = array<i64: 36, 128>}, {transform_indices = @transform_2, window_bounds = array<i64: 8, 128>}, {transform_indices = @transform_3, window_bounds = array<i64: 8, 128>}]} {
    %c0 = arith.constant 0 : index
    %c0_0 = arith.constant 0 : index
    %0 = vector.load %arg1[%c0, %c0_0] : memref<256x36xbf16, #tpu.memory_space<vmem>>, vector<256x36xbf16>
    %c0_1 = arith.constant 0 : index
    %c0_2 = arith.constant 0 : index
    %1 = vector.load %arg2[%c0_1, %c0_2] : memref<36x128xbf16, #tpu.memory_space<vmem>>, vector<36x128xbf16>
    %cst = arith.constant dense<0.000000e+00> : vector<256x128xf32>
    %2 = tpu.matmul %0, %1, %cst {dimension_numbers = #tpu.dot_dimension_numbers<[1], [0], [0], [1], [0, 0, 1, 1], [], []>} : vector<256x36xbf16>, vector<36x128xbf16>, vector<256x128xf32> -> vector<256x128xf32>
    %3 = vector.shape_cast %2 : vector<256x128xf32> to vector<32x8x128xf32>
    %cst_3 = arith.constant dense<0.000000e+00> : vector<8x128xf32>
    %4 = vector.multi_reduction <add>, %3, %cst_3 [0] : vector<32x8x128xf32> to vector<8x128xf32>
    %c0_4 = arith.constant 0 : index
    %c0_5 = arith.constant 0 : index
    %5 = vector.load %arg3[%c0_4, %c0_5] : memref<8x128xf32, #tpu.memory_space<vmem>>, vector<8x128xf32>
    tpu.vector_store %arg3[%c0_4, %c0_5], %4 {strides = array<i32>} : memref<8x128xf32, #tpu.memory_space<vmem>>, vector<8x128xf32>,
    %6 = arith.mulf %3, %3 : vector<32x8x128xf32>
    %cst_6 = arith.constant dense<0.000000e+00> : vector<8x128xf32>
    %7 = vector.multi_reduction <add>, %6, %cst_6 [0] : vector<32x8x128xf32> to vector<8x128xf32>
    %c0_7 = arith.constant 0 : index
    %c0_8 = arith.constant 0 : index
    %8 = vector.load %arg4[%c0_7, %c0_8] : memref<8x128xf32, #tpu.memory_space<vmem>>, vector<8x128xf32>
    tpu.vector_store %arg4[%c0_7, %c0_8], %7 {strides = array<i32>} : memref<8x128xf32, #tpu.memory_space<vmem>>, vector<8x128xf32>,
    return
  }
  func.func @transform_0(%arg0: i32) -> (i32, i32) {
    %c0_i32 = arith.constant 0 : i32
    %c0_i32_0 = arith.constant 0 : i32
    return %arg0, %c0_i32 : i32, i32
  }
  func.func @transform_1(%arg0: i32) -> (i32, i32) {
    %c0_i32 = arith.constant 0 : i32
    %c0_i32_0 = arith.constant 0 : i32
    %c0_i32_1 = arith.constant 0 : i32
    return %c0_i32, %c0_i32_0 : i32, i32
  }
  func.func @transform_2(%arg0: i32) -> (i32, i32) {
    %c0_i32 = arith.constant 0 : i32
    %c0_i32_0 = arith.constant 0 : i32
    return %arg0, %c0_i32 : i32, i32
  }
  func.func @transform_3(%arg0: i32) -> (i32, i32) {
    %c0_i32 = arith.constant 0 : i32
    %c0_i32_0 = arith.constant 0 : i32
    return %arg0, %c0_i32 : i32, i32
  }
}

module attributes {stable_mosaic.version = 11 : i64} {
  func.func @_conv_bn_relu_kernel(%arg0: i32, %arg1: memref<256x36xbf16, #tpu.memory_space<vmem>>, %arg2: memref<36x128xbf16, #tpu.memory_space<vmem>>, %arg3: memref<1x128xf32, #tpu.memory_space<vmem>>, %arg4: memref<1x128xf32, #tpu.memory_space<vmem>>, %arg5: memref<256x128xf32, #tpu.memory_space<vmem>>) attributes {dimension_semantics = [#tpu.dimension_semantics<parallel>], iteration_bounds = array<i64: 1>, scalar_prefetch = 0 : i64, scratch_operands = 0 : i64, tpu.core_type = #tpu.core_type<tc>, window_params = [{transform_indices = @transform_0, window_bounds = array<i64: 256, 36>}, {pipeline_mode = #tpu.pipeline_mode<synchronous>, transform_indices = @transform_1, window_bounds = array<i64: 36, 128>}, {pipeline_mode = #tpu.pipeline_mode<synchronous>, transform_indices = @transform_2, window_bounds = array<i64: 1, 128>}, {pipeline_mode = #tpu.pipeline_mode<synchronous>, transform_indices = @transform_3, window_bounds = array<i64: 1, 128>}, {transform_indices = @transform_4, window_bounds = array<i64: 256, 128>}]} {
    %c0 = arith.constant 0 : index
    %c0_0 = arith.constant 0 : index
    %0 = vector.load %arg1[%c0, %c0_0] : memref<256x36xbf16, #tpu.memory_space<vmem>>, vector<256x36xbf16>
    %c0_1 = arith.constant 0 : index
    %c0_2 = arith.constant 0 : index
    %1 = vector.load %arg2[%c0_1, %c0_2] : memref<36x128xbf16, #tpu.memory_space<vmem>>, vector<36x128xbf16>
    %cst = arith.constant dense<0.000000e+00> : vector<256x128xf32>
    %2 = tpu.matmul %0, %1, %cst {dimension_numbers = #tpu.dot_dimension_numbers<[1], [0], [0], [1], [0, 0, 1, 1], [], []>} : vector<256x36xbf16>, vector<36x128xbf16>, vector<256x128xf32> -> vector<256x128xf32>
    %c0_3 = arith.constant 0 : index
    %c0_4 = arith.constant 0 : index
    %3 = vector.load %arg3[%c0_3, %c0_4] : memref<1x128xf32, #tpu.memory_space<vmem>>, vector<1x128xf32>
    %4 = vector.broadcast %3 : vector<1x128xf32> to vector<256x128xf32>
    %5 = arith.mulf %2, %4 : vector<256x128xf32>
    %c0_5 = arith.constant 0 : index
    %c0_6 = arith.constant 0 : index
    %6 = vector.load %arg4[%c0_5, %c0_6] : memref<1x128xf32, #tpu.memory_space<vmem>>, vector<1x128xf32>
    %7 = vector.broadcast %6 : vector<1x128xf32> to vector<256x128xf32>
    %8 = arith.addf %5, %7 : vector<256x128xf32>
    %cst_7 = arith.constant 0.000000e+00 : f32
    %9 = vector.broadcast %cst_7 : f32 to vector<256x128xf32>
    %10 = arith.maximumf %8, %9 : vector<256x128xf32>
    %c0_8 = arith.constant 0 : index
    %c0_9 = arith.constant 0 : index
    %11 = vector.load %arg5[%c0_8, %c0_9] : memref<256x128xf32, #tpu.memory_space<vmem>>, vector<256x128xf32>
    tpu.vector_store %arg5[%c0_8, %c0_9], %10 {strides = array<i32>} : memref<256x128xf32, #tpu.memory_space<vmem>>, vector<256x128xf32>,
    return
  }
  func.func @transform_0(%arg0: i32) -> (i32, i32) {
    %c0_i32 = arith.constant 0 : i32
    %c0_i32_0 = arith.constant 0 : i32
    return %arg0, %c0_i32 : i32, i32
  }
  func.func @transform_1(%arg0: i32) -> (i32, i32) {
    %c0_i32 = arith.constant 0 : i32
    %c0_i32_0 = arith.constant 0 : i32
    %c0_i32_1 = arith.constant 0 : i32
    return %c0_i32, %c0_i32_0 : i32, i32
  }
  func.func @transform_2(%arg0: i32) -> (i32, i32) {
    %c0_i32 = arith.constant 0 : i32
    %c0_i32_0 = arith.constant 0 : i32
    %c0_i32_1 = arith.constant 0 : i32
    return %c0_i32, %c0_i32_0 : i32, i32
  }
  func.func @transform_3(%arg0: i32) -> (i32, i32) {
    %c0_i32 = arith.constant 0 : i32
    %c0_i32_0 = arith.constant 0 : i32
    %c0_i32_1 = arith.constant 0 : i32
    return %c0_i32, %c0_i32_0 : i32, i32
  }
  func.func @transform_4(%arg0: i32) -> (i32, i32) {
    %c0_i32 = arith.constant 0 : i32
    %c0_i32_0 = arith.constant 0 : i32
    return %arg0, %c0_i32 : i32, i32
  }
}

module attributes {stable_mosaic.version = 11 : i64} {
  func.func @_conv_stats_kernel(%arg0: i32, %arg1: memref<64x72xbf16, #tpu.memory_space<vmem>>, %arg2: memref<72x128xbf16, #tpu.memory_space<vmem>>, %arg3: memref<8x128xf32, #tpu.memory_space<vmem>>, %arg4: memref<8x128xf32, #tpu.memory_space<vmem>>) attributes {dimension_semantics = [#tpu.dimension_semantics<parallel>], iteration_bounds = array<i64: 1>, scalar_prefetch = 0 : i64, scratch_operands = 0 : i64, tpu.core_type = #tpu.core_type<tc>, window_params = [{transform_indices = @transform_0, window_bounds = array<i64: 64, 72>}, {pipeline_mode = #tpu.pipeline_mode<synchronous>, transform_indices = @transform_1, window_bounds = array<i64: 72, 128>}, {transform_indices = @transform_2, window_bounds = array<i64: 8, 128>}, {transform_indices = @transform_3, window_bounds = array<i64: 8, 128>}]} {
    %c0 = arith.constant 0 : index
    %c0_0 = arith.constant 0 : index
    %0 = vector.load %arg1[%c0, %c0_0] : memref<64x72xbf16, #tpu.memory_space<vmem>>, vector<64x72xbf16>
    %c0_1 = arith.constant 0 : index
    %c0_2 = arith.constant 0 : index
    %1 = vector.load %arg2[%c0_1, %c0_2] : memref<72x128xbf16, #tpu.memory_space<vmem>>, vector<72x128xbf16>
    %cst = arith.constant dense<0.000000e+00> : vector<64x128xf32>
    %2 = tpu.matmul %0, %1, %cst {dimension_numbers = #tpu.dot_dimension_numbers<[1], [0], [0], [1], [0, 0, 1, 1], [], []>} : vector<64x72xbf16>, vector<72x128xbf16>, vector<64x128xf32> -> vector<64x128xf32>
    %3 = vector.shape_cast %2 : vector<64x128xf32> to vector<8x8x128xf32>
    %cst_3 = arith.constant dense<0.000000e+00> : vector<8x128xf32>
    %4 = vector.multi_reduction <add>, %3, %cst_3 [0] : vector<8x8x128xf32> to vector<8x128xf32>
    %c0_4 = arith.constant 0 : index
    %c0_5 = arith.constant 0 : index
    %5 = vector.load %arg3[%c0_4, %c0_5] : memref<8x128xf32, #tpu.memory_space<vmem>>, vector<8x128xf32>
    tpu.vector_store %arg3[%c0_4, %c0_5], %4 {strides = array<i32>} : memref<8x128xf32, #tpu.memory_space<vmem>>, vector<8x128xf32>,
    %6 = arith.mulf %3, %3 : vector<8x8x128xf32>
    %cst_6 = arith.constant dense<0.000000e+00> : vector<8x128xf32>
    %7 = vector.multi_reduction <add>, %6, %cst_6 [0] : vector<8x8x128xf32> to vector<8x128xf32>
    %c0_7 = arith.constant 0 : index
    %c0_8 = arith.constant 0 : index
    %8 = vector.load %arg4[%c0_7, %c0_8] : memref<8x128xf32, #tpu.memory_space<vmem>>, vector<8x128xf32>
    tpu.vector_store %arg4[%c0_7, %c0_8], %7 {strides = array<i32>} : memref<8x128xf32, #tpu.memory_space<vmem>>, vector<8x128xf32>,
    return
  }
  func.func @transform_0(%arg0: i32) -> (i32, i32) {
    %c0_i32 = arith.constant 0 : i32
    %c0_i32_0 = arith.constant 0 : i32
    return %arg0, %c0_i32 : i32, i32
  }
  func.func @transform_1(%arg0: i32) -> (i32, i32) {
    %c0_i32 = arith.constant 0 : i32
    %c0_i32_0 = arith.constant 0 : i32
    %c0_i32_1 = arith.constant 0 : i32
    return %c0_i32, %c0_i32_0 : i32, i32
  }
  func.func @transform_2(%arg0: i32) -> (i32, i32) {
    %c0_i32 = arith.constant 0 : i32
    %c0_i32_0 = arith.constant 0 : i32
    return %arg0, %c0_i32 : i32, i32
  }
  func.func @transform_3(%arg0: i32) -> (i32, i32) {
    %c0_i32 = arith.constant 0 : i32
    %c0_i32_0 = arith.constant 0 : i32
    return %arg0, %c0_i32 : i32, i32
  }
}

module attributes {stable_mosaic.version = 11 : i64} {
  func.func @_conv_bn_relu_kernel(%arg0: i32, %arg1: memref<64x72xbf16, #tpu.memory_space<vmem>>, %arg2: memref<72x128xbf16, #tpu.memory_space<vmem>>, %arg3: memref<1x128xf32, #tpu.memory_space<vmem>>, %arg4: memref<1x128xf32, #tpu.memory_space<vmem>>, %arg5: memref<64x128xf32, #tpu.memory_space<vmem>>) attributes {dimension_semantics = [#tpu.dimension_semantics<parallel>], iteration_bounds = array<i64: 1>, scalar_prefetch = 0 : i64, scratch_operands = 0 : i64, tpu.core_type = #tpu.core_type<tc>, window_params = [{transform_indices = @transform_0, window_bounds = array<i64: 64, 72>}, {pipeline_mode = #tpu.pipeline_mode<synchronous>, transform_indices = @transform_1, window_bounds = array<i64: 72, 128>}, {pipeline_mode = #tpu.pipeline_mode<synchronous>, transform_indices = @transform_2, window_bounds = array<i64: 1, 128>}, {pipeline_mode = #tpu.pipeline_mode<synchronous>, transform_indices = @transform_3, window_bounds = array<i64: 1, 128>}, {transform_indices = @transform_4, window_bounds = array<i64: 64, 128>}]} {
    %c0 = arith.constant 0 : index
    %c0_0 = arith.constant 0 : index
    %0 = vector.load %arg1[%c0, %c0_0] : memref<64x72xbf16, #tpu.memory_space<vmem>>, vector<64x72xbf16>
    %c0_1 = arith.constant 0 : index
    %c0_2 = arith.constant 0 : index
    %1 = vector.load %arg2[%c0_1, %c0_2] : memref<72x128xbf16, #tpu.memory_space<vmem>>, vector<72x128xbf16>
    %cst = arith.constant dense<0.000000e+00> : vector<64x128xf32>
    %2 = tpu.matmul %0, %1, %cst {dimension_numbers = #tpu.dot_dimension_numbers<[1], [0], [0], [1], [0, 0, 1, 1], [], []>} : vector<64x72xbf16>, vector<72x128xbf16>, vector<64x128xf32> -> vector<64x128xf32>
    %c0_3 = arith.constant 0 : index
    %c0_4 = arith.constant 0 : index
    %3 = vector.load %arg3[%c0_3, %c0_4] : memref<1x128xf32, #tpu.memory_space<vmem>>, vector<1x128xf32>
    %4 = vector.broadcast %3 : vector<1x128xf32> to vector<64x128xf32>
    %5 = arith.mulf %2, %4 : vector<64x128xf32>
    %c0_5 = arith.constant 0 : index
    %c0_6 = arith.constant 0 : index
    %6 = vector.load %arg4[%c0_5, %c0_6] : memref<1x128xf32, #tpu.memory_space<vmem>>, vector<1x128xf32>
    %7 = vector.broadcast %6 : vector<1x128xf32> to vector<64x128xf32>
    %8 = arith.addf %5, %7 : vector<64x128xf32>
    %cst_7 = arith.constant 0.000000e+00 : f32
    %9 = vector.broadcast %cst_7 : f32 to vector<64x128xf32>
    %10 = arith.maximumf %8, %9 : vector<64x128xf32>
    %c0_8 = arith.constant 0 : index
    %c0_9 = arith.constant 0 : index
    %11 = vector.load %arg5[%c0_8, %c0_9] : memref<64x128xf32, #tpu.memory_space<vmem>>, vector<64x128xf32>
    tpu.vector_store %arg5[%c0_8, %c0_9], %10 {strides = array<i32>} : memref<64x128xf32, #tpu.memory_space<vmem>>, vector<64x128xf32>,
    return
  }
  func.func @transform_0(%arg0: i32) -> (i32, i32) {
    %c0_i32 = arith.constant 0 : i32
    %c0_i32_0 = arith.constant 0 : i32
    return %arg0, %c0_i32 : i32, i32
  }
  func.func @transform_1(%arg0: i32) -> (i32, i32) {
    %c0_i32 = arith.constant 0 : i32
    %c0_i32_0 = arith.constant 0 : i32
    %c0_i32_1 = arith.constant 0 : i32
    return %c0_i32, %c0_i32_0 : i32, i32
  }
  func.func @transform_2(%arg0: i32) -> (i32, i32) {
    %c0_i32 = arith.constant 0 : i32
    %c0_i32_0 = arith.constant 0 : i32
    %c0_i32_1 = arith.constant 0 : i32
    return %c0_i32, %c0_i32_0 : i32, i32
  }
  func.func @transform_3(%arg0: i32) -> (i32, i32) {
    %c0_i32 = arith.constant 0 : i32
    %c0_i32_0 = arith.constant 0 : i32
    %c0_i32_1 = arith.constant 0 : i32
    return %c0_i32, %c0_i32_0 : i32, i32
  }
  func.func @transform_4(%arg0: i32) -> (i32, i32) {
    %c0_i32 = arith.constant 0 : i32
    %c0_i32_0 = arith.constant 0 : i32
    return %arg0, %c0_i32 : i32, i32
  }
}

module attributes {stable_mosaic.version = 11 : i64} {
  func.func @kernel(%arg0: i32, %arg1: memref<64x64xbf16, #tpu.memory_space<vmem>>, %arg2: memref<64x384xbf16, #tpu.memory_space<vmem>>, %arg3: memref<1x384xf32, #tpu.memory_space<vmem>>, %arg4: memref<128x384xf32, #tpu.memory_space<vmem>>, %arg5: memref<1x128xf32, #tpu.memory_space<vmem>>, %arg6: memref<8x128xf32, #tpu.memory_space<vmem>>, %arg7: memref<64x384xf32, #tpu.memory_space<vmem>>, %arg8: memref<8x128xf32, #tpu.memory_space<vmem>>) attributes {dimension_semantics = [#tpu.dimension_semantics<arbitrary>], iteration_bounds = array<i64: 1>, scalar_prefetch = 0 : i64, scratch_operands = 2 : i64, tpu.core_type = #tpu.core_type<tc>, window_params = [{transform_indices = @transform_0, window_bounds = array<i64: 64, 64>}, {pipeline_mode = #tpu.pipeline_mode<synchronous>, transform_indices = @transform_1, window_bounds = array<i64: 64, 384>}, {pipeline_mode = #tpu.pipeline_mode<synchronous>, transform_indices = @transform_2, window_bounds = array<i64: 1, 384>}, {pipeline_mode = #tpu.pipeline_mode<synchronous>, transform_indices = @transform_3, window_bounds = array<i64: 128, 384>}, {pipeline_mode = #tpu.pipeline_mode<synchronous>, transform_indices = @transform_4, window_bounds = array<i64: 1, 128>}, {pipeline_mode = #tpu.pipeline_mode<synchronous>, transform_indices = @transform_5, window_bounds = array<i64: 8, 128>}]} {
    %c0_i32 = arith.constant 0 : i32
    %0 = arith.cmpi eq, %arg0, %c0_i32 : i32
    %1 = arith.extui %0 : i1 to i32
    %c0_i32_0 = arith.constant 0 : i32
    %2 = arith.cmpi ne, %1, %c0_i32_0 : i32
    scf.if %2 {
      %cst_59 = arith.constant 0.000000e+00 : f32
      %255 = vector.broadcast %cst_59 : f32 to vector<8x128xf32>
      %c0_60 = arith.constant 0 : index
      %c0_61 = arith.constant 0 : index
      %256 = vector.load %arg8[%c0_60, %c0_61] : memref<8x128xf32, #tpu.memory_space<vmem>>, vector<8x128xf32>
      tpu.vector_store %arg8[%c0_60, %c0_61], %255 {strides = array<i32>} : memref<8x128xf32, #tpu.memory_space<vmem>>, vector<8x128xf32>,
    } else {
    }
    %c0 = arith.constant 0 : index
    %c0_1 = arith.constant 0 : index
    %3 = vector.load %arg1[%c0, %c0_1] : memref<64x64xbf16, #tpu.memory_space<vmem>>, vector<64x64xbf16>
    %c0_2 = arith.constant 0 : index
    %c0_3 = arith.constant 0 : index
    %4 = vector.load %arg2[%c0_2, %c0_3] : memref<64x384xbf16, #tpu.memory_space<vmem>>, vector<64x384xbf16>
    %cst = arith.constant dense<0.000000e+00> : vector<64x384xf32>
    %5 = tpu.matmul %3, %4, %cst {dimension_numbers = #tpu.dot_dimension_numbers<[1], [0], [0], [1], [0, 0, 1, 1], [], []>} : vector<64x64xbf16>, vector<64x384xbf16>, vector<64x384xf32> -> vector<64x384xf32>
    %c0_4 = arith.constant 0 : index
    %c0_5 = arith.constant 0 : index
    %6 = vector.load %arg3[%c0_4, %c0_5] : memref<1x384xf32, #tpu.memory_space<vmem>>, vector<1x384xf32>
    %7 = vector.broadcast %6 : vector<1x384xf32> to vector<64x384xf32>
    %8 = arith.addf %5, %7 : vector<64x384xf32>
    %c0_6 = arith.constant 0 : index
    %c0_7 = arith.constant 0 : index
    %9 = vector.load %arg7[%c0_6, %c0_7] : memref<64x384xf32, #tpu.memory_space<vmem>>, vector<64x384xf32>
    tpu.vector_store %arg7[%c0_6, %c0_7], %8 {strides = array<i32>} : memref<64x384xf32, #tpu.memory_space<vmem>>, vector<64x384xf32>,
    %c0_8 = arith.constant 0 : index
    %c0_9 = arith.constant 0 : index
    %10 = vector.load %arg4[%c0_8, %c0_9] : memref<128x384xf32, #tpu.memory_space<vmem>>, vector<128x384xf32>
    %c0_10 = arith.constant 0 : index
    %c0_11 = arith.constant 0 : index
    %11 = vector.load %arg5[%c0_10, %c0_11] : memref<1x128xf32, #tpu.memory_space<vmem>>, vector<1x128xf32>
    %c0_12 = arith.constant 0 : index
    %c0_13 = arith.constant 0 : index
    %12 = vector.load %arg8[%c0_12, %c0_13] : memref<8x128xf32, #tpu.memory_space<vmem>>, vector<8x128xf32>
    %c0_14 = arith.constant 0 : index
    %c0_15 = arith.constant 0 : index
    %13 = vector.load %arg7[%c0_14, %c0_15] : memref<64x384xf32, #tpu.memory_space<vmem>>, vector<8x384xf32>
    %cst_16 = arith.constant dense<0.000000e+00> : vector<8x384xf32>
    %14 = tpu.matmul %12, %10, %cst_16 {dimension_numbers = #tpu.dot_dimension_numbers<[1], [0], [0], [1], [0, 0, 1, 1], [], []>} : vector<8x128xf32>, vector<128x384xf32>, vector<8x384xf32> -> vector<8x384xf32>
    %15 = vector.extract_strided_slice %13 {offsets = [0, 0], sizes = [8, 128], strides = [1, 1]} : vector<8x384xf32> to vector<8x128xf32>
    %16 = vector.extract_strided_slice %14 {offsets = [0, 0], sizes = [8, 128], strides = [1, 1]} : vector<8x384xf32> to vector<8x128xf32>
    %17 = arith.addf %15, %16 : vector<8x128xf32>
    %18 = arith.negf %17 : vector<8x128xf32>
    %19 = math.exp %18 : vector<8x128xf32>
    %cst_17 = arith.constant 1.000000e+00 : f32
    %20 = vector.broadcast %cst_17 : f32 to vector<8x128xf32>
    %21 = arith.addf %20, %19 : vector<8x128xf32>
    %22 = arith.divf %20, %21 : vector<8x128xf32>
    %23 = vector.extract_strided_slice %13 {offsets = [0, 128], sizes = [8, 128], strides = [1, 1]} : vector<8x384xf32> to vector<8x128xf32>
    %24 = vector.extract_strided_slice %14 {offsets = [0, 128], sizes = [8, 128], strides = [1, 1]} : vector<8x384xf32> to vector<8x128xf32>
    %25 = arith.addf %23, %24 : vector<8x128xf32>
    %26 = arith.negf %25 : vector<8x128xf32>
    %27 = math.exp %26 : vector<8x128xf32>
    %cst_18 = arith.constant 1.000000e+00 : f32
    %28 = vector.broadcast %cst_18 : f32 to vector<8x128xf32>
    %29 = arith.addf %28, %27 : vector<8x128xf32>
    %30 = arith.divf %28, %29 : vector<8x128xf32>
    %31 = vector.extract_strided_slice %13 {offsets = [0, 256], sizes = [8, 128], strides = [1, 1]} : vector<8x384xf32> to vector<8x128xf32>
    %32 = vector.extract_strided_slice %14 {offsets = [0, 256], sizes = [8, 128], strides = [1, 1]} : vector<8x384xf32> to vector<8x128xf32>
    %33 = vector.broadcast %11 : vector<1x128xf32> to vector<8x128xf32>
    %34 = arith.addf %32, %33 : vector<8x128xf32>
    %35 = arith.mulf %22, %34 : vector<8x128xf32>
    %36 = arith.addf %31, %35 : vector<8x128xf32>
    %37 = math.tanh %36 : vector<8x128xf32>
    %cst_19 = arith.constant 1.000000e+00 : f32
    %38 = vector.broadcast %cst_19 : f32 to vector<8x128xf32>
    %39 = arith.subf %38, %30 : vector<8x128xf32>
    %40 = arith.mulf %39, %37 : vector<8x128xf32>
    %41 = arith.mulf %30, %12 : vector<8x128xf32>
    %42 = arith.addf %40, %41 : vector<8x128xf32>
    %c8 = arith.constant 8 : index
    %c0_20 = arith.constant 0 : index
    %43 = vector.load %arg7[%c8, %c0_20] : memref<64x384xf32, #tpu.memory_space<vmem>>, vector<8x384xf32>
    %cst_21 = arith.constant dense<0.000000e+00> : vector<8x384xf32>
    %44 = tpu.matmul %42, %10, %cst_21 {dimension_numbers = #tpu.dot_dimension_numbers<[1], [0], [0], [1], [0, 0, 1, 1], [], []>} : vector<8x128xf32>, vector<128x384xf32>, vector<8x384xf32> -> vector<8x384xf32>
    %45 = vector.extract_strided_slice %43 {offsets = [0, 0], sizes = [8, 128], strides = [1, 1]} : vector<8x384xf32> to vector<8x128xf32>
    %46 = vector.extract_strided_slice %44 {offsets = [0, 0], sizes = [8, 128], strides = [1, 1]} : vector<8x384xf32> to vector<8x128xf32>
    %47 = arith.addf %45, %46 : vector<8x128xf32>
    %48 = arith.negf %47 : vector<8x128xf32>
    %49 = math.exp %48 : vector<8x128xf32>
    %cst_22 = arith.constant 1.000000e+00 : f32
    %50 = vector.broadcast %cst_22 : f32 to vector<8x128xf32>
    %51 = arith.addf %50, %49 : vector<8x128xf32>
    %52 = arith.divf %50, %51 : vector<8x128xf32>
    %53 = vector.extract_strided_slice %43 {offsets = [0, 128], sizes = [8, 128], strides = [1, 1]} : vector<8x384xf32> to vector<8x128xf32>
    %54 = vector.extract_strided_slice %44 {offsets = [0, 128], sizes = [8, 128], strides = [1, 1]} : vector<8x384xf32> to vector<8x128xf32>
    %55 = arith.addf %53, %54 : vector<8x128xf32>
    %56 = arith.negf %55 : vector<8x128xf32>
    %57 = math.exp %56 : vector<8x128xf32>
    %cst_23 = arith.constant 1.000000e+00 : f32
    %58 = vector.broadcast %cst_23 : f32 to vector<8x128xf32>
    %59 = arith.addf %58, %57 : vector<8x128xf32>
    %60 = arith.divf %58, %59 : vector<8x128xf32>
    %61 = vector.extract_strided_slice %43 {offsets = [0, 256], sizes = [8, 128], strides = [1, 1]} : vector<8x384xf32> to vector<8x128xf32>
    %62 = vector.extract_strided_slice %44 {offsets = [0, 256], sizes = [8, 128], strides = [1, 1]} : vector<8x384xf32> to vector<8x128xf32>
    %63 = vector.broadcast %11 : vector<1x128xf32> to vector<8x128xf32>
    %64 = arith.addf %62, %63 : vector<8x128xf32>
    %65 = arith.mulf %52, %64 : vector<8x128xf32>
    %66 = arith.addf %61, %65 : vector<8x128xf32>
    %67 = math.tanh %66 : vector<8x128xf32>
    %cst_24 = arith.constant 1.000000e+00 : f32
    %68 = vector.broadcast %cst_24 : f32 to vector<8x128xf32>
    %69 = arith.subf %68, %60 : vector<8x128xf32>
    %70 = arith.mulf %69, %67 : vector<8x128xf32>
    %71 = arith.mulf %60, %42 : vector<8x128xf32>
    %72 = arith.addf %70, %71 : vector<8x128xf32>
    %c16 = arith.constant 16 : index
    %c0_25 = arith.constant 0 : index
    %73 = vector.load %arg7[%c16, %c0_25] : memref<64x384xf32, #tpu.memory_space<vmem>>, vector<8x384xf32>
    %cst_26 = arith.constant dense<0.000000e+00> : vector<8x384xf32>
    %74 = tpu.matmul %72, %10, %cst_26 {dimension_numbers = #tpu.dot_dimension_numbers<[1], [0], [0], [1], [0, 0, 1, 1], [], []>} : vector<8x128xf32>, vector<128x384xf32>, vector<8x384xf32> -> vector<8x384xf32>
    %75 = vector.extract_strided_slice %73 {offsets = [0, 0], sizes = [8, 128], strides = [1, 1]} : vector<8x384xf32> to vector<8x128xf32>
    %76 = vector.extract_strided_slice %74 {offsets = [0, 0], sizes = [8, 128], strides = [1, 1]} : vector<8x384xf32> to vector<8x128xf32>
    %77 = arith.addf %75, %76 : vector<8x128xf32>
    %78 = arith.negf %77 : vector<8x128xf32>
    %79 = math.exp %78 : vector<8x128xf32>
    %cst_27 = arith.constant 1.000000e+00 : f32
    %80 = vector.broadcast %cst_27 : f32 to vector<8x128xf32>
    %81 = arith.addf %80, %79 : vector<8x128xf32>
    %82 = arith.divf %80, %81 : vector<8x128xf32>
    %83 = vector.extract_strided_slice %73 {offsets = [0, 128], sizes = [8, 128], strides = [1, 1]} : vector<8x384xf32> to vector<8x128xf32>
    %84 = vector.extract_strided_slice %74 {offsets = [0, 128], sizes = [8, 128], strides = [1, 1]} : vector<8x384xf32> to vector<8x128xf32>
    %85 = arith.addf %83, %84 : vector<8x128xf32>
    %86 = arith.negf %85 : vector<8x128xf32>
    %87 = math.exp %86 : vector<8x128xf32>
    %cst_28 = arith.constant 1.000000e+00 : f32
    %88 = vector.broadcast %cst_28 : f32 to vector<8x128xf32>
    %89 = arith.addf %88, %87 : vector<8x128xf32>
    %90 = arith.divf %88, %89 : vector<8x128xf32>
    %91 = vector.extract_strided_slice %73 {offsets = [0, 256], sizes = [8, 128], strides = [1, 1]} : vector<8x384xf32> to vector<8x128xf32>
    %92 = vector.extract_strided_slice %74 {offsets = [0, 256], sizes = [8, 128], strides = [1, 1]} : vector<8x384xf32> to vector<8x128xf32>
    %93 = vector.broadcast %11 : vector<1x128xf32> to vector<8x128xf32>
    %94 = arith.addf %92, %93 : vector<8x128xf32>
    %95 = arith.mulf %82, %94 : vector<8x128xf32>
    %96 = arith.addf %91, %95 : vector<8x128xf32>
    %97 = math.tanh %96 : vector<8x128xf32>
    %cst_29 = arith.constant 1.000000e+00 : f32
    %98 = vector.broadcast %cst_29 : f32 to vector<8x128xf32>
    %99 = arith.subf %98, %90 : vector<8x128xf32>
    %100 = arith.mulf %99, %97 : vector<8x128xf32>
    %101 = arith.mulf %90, %72 : vector<8x128xf32>
    %102 = arith.addf %100, %101 : vector<8x128xf32>
    %c24 = arith.constant 24 : index
    %c0_30 = arith.constant 0 : index
    %103 = vector.load %arg7[%c24, %c0_30] : memref<64x384xf32, #tpu.memory_space<vmem>>, vector<8x384xf32>
    %cst_31 = arith.constant dense<0.000000e+00> : vector<8x384xf32>
    %104 = tpu.matmul %102, %10, %cst_31 {dimension_numbers = #tpu.dot_dimension_numbers<[1], [0], [0], [1], [0, 0, 1, 1], [], []>} : vector<8x128xf32>, vector<128x384xf32>, vector<8x384xf32> -> vector<8x384xf32>
    %105 = vector.extract_strided_slice %103 {offsets = [0, 0], sizes = [8, 128], strides = [1, 1]} : vector<8x384xf32> to vector<8x128xf32>
    %106 = vector.extract_strided_slice %104 {offsets = [0, 0], sizes = [8, 128], strides = [1, 1]} : vector<8x384xf32> to vector<8x128xf32>
    %107 = arith.addf %105, %106 : vector<8x128xf32>
    %108 = arith.negf %107 : vector<8x128xf32>
    %109 = math.exp %108 : vector<8x128xf32>
    %cst_32 = arith.constant 1.000000e+00 : f32
    %110 = vector.broadcast %cst_32 : f32 to vector<8x128xf32>
    %111 = arith.addf %110, %109 : vector<8x128xf32>
    %112 = arith.divf %110, %111 : vector<8x128xf32>
    %113 = vector.extract_strided_slice %103 {offsets = [0, 128], sizes = [8, 128], strides = [1, 1]} : vector<8x384xf32> to vector<8x128xf32>
    %114 = vector.extract_strided_slice %104 {offsets = [0, 128], sizes = [8, 128], strides = [1, 1]} : vector<8x384xf32> to vector<8x128xf32>
    %115 = arith.addf %113, %114 : vector<8x128xf32>
    %116 = arith.negf %115 : vector<8x128xf32>
    %117 = math.exp %116 : vector<8x128xf32>
    %cst_33 = arith.constant 1.000000e+00 : f32
    %118 = vector.broadcast %cst_33 : f32 to vector<8x128xf32>
    %119 = arith.addf %118, %117 : vector<8x128xf32>
    %120 = arith.divf %118, %119 : vector<8x128xf32>
    %121 = vector.extract_strided_slice %103 {offsets = [0, 256], sizes = [8, 128], strides = [1, 1]} : vector<8x384xf32> to vector<8x128xf32>
    %122 = vector.extract_strided_slice %104 {offsets = [0, 256], sizes = [8, 128], strides = [1, 1]} : vector<8x384xf32> to vector<8x128xf32>
    %123 = vector.broadcast %11 : vector<1x128xf32> to vector<8x128xf32>
    %124 = arith.addf %122, %123 : vector<8x128xf32>
    %125 = arith.mulf %112, %124 : vector<8x128xf32>
    %126 = arith.addf %121, %125 : vector<8x128xf32>
    %127 = math.tanh %126 : vector<8x128xf32>
    %cst_34 = arith.constant 1.000000e+00 : f32
    %128 = vector.broadcast %cst_34 : f32 to vector<8x128xf32>
    %129 = arith.subf %128, %120 : vector<8x128xf32>
    %130 = arith.mulf %129, %127 : vector<8x128xf32>
    %131 = arith.mulf %120, %102 : vector<8x128xf32>
    %132 = arith.addf %130, %131 : vector<8x128xf32>
    %c32 = arith.constant 32 : index
    %c0_35 = arith.constant 0 : index
    %133 = vector.load %arg7[%c32, %c0_35] : memref<64x384xf32, #tpu.memory_space<vmem>>, vector<8x384xf32>
    %cst_36 = arith.constant dense<0.000000e+00> : vector<8x384xf32>
    %134 = tpu.matmul %132, %10, %cst_36 {dimension_numbers = #tpu.dot_dimension_numbers<[1], [0], [0], [1], [0, 0, 1, 1], [], []>} : vector<8x128xf32>, vector<128x384xf32>, vector<8x384xf32> -> vector<8x384xf32>
    %135 = vector.extract_strided_slice %133 {offsets = [0, 0], sizes = [8, 128], strides = [1, 1]} : vector<8x384xf32> to vector<8x128xf32>
    %136 = vector.extract_strided_slice %134 {offsets = [0, 0], sizes = [8, 128], strides = [1, 1]} : vector<8x384xf32> to vector<8x128xf32>
    %137 = arith.addf %135, %136 : vector<8x128xf32>
    %138 = arith.negf %137 : vector<8x128xf32>
    %139 = math.exp %138 : vector<8x128xf32>
    %cst_37 = arith.constant 1.000000e+00 : f32
    %140 = vector.broadcast %cst_37 : f32 to vector<8x128xf32>
    %141 = arith.addf %140, %139 : vector<8x128xf32>
    %142 = arith.divf %140, %141 : vector<8x128xf32>
    %143 = vector.extract_strided_slice %133 {offsets = [0, 128], sizes = [8, 128], strides = [1, 1]} : vector<8x384xf32> to vector<8x128xf32>
    %144 = vector.extract_strided_slice %134 {offsets = [0, 128], sizes = [8, 128], strides = [1, 1]} : vector<8x384xf32> to vector<8x128xf32>
    %145 = arith.addf %143, %144 : vector<8x128xf32>
    %146 = arith.negf %145 : vector<8x128xf32>
    %147 = math.exp %146 : vector<8x128xf32>
    %cst_38 = arith.constant 1.000000e+00 : f32
    %148 = vector.broadcast %cst_38 : f32 to vector<8x128xf32>
    %149 = arith.addf %148, %147 : vector<8x128xf32>
    %150 = arith.divf %148, %149 : vector<8x128xf32>
    %151 = vector.extract_strided_slice %133 {offsets = [0, 256], sizes = [8, 128], strides = [1, 1]} : vector<8x384xf32> to vector<8x128xf32>
    %152 = vector.extract_strided_slice %134 {offsets = [0, 256], sizes = [8, 128], strides = [1, 1]} : vector<8x384xf32> to vector<8x128xf32>
    %153 = vector.broadcast %11 : vector<1x128xf32> to vector<8x128xf32>
    %154 = arith.addf %152, %153 : vector<8x128xf32>
    %155 = arith.mulf %142, %154 : vector<8x128xf32>
    %156 = arith.addf %151, %155 : vector<8x128xf32>
    %157 = math.tanh %156 : vector<8x128xf32>
    %cst_39 = arith.constant 1.000000e+00 : f32
    %158 = vector.broadcast %cst_39 : f32 to vector<8x128xf32>
    %159 = arith.subf %158, %150 : vector<8x128xf32>
    %160 = arith.mulf %159, %157 : vector<8x128xf32>
    %161 = arith.mulf %150, %132 : vector<8x128xf32>
    %162 = arith.addf %160, %161 : vector<8x128xf32>
    %c40 = arith.constant 40 : index
    %c0_40 = arith.constant 0 : index
    %163 = vector.load %arg7[%c40, %c0_40] : memref<64x384xf32, #tpu.memory_space<vmem>>, vector<8x384xf32>
    %cst_41 = arith.constant dense<0.000000e+00> : vector<8x384xf32>
    %164 = tpu.matmul %162, %10, %cst_41 {dimension_numbers = #tpu.dot_dimension_numbers<[1], [0], [0], [1], [0, 0, 1, 1], [], []>} : vector<8x128xf32>, vector<128x384xf32>, vector<8x384xf32> -> vector<8x384xf32>
    %165 = vector.extract_strided_slice %163 {offsets = [0, 0], sizes = [8, 128], strides = [1, 1]} : vector<8x384xf32> to vector<8x128xf32>
    %166 = vector.extract_strided_slice %164 {offsets = [0, 0], sizes = [8, 128], strides = [1, 1]} : vector<8x384xf32> to vector<8x128xf32>
    %167 = arith.addf %165, %166 : vector<8x128xf32>
    %168 = arith.negf %167 : vector<8x128xf32>
    %169 = math.exp %168 : vector<8x128xf32>
    %cst_42 = arith.constant 1.000000e+00 : f32
    %170 = vector.broadcast %cst_42 : f32 to vector<8x128xf32>
    %171 = arith.addf %170, %169 : vector<8x128xf32>
    %172 = arith.divf %170, %171 : vector<8x128xf32>
    %173 = vector.extract_strided_slice %163 {offsets = [0, 128], sizes = [8, 128], strides = [1, 1]} : vector<8x384xf32> to vector<8x128xf32>
    %174 = vector.extract_strided_slice %164 {offsets = [0, 128], sizes = [8, 128], strides = [1, 1]} : vector<8x384xf32> to vector<8x128xf32>
    %175 = arith.addf %173, %174 : vector<8x128xf32>
    %176 = arith.negf %175 : vector<8x128xf32>
    %177 = math.exp %176 : vector<8x128xf32>
    %cst_43 = arith.constant 1.000000e+00 : f32
    %178 = vector.broadcast %cst_43 : f32 to vector<8x128xf32>
    %179 = arith.addf %178, %177 : vector<8x128xf32>
    %180 = arith.divf %178, %179 : vector<8x128xf32>
    %181 = vector.extract_strided_slice %163 {offsets = [0, 256], sizes = [8, 128], strides = [1, 1]} : vector<8x384xf32> to vector<8x128xf32>
    %182 = vector.extract_strided_slice %164 {offsets = [0, 256], sizes = [8, 128], strides = [1, 1]} : vector<8x384xf32> to vector<8x128xf32>
    %183 = vector.broadcast %11 : vector<1x128xf32> to vector<8x128xf32>
    %184 = arith.addf %182, %183 : vector<8x128xf32>
    %185 = arith.mulf %172, %184 : vector<8x128xf32>
    %186 = arith.addf %181, %185 : vector<8x128xf32>
    %187 = math.tanh %186 : vector<8x128xf32>
    %cst_44 = arith.constant 1.000000e+00 : f32
    %188 = vector.broadcast %cst_44 : f32 to vector<8x128xf32>
    %189 = arith.subf %188, %180 : vector<8x128xf32>
    %190 = arith.mulf %189, %187 : vector<8x128xf32>
    %191 = arith.mulf %180, %162 : vector<8x128xf32>
    %192 = arith.addf %190, %191 : vector<8x128xf32>
    %c48 = arith.constant 48 : index
    %c0_45 = arith.constant 0 : index
    %193 = vector.load %arg7[%c48, %c0_45] : memref<64x384xf32, #tpu.memory_space<vmem>>, vector<8x384xf32>
    %cst_46 = arith.constant dense<0.000000e+00> : vector<8x384xf32>
    %194 = tpu.matmul %192, %10, %cst_46 {dimension_numbers = #tpu.dot_dimension_numbers<[1], [0], [0], [1], [0, 0, 1, 1], [], []>} : vector<8x128xf32>, vector<128x384xf32>, vector<8x384xf32> -> vector<8x384xf32>
    %195 = vector.extract_strided_slice %193 {offsets = [0, 0], sizes = [8, 128], strides = [1, 1]} : vector<8x384xf32> to vector<8x128xf32>
    %196 = vector.extract_strided_slice %194 {offsets = [0, 0], sizes = [8, 128], strides = [1, 1]} : vector<8x384xf32> to vector<8x128xf32>
    %197 = arith.addf %195, %196 : vector<8x128xf32>
    %198 = arith.negf %197 : vector<8x128xf32>
    %199 = math.exp %198 : vector<8x128xf32>
    %cst_47 = arith.constant 1.000000e+00 : f32
    %200 = vector.broadcast %cst_47 : f32 to vector<8x128xf32>
    %201 = arith.addf %200, %199 : vector<8x128xf32>
    %202 = arith.divf %200, %201 : vector<8x128xf32>
    %203 = vector.extract_strided_slice %193 {offsets = [0, 128], sizes = [8, 128], strides = [1, 1]} : vector<8x384xf32> to vector<8x128xf32>
    %204 = vector.extract_strided_slice %194 {offsets = [0, 128], sizes = [8, 128], strides = [1, 1]} : vector<8x384xf32> to vector<8x128xf32>
    %205 = arith.addf %203, %204 : vector<8x128xf32>
    %206 = arith.negf %205 : vector<8x128xf32>
    %207 = math.exp %206 : vector<8x128xf32>
    %cst_48 = arith.constant 1.000000e+00 : f32
    %208 = vector.broadcast %cst_48 : f32 to vector<8x128xf32>
    %209 = arith.addf %208, %207 : vector<8x128xf32>
    %210 = arith.divf %208, %209 : vector<8x128xf32>
    %211 = vector.extract_strided_slice %193 {offsets = [0, 256], sizes = [8, 128], strides = [1, 1]} : vector<8x384xf32> to vector<8x128xf32>
    %212 = vector.extract_strided_slice %194 {offsets = [0, 256], sizes = [8, 128], strides = [1, 1]} : vector<8x384xf32> to vector<8x128xf32>
    %213 = vector.broadcast %11 : vector<1x128xf32> to vector<8x128xf32>
    %214 = arith.addf %212, %213 : vector<8x128xf32>
    %215 = arith.mulf %202, %214 : vector<8x128xf32>
    %216 = arith.addf %211, %215 : vector<8x128xf32>
    %217 = math.tanh %216 : vector<8x128xf32>
    %cst_49 = arith.constant 1.000000e+00 : f32
    %218 = vector.broadcast %cst_49 : f32 to vector<8x128xf32>
    %219 = arith.subf %218, %210 : vector<8x128xf32>
    %220 = arith.mulf %219, %217 : vector<8x128xf32>
    %221 = arith.mulf %210, %192 : vector<8x128xf32>
    %222 = arith.addf %220, %221 : vector<8x128xf32>
    %c56 = arith.constant 56 : index
    %c0_50 = arith.constant 0 : index
    %223 = vector.load %arg7[%c56, %c0_50] : memref<64x384xf32, #tpu.memory_space<vmem>>, vector<8x384xf32>
    %cst_51 = arith.constant dense<0.000000e+00> : vector<8x384xf32>
    %224 = tpu.matmul %222, %10, %cst_51 {dimension_numbers = #tpu.dot_dimension_numbers<[1], [0], [0], [1], [0, 0, 1, 1], [], []>} : vector<8x128xf32>, vector<128x384xf32>, vector<8x384xf32> -> vector<8x384xf32>
    %225 = vector.extract_strided_slice %223 {offsets = [0, 0], sizes = [8, 128], strides = [1, 1]} : vector<8x384xf32> to vector<8x128xf32>
    %226 = vector.extract_strided_slice %224 {offsets = [0, 0], sizes = [8, 128], strides = [1, 1]} : vector<8x384xf32> to vector<8x128xf32>
    %227 = arith.addf %225, %226 : vector<8x128xf32>
    %228 = arith.negf %227 : vector<8x128xf32>
    %229 = math.exp %228 : vector<8x128xf32>
    %cst_52 = arith.constant 1.000000e+00 : f32
    %230 = vector.broadcast %cst_52 : f32 to vector<8x128xf32>
    %231 = arith.addf %230, %229 : vector<8x128xf32>
    %232 = arith.divf %230, %231 : vector<8x128xf32>
    %233 = vector.extract_strided_slice %223 {offsets = [0, 128], sizes = [8, 128], strides = [1, 1]} : vector<8x384xf32> to vector<8x128xf32>
    %234 = vector.extract_strided_slice %224 {offsets = [0, 128], sizes = [8, 128], strides = [1, 1]} : vector<8x384xf32> to vector<8x128xf32>
    %235 = arith.addf %233, %234 : vector<8x128xf32>
    %236 = arith.negf %235 : vector<8x128xf32>
    %237 = math.exp %236 : vector<8x128xf32>
    %cst_53 = arith.constant 1.000000e+00 : f32
    %238 = vector.broadcast %cst_53 : f32 to vector<8x128xf32>
    %239 = arith.addf %238, %237 : vector<8x128xf32>
    %240 = arith.divf %238, %239 : vector<8x128xf32>
    %241 = vector.extract_strided_slice %223 {offsets = [0, 256], sizes = [8, 128], strides = [1, 1]} : vector<8x384xf32> to vector<8x128xf32>
    %242 = vector.extract_strided_slice %224 {offsets = [0, 256], sizes = [8, 128], strides = [1, 1]} : vector<8x384xf32> to vector<8x128xf32>
    %243 = vector.broadcast %11 : vector<1x128xf32> to vector<8x128xf32>
    %244 = arith.addf %242, %243 : vector<8x128xf32>
    %245 = arith.mulf %232, %244 : vector<8x128xf32>
    %246 = arith.addf %241, %245 : vector<8x128xf32>
    %247 = math.tanh %246 : vector<8x128xf32>
    %cst_54 = arith.constant 1.000000e+00 : f32
    %248 = vector.broadcast %cst_54 : f32 to vector<8x128xf32>
    %249 = arith.subf %248, %240 : vector<8x128xf32>
    %250 = arith.mulf %249, %247 : vector<8x128xf32>
    %251 = arith.mulf %240, %222 : vector<8x128xf32>
    %252 = arith.addf %250, %251 : vector<8x128xf32>
    %c0_55 = arith.constant 0 : index
    %c0_56 = arith.constant 0 : index
    %253 = vector.load %arg8[%c0_55, %c0_56] : memref<8x128xf32, #tpu.memory_space<vmem>>, vector<8x128xf32>
    tpu.vector_store %arg8[%c0_55, %c0_56], %252 {strides = array<i32>} : memref<8x128xf32, #tpu.memory_space<vmem>>, vector<8x128xf32>,
    %c0_57 = arith.constant 0 : index
    %c0_58 = arith.constant 0 : index
    %254 = vector.load %arg6[%c0_57, %c0_58] : memref<8x128xf32, #tpu.memory_space<vmem>>, vector<8x128xf32>
    tpu.vector_store %arg6[%c0_57, %c0_58], %252 {strides = array<i32>} : memref<8x128xf32, #tpu.memory_space<vmem>>, vector<8x128xf32>,
    return
  }
  func.func @transform_0(%arg0: i32) -> (i32, i32) {
    %c0_i32 = arith.constant 0 : i32
    %c0_i32_0 = arith.constant 0 : i32
    return %arg0, %c0_i32 : i32, i32
  }
  func.func @transform_1(%arg0: i32) -> (i32, i32) {
    %c0_i32 = arith.constant 0 : i32
    %c0_i32_0 = arith.constant 0 : i32
    %c0_i32_1 = arith.constant 0 : i32
    return %c0_i32, %c0_i32_0 : i32, i32
  }
  func.func @transform_2(%arg0: i32) -> (i32, i32) {
    %c0_i32 = arith.constant 0 : i32
    %c0_i32_0 = arith.constant 0 : i32
    %c0_i32_1 = arith.constant 0 : i32
    return %c0_i32, %c0_i32_0 : i32, i32
  }
  func.func @transform_3(%arg0: i32) -> (i32, i32) {
    %c0_i32 = arith.constant 0 : i32
    %c0_i32_0 = arith.constant 0 : i32
    %c0_i32_1 = arith.constant 0 : i32
    return %c0_i32, %c0_i32_0 : i32, i32
  }
  func.func @transform_4(%arg0: i32) -> (i32, i32) {
    %c0_i32 = arith.constant 0 : i32
    %c0_i32_0 = arith.constant 0 : i32
    %c0_i32_1 = arith.constant 0 : i32
    return %c0_i32, %c0_i32_0 : i32, i32
  }
  func.func @transform_5(%arg0: i32) -> (i32, i32) {
    %c0_i32 = arith.constant 0 : i32
    %c0_i32_0 = arith.constant 0 : i32
    %c0_i32_1 = arith.constant 0 : i32
    return %c0_i32, %c0_i32_0 : i32, i32
  }
}

</mosaic_0001>

<bundles_post_ra>
// kernel: _lambda_.7
= control target key start
LH: loop header
LB: loop body
LE: loop exit
PB: predicated region body
PF: predicated region fallthrough
CT: control target
= control target key end

     0   :  { %vm482_vm0 = vcmask 293888   ;;  %vm675_vm1 = vcmask 1041408   ;;  %s2634_s1 = inlined_call_operand.vmem [shape: bf16[36,128], index: 1, kind: input, shape index: {}]   ;;  %s2635_s0 = inlined_call_operand.vmem [shape: bf16[1024,36], index: 0, kind: input, shape index: {}]   ;;  %s2636_s2 = inlined_call_operand.vmem [shape: f32[8,128], index: 2, kind: output, shape index: {0}]   ;;  %s2637_s3 = inlined_call_operand.vmem [shape: f32[8,128], index: 3, kind: output, shape index: {1}]  }
   0x1   :  { %v1956_v0 = vld [vmem:[%s2634_s1] sm:$0xff]   ;;  %v1957_v1 = vld [vmem:[%s2634_s1 + $0x8] sm:$0xff]   ;;  %v1958_v2 = vld [vmem:[%s2634_s1 + $0x10] ss:$0 sps:$4 sm:$0x33]  }
   0x2   :  { %1814 = vmatprep.subr.bf16.mxu0 %v1956_v0  ;;  %v1959_v3 = vld [vmem:[%s2635_s0] sm:$0xff]   ;;  %1948 = vmatprep.subr.bf16.mxu1 %v1956_v0  ;;  %v677_v4 = vsel %vm675_vm1, %v1958_v2, 0  ;;  %v1960_v5 = vld [vmem:[%s2635_s0 + $0x8] sm:$0xff]   ;;  %v1961_v6 = vld [vmem:[%s2635_s0 + $0x10] sm:$0xff]  }
   0x3   :  { %1815 = vmatpush3.bf16.msra.mxu0 %v1956_v0  ;;  %1951 = vmatpush3.bf16.msra.mxu1 %v1956_v0  ;;  %v1962_v7 = vld [vmem:[%s2635_s0 + $0x18] sm:$0xff]   ;;  %v1963_v8 = vld [vmem:[%s2635_s0 + $0x20] sm:$0xff]   ;;  %v1964_v9 = vld [vmem:[%s2635_s0 + $0x28] sm:$0xff]  }
   0x4   :  { %1816 = vmatprep.subr.bf16.mxu0 %v1957_v1  ;;  %1820 = vmatprep.mubr.msk.bf16.mxu0 %vm482_vm0, %v1959_v3  ;;  %v1965_v10 = vld [vmem:[%s2635_s0 + $0x30] sm:$0xff]   ;;  %v1966_v11 = vld [vmem:[%s2635_s0 + $0x38] sm:$0xff]   ;;  %v1967_v12 = vld [vmem:[%s2635_s0 + $0x40] sm:$0xff]  }
   0x5   :  { %1949 = vmatprep.subr.bf16.mxu1 %v1957_v1  ;;  %v1991_v13 = vld [vmem:[%s2635_s0 + $0x100] sm:$0xff]   ;;  %v1992_v14 = vld [vmem:[%s2635_s0 + $0x108] sm:$0xff]   ;;  %v1993_v15 = vld [vmem:[%s2635_s0 + $0x110] sm:$0xff]  }
   0x6   :  { %1884 = vmatprep.mubr.msk.bf16.mxu1 %vm482_vm0, %v1991_v13  ;;  %v1968_v16 = vld [vmem:[%s2635_s0 + $0x48] sm:$0xff]   ;;  %v1969_v17 = vld [vmem:[%s2635_s0 + $0x50] sm:$0xff]   ;;  %v1994_v18 = vld [vmem:[%s2635_s0 + $0x118] sm:$0xff]  }
   0x7   :  { %1817 = vmatpush3.bf16.msra.mxu0 %v1957_v1  ;;  %1952 = vmatpush3.bf16.msra.mxu1 %v1957_v1  ;;  %v1995_v19 = vld [vmem:[%s2635_s0 + $0x120] sm:$0xff]   ;;  %v1970_v20 = vld [vmem:[%s2635_s0 + $0x58] sm:$0xff]   ;;  %v1996_v22 = vld [vmem:[%s2635_s0 + $0x128] sm:$0xff]  }
   0x8   :  { %1954 = vmatprep.subr.msk.bf16.mxu0 %vm675_vm1, %v1958_v2  ;;  %1955 = vmatprep.subr.msk.bf16.mxu1 %vm675_vm1, %v1958_v2  ;;  %v1971_v21 = vld [vmem:[%s2635_s0 + $0x60] sm:$0xff]   ;;  %v1997_v23 = vld [vmem:[%s2635_s0 + $0x130] sm:$0xff]   ;;  %v1972_v24 = vld [vmem:[%s2635_s0 + $0x68] sm:$0xff]  }
   0x9   :  { %v1998_v25 = vld [vmem:[%s2635_s0 + $0x138] sm:$0xff]   ;;  %v1973_v26 = vld [vmem:[%s2635_s0 + $0x70] sm:$0xff]   ;;  %v1999_v27 = vld [vmem:[%s2635_s0 + $0x140] sm:$0xff]  }
   0xa   :  { %v1974_v28 = vld [vmem:[%s2635_s0 + $0x78] sm:$0xff]   ;;  %v2000_v29 = vld [vmem:[%s2635_s0 + $0x148] sm:$0xff]   ;;  %v1975_v30 = vld [vmem:[%s2635_s0 + $0x80] sm:$0xff]  }
   0xb   :  { %1819 = vmatpush3.bf16.msra.mxu0 %v677_v4  ;;  %1953 = vmatpush3.bf16.msra.mxu1 %v677_v4  ;;  %v2001_v31 = vld [vmem:[%s2635_s0 + $0x150] sm:$0xff]   ;;  %v1976_v32 = vld [vmem:[%s2635_s0 + $0x88] sm:$0xff]   ;;  %v2002_v33 = vld [vmem:[%s2635_s0 + $0x158] sm:$0xff]  }
   0xc   :  { %v1977_v34 = vld [vmem:[%s2635_s0 + $0x90] sm:$0xff]   ;;  %v2003_v35 = vld [vmem:[%s2635_s0 + $0x160] sm:$0xff]   ;;  %v1978_v36 = vld [vmem:[%s2635_s0 + $0x98] sm:$0xff]  }
   0xd   :  { %v2004_v37 = vld [vmem:[%s2635_s0 + $0x168] sm:$0xff]   ;;  %v1979_v38 = vld [vmem:[%s2635_s0 + $0xa0] sm:$0xff]   ;;  %v2005_v39 = vld [vmem:[%s2635_s0 + $0x170] sm:$0xff]  }
   0xe   :  { %1821 = vmatmul.mubr.msk.bf16.vlgmr.msra.gmra.mrb[0].mxu0 %vm482_vm0, %v1960_v5  ;;  %1885 = vmatmul.mubr.msk.bf16.vlgmr.msra.gmra.mrb[0].mxu1 %vm482_vm0, %v1992_v14  ;;  %v1980_v40 = vld [vmem:[%s2635_s0 + $0xa8] sm:$0xff]   ;;  %v2006_v41 = vld [vmem:[%s2635_s0 + $0x178] sm:$0xff]   ;;  %v1981_v42 = vld [vmem:[%s2635_s0 + $0xb0] sm:$0xff]  }
   0xf   :  { %1824 = vmatprep.mubr.msk.bf16.mxu0 %vm482_vm0, %v1961_v6  ;;  %1888 = vmatprep.mubr.msk.bf16.mxu1 %vm482_vm0, %v1993_v15  ;;  %v2007_v43 = vld [vmem:[%s2635_s0 + $0x180] sm:$0xff]   ;;  %v1982_v44 = vld [vmem:[%s2635_s0 + $0xb8] sm:$0xff]   ;;  %v2008_v45 = vld [vmem:[%s2635_s0 + $0x188] sm:$0xff]  }
  0x10   :  { %v1983_v46 = vld [vmem:[%s2635_s0 + $0xc0] sm:$0xff]   ;;  %v2009_v47 = vld [vmem:[%s2635_s0 + $0x190] sm:$0xff]   ;;  %v1984_v48 = vld [vmem:[%s2635_s0 + $0xc8] sm:$0xff]  }
  0x11   :  { %v2010_v49 = vld [vmem:[%s2635_s0 + $0x198] sm:$0xff]   ;;  %v1985_v50 = vld [vmem:[%s2635_s0 + $0xd0] sm:$0xff]   ;;  %v2011_v51 = vld [vmem:[%s2635_s0 + $0x1a0] sm:$0xff]  }
  0x12   :  { %v1986_v52 = vld [vmem:[%s2635_s0 + $0xd8] sm:$0xff]   ;;  %v2012_v53 = vld [vmem:[%s2635_s0 + $0x1a8] sm:$0xff]   ;;  %v1987_v54 = vld [vmem:[%s2635_s0 + $0xe0] sm:$0xff]  }
  0x13   :  { %v2013_v55 = vld [vmem:[%s2635_s0 + $0x1b0] sm:$0xff]   ;;  %v1988_v56 = vld [vmem:[%s2635_s0 + $0xe8] sm:$0xff]   ;;  %v2014_v57 = vld [vmem:[%s2635_s0 + $0x1b8] sm:$0xff]  }
  0x14   :  { %v1989_v58 = vld [vmem:[%s2635_s0 + $0xf0] sm:$0xff]   ;;  %v2015_v59 = vld [vmem:[%s2635_s0 + $0x1c0] sm:$0xff]   ;;  %v1990_v60 = vld [vmem:[%s2635_s0 + $0xf8] sm:$0xff]  }
  0x15   :  { %v2016_v61 = vld [vmem:[%s2635_s0 + $0x1c8] sm:$0xff]   ;;  %v2017_v62 = vld [vmem:[%s2635_s0 + $0x1d0] sm:$0xff]   ;;  %v2018_v63 = vld [vmem:[%s2635_s0 + $0x1d8] sm:$0xff]  }
  0x16   :  { %1825 = vmatmul.mubr.msk.bf16.gmra.mrb[4].mxu0 %vm482_vm0, %v1962_v7  ;;  %1889 = vmatmul.mubr.msk.bf16.gmra.mrb[4].mxu1 %vm482_vm0, %v1994_v18  ;;  %v2019_v0 = vld [vmem:[%s2635_s0 + $0x1e0] sm:$0xff]   ;;  %v2020_v1 = vld [vmem:[%s2635_s0 + $0x1e8] sm:$0xff]   ;;  %v2021_v2 = vld [vmem:[%s2635_s0 + $0x1f0] sm:$0xff]  }
  0x17   :  { %1828 = vmatprep.mubr.msk.bf16.mxu0 %vm482_vm0, %v1963_v8  ;;  %1892 = vmatprep.mubr.msk.bf16.mxu1 %vm482_vm0, %v1995_v19  ;;  %v2022_v3 = vld [vmem:[%s2635_s0 + $0x1f8] sm:$0xff]  }
  0x1e   :  { %1829 = vmatmul.mubr.msk.bf16.gmra.mrb[8].mxu0 %vm482_vm0, %v1964_v9  ;;  %1893 = vmatmul.mubr.msk.bf16.gmra.mrb[8].mxu1 %vm482_vm0, %v1996_v22 }
  0x1f   :  { %1832 = vmatprep.mubr.msk.bf16.mxu0 %vm482_vm0, %v1965_v10  ;;  %1896 = vmatprep.mubr.msk.bf16.mxu1 %vm482_vm0, %v1997_v23 }
  0x26   :  { %1833 = vmatmul.mubr.msk.bf16.gmra.mrb[12].mxu0 %vm482_vm0, %v1966_v11  ;;  %1897 = vmatmul.mubr.msk.bf16.gmra.mrb[12].mxu1 %vm482_vm0, %v1998_v25 }
  0x27   :  { %1836 = vmatprep.mubr.msk.bf16.mxu0 %vm482_vm0, %v1967_v12  ;;  %1900 = vmatprep.mubr.msk.bf16.mxu1 %vm482_vm0, %v1999_v27 }
  0x2e   :  { %1837 = vmatmul.mubr.msk.bf16.gmra.mrb[16].mxu0 %vm482_vm0, %v1968_v16  ;;  %1901 = vmatmul.mubr.msk.bf16.gmra.mrb[16].mxu1 %vm482_vm0, %v2000_v29 }
  0x2f   :  { %1840 = vmatprep.mubr.msk.bf16.mxu0 %vm482_vm0, %v1969_v17  ;;  %1904 = vmatprep.mubr.msk.bf16.mxu1 %vm482_vm0, %v2001_v31 }
  0x36   :  { %1841 = vmatmul.mubr.msk.bf16.gmra.mrb[20].mxu0 %vm482_vm0, %v1970_v20  ;;  %1905 = vmatmul.mubr.msk.bf16.gmra.mrb[20].mxu1 %vm482_vm0, %v2002_v33 }
  0x37   :  { %1844 = vmatprep.mubr.msk.bf16.mxu0 %vm482_vm0, %v1971_v21  ;;  %1908 = vmatprep.mubr.msk.bf16.mxu1 %vm482_vm0, %v2003_v35 }
  0x3e   :  { %1845 = vmatmul.mubr.msk.bf16.gmra.mrb[24].mxu0 %vm482_vm0, %v1972_v24  ;;  %1909 = vmatmul.mubr.msk.bf16.gmra.mrb[24].mxu1 %vm482_vm0, %v2004_v37 }
  0x3f   :  { %1848 = vmatprep.mubr.msk.bf16.mxu0 %vm482_vm0, %v1973_v26  ;;  %1912 = vmatprep.mubr.msk.bf16.mxu1 %vm482_vm0, %v2005_v39 }
  0x46   :  { %1849 = vmatmul.mubr.msk.bf16.gmra.mrb[28].mxu0 %vm482_vm0, %v1974_v28  ;;  %1913 = vmatmul.mubr.msk.bf16.gmra.mrb[28].mxu1 %vm482_vm0, %v2006_v41 }
  0x47   :  { %1852 = vmatprep.mubr.msk.bf16.mxu0 %vm482_vm0, %v1975_v30  ;;  %1916 = vmatprep.mubr.msk.bf16.mxu1 %vm482_vm0, %v2007_v43 }
  0x4e   :  { %1853 = vmatmul.mubr.msk.bf16.gmra.mrb[32].mxu0 %vm482_vm0, %v1976_v32  ;;  %1917 = vmatmul.mubr.msk.bf16.gmra.mrb[32].mxu1 %vm482_vm0, %v2008_v45 }
  0x4f   :  { %1856 = vmatprep.mubr.msk.bf16.mxu0 %vm482_vm0, %v1977_v34  ;;  %1920 = vmatprep.mubr.msk.bf16.mxu1 %vm482_vm0, %v2009_v47 }
  0x56   :  { %1857 = vmatmul.mubr.msk.bf16.gmra.mrb[36].mxu0 %vm482_vm0, %v1978_v36  ;;  %1921 = vmatmul.mubr.msk.bf16.gmra.mrb[36].mxu1 %vm482_vm0, %v2010_v49 }
  0x57   :  { %1860 = vmatprep.mubr.msk.bf16.mxu0 %vm482_vm0, %v1979_v38  ;;  %1924 = vmatprep.mubr.msk.bf16.mxu1 %vm482_vm0, %v2011_v51 }
  0x5e   :  { %1861 = vmatmul.mubr.msk.bf16.gmra.mrb[40].mxu0 %vm482_vm0, %v1980_v40  ;;  %1925 = vmatmul.mubr.msk.bf16.gmra.mrb[40].mxu1 %vm482_vm0, %v2012_v53 }
  0x5f   :  { %1864 = vmatprep.mubr.msk.bf16.mxu0 %vm482_vm0, %v1981_v42  ;;  %1928 = vmatprep.mubr.msk.bf16.mxu1 %vm482_vm0, %v2013_v55 }
  0x66   :  { %1865 = vmatmul.mubr.msk.bf16.gmra.mrb[44].mxu0 %vm482_vm0, %v1982_v44  ;;  %1929 = vmatmul.mubr.msk.bf16.gmra.mrb[44].mxu1 %vm482_vm0, %v2014_v57 }
  0x67   :  { %1868 = vmatprep.mubr.msk.bf16.mxu0 %vm482_vm0, %v1983_v46  ;;  %1932 = vmatprep.mubr.msk.bf16.mxu1 %vm482_vm0, %v2015_v59 }
  0x6e   :  { %1869 = vmatmul.mubr.msk.bf16.gmra.mrb[48].mxu0 %vm482_vm0, %v1984_v48  ;;  %1933 = vmatmul.mubr.msk.bf16.gmra.mrb[48].mxu1 %vm482_vm0, %v2016_v61 }
  0x6f   :  { %1872 = vmatprep.mubr.msk.bf16.mxu0 %vm482_vm0, %v1985_v50  ;;  %1936 = vmatprep.mubr.msk.bf16.mxu1 %vm482_vm0, %v2017_v62 }
  0x76   :  { %1873 = vmatmul.mubr.msk.bf16.gmra.mrb[52].mxu0 %vm482_vm0, %v1986_v52  ;;  %1937 = vmatmul.mubr.msk.bf16.gmra.mrb[52].mxu1 %vm482_vm0, %v2018_v63 }
  0x77   :  { %1876 = vmatprep.mubr.msk.bf16.mxu0 %vm482_vm0, %v1987_v54  ;;  %1940 = vmatprep.mubr.msk.bf16.mxu1 %vm482_vm0, %v2019_v0 }
  0x7e   :  { %1877 = vmatmul.mubr.msk.bf16.gmra.mrb[56].mxu0 %vm482_vm0, %v1988_v56  ;;  %1941 = vmatmul.mubr.msk.bf16.gmra.mrb[56].mxu1 %vm482_vm0, %v2020_v1 }
  0x7f   :  { %1880 = vmatprep.mubr.msk.bf16.mxu0 %vm482_vm0, %v1989_v58  ;;  %1944 = vmatprep.mubr.msk.bf16.mxu1 %vm482_vm0, %v2021_v2 }
  0x86   :  { %1881 = vmatmul.mubr.msk.bf16.gmra.mrb[60].mxu0 %vm482_vm0, %v1990_v60  ;;  %1945 = vmatmul.mubr.msk.bf16.gmra.mrb[60].mxu1 %vm482_vm0, %v2022_v3 }
  0xe1   :  { %v1822_v4 = vpop.f32.mrb[0].mxu0  ;;  %v2308_v50 = vpop.f32.mrb[0].mxu1 }
  0xe2   :  { %v713_v5 = vpop.f32.mrb[1].mxu0  ;;  %v1354_v11 = vmul.f32 %v1822_v4, %v1822_v4  ;;  %v2310_v52 = vpop.f32.mrb[1].mxu1 }
  0xe3   :  { %v1823_v6 = vpop.f32.mrb[2].mxu0  ;;  %v1352_v8 = vmul.f32 %v713_v5, %v713_v5  ;;  %v2312_v57 = vpop.f32.mrb[2].mxu1 }
  0xe4   :  { %v716_v7 = vpop.f32.mrb[3].mxu0  ;;  %v1355_v14 = vmul.f32 %v1823_v6, %v1823_v6  ;;  %v2314_v59 = vpop.f32.mrb[3].mxu1 }
  0xe5   :  { %v1224_v9 = vadd.f32 %v716_v7, %v713_v5  ;;  %v1353_v10 = vmul.f32 %v716_v7, %v716_v7 }
  0xe7   :  { %v1225_v12 = vadd.f32 %v1822_v4, %v1224_v9  ;;  %v1480_v13 = vadd.f32 %v1353_v10, %v1352_v8 }
  0xe9   :  { %v1481_v15 = vadd.f32 %v1480_v13, %v1354_v11  ;;  %v1826_v16 = vpop.f32.mrb[4].mxu0  ;;  %v1226_v17 = vadd.f32 %v1823_v6, %v1225_v12  ;;  %v2316_v6 = vpop.f32.mrb[4].mxu1 }
  0xea   :  { %v729_v18 = vpop.f32.mrb[5].mxu0  ;;  %v1358_v27 = vmul.f32 %v1826_v16, %v1826_v16  ;;  %v2318_v8 = vpop.f32.mrb[5].mxu1 }
  0xeb   :  { %v1227_v19 = vadd.f32 %v1226_v17, %v729_v18  ;;  %v1356_v20 = vmul.f32 %v729_v18, %v729_v18  ;;  %v1482_v21 = vadd.f32 %v1481_v15, %v1355_v14  ;;  %v1827_v22 = vpop.f32.mrb[6].mxu0  ;;  %v2320_v13 = vpop.f32.mrb[6].mxu1 }
  0xec   :  { %v732_v23 = vpop.f32.mrb[7].mxu0  ;;  %v1359_v30 = vmul.f32 %v1827_v22, %v1827_v22  ;;  %v2322_v15 = vpop.f32.mrb[7].mxu1 }
  0xed   :  { %v1483_v24 = vadd.f32 %v1482_v21, %v1356_v20  ;;  %v1228_v25 = vadd.f32 %v1227_v19, %v732_v23  ;;  %v1357_v26 = vmul.f32 %v732_v23, %v732_v23 }
  0xef   :  { %v1229_v28 = vadd.f32 %v1826_v16, %v1228_v25  ;;  %v1484_v29 = vadd.f32 %v1483_v24, %v1357_v26 }
  0xf1   :  { %v1485_v31 = vadd.f32 %v1484_v29, %v1358_v27  ;;  %v1830_v32 = vpop.f32.mrb[8].mxu0  ;;  %v1230_v33 = vadd.f32 %v1827_v22, %v1229_v28  ;;  %v2324_v26 = vpop.f32.mrb[8].mxu1 }
  0xf2   :  { %v745_v34 = vpop.f32.mrb[9].mxu0  ;;  %v1362_v43 = vmul.f32 %v1830_v32, %v1830_v32  ;;  %v2326_v28 = vpop.f32.mrb[9].mxu1 }
  0xf3   :  { %v1231_v35 = vadd.f32 %v1230_v33, %v745_v34  ;;  %v1360_v36 = vmul.f32 %v745_v34, %v745_v34  ;;  %v1486_v37 = vadd.f32 %v1485_v31, %v1359_v30  ;;  %v1831_v38 = vpop.f32.mrb[10].mxu0  ;;  %v2328_v33 = vpop.f32.mrb[10].mxu1 }
  0xf4   :  { %v748_v39 = vpop.f32.mrb[11].mxu0  ;;  %v1363_v46 = vmul.f32 %v1831_v38, %v1831_v38 }
  0xf5   :  { %v1487_v40 = vadd.f32 %v1486_v37, %v1360_v36  ;;  %v1232_v41 = vadd.f32 %v1231_v35, %v748_v39  ;;  %v1361_v42 = vmul.f32 %v748_v39, %v748_v39  ;;  %v2330_v35 = vpop.f32.mrb[11].mxu1 }
  0xf7   :  { %v1233_v44 = vadd.f32 %v1830_v32, %v1232_v41  ;;  %v1488_v45 = vadd.f32 %v1487_v40, %v1361_v42 }
  0xf9   :  { %v1489_v47 = vadd.f32 %v1488_v45, %v1362_v43  ;;  %v1834_v48 = vpop.f32.mrb[12].mxu0  ;;  %v1234_v49 = vadd.f32 %v1831_v38, %v1233_v44 }
  0xfa   :  { %v761_v51 = vpop.f32.mrb[13].mxu0  ;;  %v1366_v63 = vmul.f32 %v1834_v48, %v1834_v48 }
  0xfb   :  { %v1235_v53 = vadd.f32 %v1234_v49, %v761_v51  ;;  %v1364_v54 = vmul.f32 %v761_v51, %v761_v51  ;;  %v1490_v55 = vadd.f32 %v1489_v47, %v1363_v46  ;;  %v1835_v56 = vpop.f32.mrb[14].mxu0  ;;  %v2332_v46 = vpop.f32.mrb[12].mxu1 }
  0xfc   :  { %v764_v58 = vpop.f32.mrb[15].mxu0  ;;  %v1367_v2 = vmul.f32 %v1835_v56, %v1835_v56 }
  0xfd   :  { %v1491_v60 = vadd.f32 %v1490_v55, %v1364_v54  ;;  %v1236_v61 = vadd.f32 %v1235_v53, %v764_v58  ;;  %v1365_v62 = vmul.f32 %v764_v58, %v764_v58 }
  0xff   :  { %v1237_v0 = vadd.f32 %v1834_v48, %v1236_v61  ;;  %v1492_v1 = vadd.f32 %v1491_v60, %v1365_v62  ;;  %v2334_v48 = vpop.f32.mrb[13].mxu1 }
 0x100   :  { %v2336_v55 = vpop.f32.mrb[14].mxu1 }
 0x101   :  { %v1493_v3 = vadd.f32 %v1492_v1, %v1366_v63  ;;  %v1838_v4 = vpop.f32.mrb[16].mxu0  ;;  %v1238_v5 = vadd.f32 %v1835_v56, %v1237_v0  ;;  %v2338_v58 = vpop.f32.mrb[15].mxu1 }
 0x102   :  { %v777_v7 = vpop.f32.mrb[17].mxu0  ;;  %v1370_v19 = vmul.f32 %v1838_v4, %v1838_v4 }
 0x103   :  { %v1239_v9 = vadd.f32 %v1238_v5, %v777_v7  ;;  %v1368_v10 = vmul.f32 %v777_v7, %v777_v7  ;;  %v1494_v11 = vadd.f32 %v1493_v3, %v1367_v2  ;;  %v1839_v12 = vpop.f32.mrb[18].mxu0  ;;  %v2340_v7 = vpop.f32.mrb[16].mxu1 }
 0x104   :  { %v780_v14 = vpop.f32.mrb[19].mxu0  ;;  %v1371_v22 = vmul.f32 %v1839_v12, %v1839_v12 }
 0x105   :  { %v1495_v16 = vadd.f32 %v1494_v11, %v1368_v10  ;;  %v1240_v17 = vadd.f32 %v1239_v9, %v780_v14  ;;  %v1369_v18 = vmul.f32 %v780_v14, %v780_v14  ;;  %v2342_v10 = vpop.f32.mrb[17].mxu1 }
 0x107   :  { %v1241_v20 = vadd.f32 %v1838_v4, %v1240_v17  ;;  %v1496_v21 = vadd.f32 %v1495_v16, %v1369_v18  ;;  %v2344_v17 = vpop.f32.mrb[18].mxu1 }
 0x109   :  { %v1497_v23 = vadd.f32 %v1496_v21, %v1370_v19  ;;  %v1842_v24 = vpop.f32.mrb[20].mxu0  ;;  %v1242_v25 = vadd.f32 %v1839_v12, %v1241_v20  ;;  %v2346_v19 = vpop.f32.mrb[19].mxu1 }
 0x10a   :  { %v793_v27 = vpop.f32.mrb[21].mxu0  ;;  %v1374_v39 = vmul.f32 %v1842_v24, %v1842_v24 }
 0x10b   :  { %v1243_v29 = vadd.f32 %v1242_v25, %v793_v27  ;;  %v1372_v30 = vmul.f32 %v793_v27, %v793_v27  ;;  %v1498_v31 = vadd.f32 %v1497_v23, %v1371_v22  ;;  %v1843_v32 = vpop.f32.mrb[22].mxu0 }
 0x10c   :  { %v796_v34 = vpop.f32.mrb[23].mxu0  ;;  %v1375_v42 = vmul.f32 %v1843_v32, %v1843_v32 }
 0x10d   :  { %v1499_v36 = vadd.f32 %v1498_v31, %v1372_v30  ;;  %v1244_v37 = vadd.f32 %v1243_v29, %v796_v34  ;;  %v1373_v38 = vmul.f32 %v796_v34, %v796_v34 }
 0x10f   :  { %v1245_v40 = vadd.f32 %v1842_v24, %v1244_v37  ;;  %v1500_v41 = vadd.f32 %v1499_v36, %v1373_v38 }
 0x111   :  { %v1501_v43 = vadd.f32 %v1500_v41, %v1374_v39  ;;  %v1846_v44 = vpop.f32.mrb[24].mxu0  ;;  %v1246_v45 = vadd.f32 %v1843_v32, %v1245_v40  ;;  %v2348_v32 = vpop.f32.mrb[20].mxu1 }
 0x112   :  { %v809_v47 = vpop.f32.mrb[25].mxu0  ;;  %v1378_v63 = vmul.f32 %v1846_v44, %v1846_v44  ;;  %v2350_v36 = vpop.f32.mrb[21].mxu1 }
 0x113   :  { %v1247_v49 = vadd.f32 %v1246_v45, %v809_v47  ;;  %v1376_v51 = vmul.f32 %v809_v47, %v809_v47  ;;  %v1502_v53 = vadd.f32 %v1501_v43, %v1375_v42  ;;  %v1847_v54 = vpop.f32.mrb[26].mxu0  ;;  %v2352_v41 = vpop.f32.mrb[22].mxu1 }
 0x114   :  { %v812_v56 = vpop.f32.mrb[27].mxu0  ;;  %v1379_v2 = vmul.f32 %v1847_v54, %v1847_v54  ;;  %v2354_v43 = vpop.f32.mrb[23].mxu1 }
 0x115   :  { %v1503_v60 = vadd.f32 %v1502_v53, %v1376_v51  ;;  %v1248_v61 = vadd.f32 %v1247_v49, %v812_v56  ;;  %v1377_v62 = vmul.f32 %v812_v56, %v812_v56 }
 0x117   :  { %v1249_v0 = vadd.f32 %v1846_v44, %v1248_v61  ;;  %v1504_v1 = vadd.f32 %v1503_v60, %v1377_v62  ;;  %v2356_v62 = vpop.f32.mrb[24].mxu1 }
 0x119   :  { %v1505_v3 = vadd.f32 %v1504_v1, %v1378_v63  ;;  %v1850_v4 = vpop.f32.mrb[28].mxu0  ;;  %v1250_v5 = vadd.f32 %v1847_v54, %v1249_v0  ;;  %v2358_v0 = vpop.f32.mrb[25].mxu1 }
 0x11a   :  { %v825_v9 = vpop.f32.mrb[29].mxu0  ;;  %v1382_v23 = vmul.f32 %v1850_v4, %v1850_v4 }
 0x11b   :  { %v1251_v11 = vadd.f32 %v1250_v5, %v825_v9  ;;  %v1380_v12 = vmul.f32 %v825_v9, %v825_v9  ;;  %v1506_v14 = vadd.f32 %v1505_v3, %v1379_v2  ;;  %v1851_v16 = vpop.f32.mrb[30].mxu0  ;;  %v2360_v5 = vpop.f32.mrb[26].mxu1 }
 0x11c   :  { %v828_v18 = vpop.f32.mrb[31].mxu0  ;;  %v1383_v27 = vmul.f32 %v1851_v16, %v1851_v16 }
 0x11d   :  { %v1507_v20 = vadd.f32 %v1506_v14, %v1380_v12  ;;  %v1252_v21 = vadd.f32 %v1251_v11, %v828_v18  ;;  %v1381_v22 = vmul.f32 %v828_v18, %v828_v18  ;;  %v2362_v11 = vpop.f32.mrb[27].mxu1 }
 0x11f   :  { %v1253_v24 = vadd.f32 %v1850_v4, %v1252_v21  ;;  %v1508_v25 = vadd.f32 %v1507_v20, %v1381_v22 }
 0x121   :  { %v1509_v29 = vadd.f32 %v1508_v25, %v1382_v23  ;;  %v1854_v30 = vpop.f32.mrb[32].mxu0  ;;  %v1254_v31 = vadd.f32 %v1851_v16, %v1253_v24 }
 0x122   :  { %v841_v34 = vpop.f32.mrb[33].mxu0  ;;  %v1386_v49 = vmul.f32 %v1854_v30, %v1854_v30 }
 0x123   :  { %v1255_v37 = vadd.f32 %v1254_v31, %v841_v34  ;;  %v1384_v38 = vmul.f32 %v841_v34, %v841_v34  ;;  %v1510_v39 = vadd.f32 %v1509_v29, %v1383_v27  ;;  %v1855_v40 = vpop.f32.mrb[34].mxu0  ;;  %v2364_v27 = vpop.f32.mrb[28].mxu1 }
 0x124   :  { %v844_v42 = vpop.f32.mrb[35].mxu0  ;;  %v1387_v54 = vmul.f32 %v1855_v40, %v1855_v40 }
 0x125   :  { %v1511_v44 = vadd.f32 %v1510_v39, %v1384_v38  ;;  %v1256_v45 = vadd.f32 %v1255_v37, %v844_v42  ;;  %v1385_v47 = vmul.f32 %v844_v42, %v844_v42 }
 0x127   :  { %v1257_v51 = vadd.f32 %v1854_v30, %v1256_v45  ;;  %v1512_v53 = vadd.f32 %v1511_v44, %v1385_v47  ;;  %v2366_v30 = vpop.f32.mrb[29].mxu1 }
 0x128   :  { %v2368_v39 = vpop.f32.mrb[30].mxu1 }
 0x129   :  { %v1513_v56 = vadd.f32 %v1512_v53, %v1386_v49  ;;  %v1858_v60 = vpop.f32.mrb[36].mxu0  ;;  %v1258_v61 = vadd.f32 %v1855_v40, %v1257_v51  ;;  %v2370_v42 = vpop.f32.mrb[31].mxu1 }
 0x12a   :  { %v857_v63 = vpop.f32.mrb[37].mxu0  ;;  %v1390_v18 = vmul.f32 %v1858_v60, %v1858_v60 }
 0x12b   :  { %v1259_v1 = vadd.f32 %v1258_v61, %v857_v63  ;;  %v1388_v2 = vmul.f32 %v857_v63, %v857_v63  ;;  %v1514_v3 = vadd.f32 %v1513_v56, %v1387_v54  ;;  %v1859_v4 = vpop.f32.mrb[38].mxu0  ;;  %v2372_v63 = vpop.f32.mrb[32].mxu1 }
 0x12c   :  { %v860_v9 = vpop.f32.mrb[39].mxu0  ;;  %v1391_v22 = vmul.f32 %v1859_v4, %v1859_v4 }
 0x12d   :  { %v1515_v12 = vadd.f32 %v1514_v3, %v1388_v2  ;;  %v1260_v14 = vadd.f32 %v1259_v1, %v860_v9  ;;  %v1389_v16 = vmul.f32 %v860_v9, %v860_v9  ;;  %v2374_v2 = vpop.f32.mrb[33].mxu1 }
 0x12f   :  { %v1261_v20 = vadd.f32 %v1858_v60, %v1260_v14  ;;  %v1516_v21 = vadd.f32 %v1515_v12, %v1389_v16  ;;  %v2376_v14 = vpop.f32.mrb[34].mxu1 }
 0x131   :  { %v1517_v23 = vadd.f32 %v1516_v21, %v1390_v18  ;;  %v1862_v24 = vpop.f32.mrb[40].mxu0  ;;  %v1262_v25 = vadd.f32 %v1859_v4, %v1261_v20  ;;  %v2378_v18 = vpop.f32.mrb[35].mxu1 }
 0x132   :  { %v873_v29 = vpop.f32.mrb[41].mxu0  ;;  %v1394_v49 = vmul.f32 %v1862_v24, %v1862_v24 }
 0x133   :  { %v1263_v31 = vadd.f32 %v1262_v25, %v873_v29  ;;  %v1392_v34 = vmul.f32 %v873_v29, %v873_v29  ;;  %v1518_v37 = vadd.f32 %v1517_v23, %v1391_v22  ;;  %v1863_v38 = vpop.f32.mrb[42].mxu0 }
 0x134   :  { %v876_v40 = vpop.f32.mrb[43].mxu0  ;;  %v1395_v54 = vmul.f32 %v1863_v38, %v1863_v38 }
 0x135   :  { %v1519_v44 = vadd.f32 %v1518_v37, %v1392_v34  ;;  %v1264_v45 = vadd.f32 %v1263_v31, %v876_v40  ;;  %v1393_v47 = vmul.f32 %v876_v40, %v876_v40 }
 0x137   :  { %v1265_v51 = vadd.f32 %v1862_v24, %v1264_v45  ;;  %v1520_v53 = vadd.f32 %v1519_v44, %v1393_v47 }
 0x139   :  { %v1521_v56 = vadd.f32 %v1520_v53, %v1394_v49  ;;  %v1866_v60 = vpop.f32.mrb[44].mxu0  ;;  %v1266_v61 = vadd.f32 %v1863_v38, %v1265_v51  ;;  %v2380_v38 = vpop.f32.mrb[36].mxu1 }
 0x13a   :  { %v889_v1 = vpop.f32.mrb[45].mxu0  ;;  %v1398_v23 = vmul.f32 %v1866_v60, %v1866_v60  ;;  %v2382_v44 = vpop.f32.mrb[37].mxu1 }
 0x13b   :  { %v1267_v3 = vadd.f32 %v1266_v61, %v889_v1  ;;  %v1396_v4 = vmul.f32 %v889_v1, %v889_v1  ;;  %v1522_v9 = vadd.f32 %v1521_v56, %v1395_v54  ;;  %v1867_v12 = vpop.f32.mrb[46].mxu0  ;;  %v2384_v53 = vpop.f32.mrb[38].mxu1 }
 0x13c   :  { %v892_v16 = vpop.f32.mrb[47].mxu0  ;;  %v1399_v29 = vmul.f32 %v1867_v12, %v1867_v12  ;;  %v2386_v56 = vpop.f32.mrb[39].mxu1 }
 0x13d   :  { %v1523_v20 = vadd.f32 %v1522_v9, %v1396_v4  ;;  %v1268_v21 = vadd.f32 %v1267_v3, %v892_v16  ;;  %v1397_v22 = vmul.f32 %v892_v16, %v892_v16 }
 0x13f   :  { %v1269_v24 = vadd.f32 %v1866_v60, %v1268_v21  ;;  %v1524_v25 = vadd.f32 %v1523_v20, %v1397_v22  ;;  %v2388_v22 = vpop.f32.mrb[40].mxu1 }
 0x140   :  { %2647 = vst [vmem:[#allocation2_spill] sm:$0xff] %v2388_v22 }
 0x141   :  { %v1525_v31 = vadd.f32 %v1524_v25, %v1398_v23  ;;  %v1870_v34 = vpop.f32.mrb[48].mxu0  ;;  %v1270_v37 = vadd.f32 %v1867_v12, %v1269_v24  ;;  %v2390_v24 = vpop.f32.mrb[41].mxu1 }
 0x142   :  { %v905_v40 = vpop.f32.mrb[49].mxu0  ;;  %v1402_v3 = vmul.f32 %v1870_v34, %v1870_v34  ;;  %2648 = vst [vmem:[#allocation3_spill] sm:$0xff] %v2390_v24 }
 0x143   :  { %v1271_v45 = vadd.f32 %v1270_v37, %v905_v40  ;;  %v1400_v47 = vmul.f32 %v905_v40, %v905_v40  ;;  %v1526_v49 = vadd.f32 %v1525_v31, %v1399_v29  ;;  %v1871_v51 = vpop.f32.mrb[50].mxu0  ;;  %v2392_v40 = vpop.f32.mrb[42].mxu1 }
 0x144   :  { %v908_v54 = vpop.f32.mrb[51].mxu0  ;;  %v1403_v12 = vmul.f32 %v1871_v51, %v1871_v51  ;;  %2649 = vst [vmem:[#allocation4_spill] sm:$0xff] %v2392_v40 }
 0x145   :  { %v1527_v60 = vadd.f32 %v1526_v49, %v1400_v47  ;;  %v1272_v61 = vadd.f32 %v1271_v45, %v908_v54  ;;  %v1401_v1 = vmul.f32 %v908_v54, %v908_v54  ;;  %v2394_v47 = vpop.f32.mrb[43].mxu1 }
 0x146   :  { %2650 = vst [vmem:[#allocation5_spill] sm:$0xff] %v2394_v47  ;;  %v2396_v22 = vpop.f32.mrb[44].mxu1 }
 0x147   :  { %v1273_v4 = vadd.f32 %v1870_v34, %v1272_v61  ;;  %v1528_v9 = vadd.f32 %v1527_v60, %v1401_v1  ;;  %2651 = vst [vmem:[#allocation6_spill] sm:$0xff] %v2396_v22 }
 0x149   :  { %v1529_v16 = vadd.f32 %v1528_v9, %v1402_v3  ;;  %v1874_v20 = vpop.f32.mrb[52].mxu0  ;;  %v1274_v21 = vadd.f32 %v1871_v51, %v1273_v4 }
 0x14a   :  { %v921_v23 = vpop.f32.mrb[53].mxu0  ;;  %v1406_v60 = vmul.f32 %v1874_v20, %v1874_v20 }
 0x14b   :  { %v1275_v25 = vadd.f32 %v1274_v21, %v921_v23  ;;  %v1404_v29 = vmul.f32 %v921_v23, %v921_v23  ;;  %v1530_v31 = vadd.f32 %v1529_v16, %v1403_v12  ;;  %v1875_v37 = vpop.f32.mrb[54].mxu0  ;;  %v2398_v12 = vpop.f32.mrb[45].mxu1 }
 0x14c   :  { %v924_v45 = vpop.f32.mrb[55].mxu0  ;;  %v1407_v1 = vmul.f32 %v1875_v37, %v1875_v37  ;;  %2652 = vst [vmem:[#allocation7_spill] sm:$0xff] %v2398_v12  ;;  %v2400_v47 = vpop.f32.mrb[46].mxu1 }
 0x14d   :  { %v1531_v34 = vadd.f32 %v1530_v31, %v1404_v29  ;;  %v1276_v49 = vadd.f32 %v1275_v25, %v924_v45  ;;  %v1405_v54 = vmul.f32 %v924_v45, %v924_v45  ;;  %2653 = vst [vmem:[#allocation8_spill] sm:$0xff] %v2400_v47  ;;  %v2402_v29 = vpop.f32.mrb[47].mxu1 }
 0x14e   :  { %2654 = vst [vmem:[#allocation9_spill] sm:$0xff] %v2402_v29  ;;  %v2404_v22 = vpop.f32.mrb[48].mxu1 }
 0x14f   :  { %v1277_v61 = vadd.f32 %v1874_v20, %v1276_v49  ;;  %v1532_v51 = vadd.f32 %v1531_v34, %v1405_v54 }
 0x151   :  { %v1533_v3 = vadd.f32 %v1532_v51, %v1406_v60  ;;  %v1878_v4 = vpop.f32.mrb[56].mxu0  ;;  %v1278_v9 = vadd.f32 %v1875_v37, %v1277_v61 }
 0x152   :  { %v937_v21 = vpop.f32.mrb[57].mxu0  ;;  %v1410_v34 = vmul.f32 %v1878_v4, %v1878_v4 }
 0x153   :  { %v1279_v16 = vadd.f32 %v1278_v9, %v937_v21  ;;  %v1408_v23 = vmul.f32 %v937_v21, %v937_v21  ;;  %v1534_v40 = vadd.f32 %v1533_v3, %v1407_v1  ;;  %v1879_v24 = vpop.f32.mrb[58].mxu0  ;;  %v2406_v1 = vpop.f32.mrb[49].mxu1 }
 0x154   :  { %v940_v25 = vpop.f32.mrb[59].mxu0  ;;  %v1411_v54 = vmul.f32 %v1879_v24, %v1879_v24  ;;  %v2408_v29 = vpop.f32.mrb[50].mxu1 }
 0x155   :  { %v1535_v20 = vadd.f32 %v1534_v40, %v1408_v23  ;;  %v1280_v31 = vadd.f32 %v1279_v16, %v940_v25  ;;  %v1409_v45 = vmul.f32 %v940_v25, %v940_v25  ;;  %2655 = vst [vmem:[#allocation10_spill] sm:$0xff] %v2408_v29  ;;  %v2410_v16 = vpop.f32.mrb[51].mxu1 }
 0x157   :  { %v1281_v49 = vadd.f32 %v1878_v4, %v1280_v31  ;;  %v1536_v37 = vadd.f32 %v1535_v20, %v1409_v45 }
 0x159   :  { %v1537_v60 = vadd.f32 %v1536_v37, %v1410_v34  ;;  %v1882_v61 = vpop.f32.mrb[60].mxu0  ;;  %v1282_v51 = vadd.f32 %v1879_v24, %v1281_v49  ;;  %v1416_v37 = vmul.f32 %v2310_v52, %v2310_v52 }
 0x15a   :  { %v953_v9 = vpop.f32.mrb[61].mxu0  ;;  %v1414_v20 = vmul.f32 %v1882_v61, %v1882_v61 }
 0x15b   :  { %v1283_v3 = vadd.f32 %v1282_v51, %v953_v9  ;;  %v1412_v21 = vmul.f32 %v953_v9, %v953_v9  ;;  %v1538_v47 = vadd.f32 %v1537_v60, %v1411_v54  ;;  %v1883_v12 = vpop.f32.mrb[62].mxu0  ;;  %v2414_v51 = vpop.f32.mrb[52].mxu1 }
 0x15c   :  { %v956_v40 = vpop.f32.mrb[63].mxu0  ;;  %v1415_v45 = vmul.f32 %v1883_v12, %v1883_v12  ;;  %v2416_v54 = vpop.f32.mrb[53].mxu1 }
 0x15d   :  { %v1539_v4 = vadd.f32 %v1538_v47, %v1412_v21  ;;  %v1284_v23 = vadd.f32 %v1283_v3, %v956_v40  ;;  %v1413_v25 = vmul.f32 %v956_v40, %v956_v40  ;;  %v2419_v29 = vpop.f32.mrb[54].mxu1  ;;  %v1418_v21 = vmul.f32 %v2308_v50, %v2308_v50 }
 0x15e   :  { %v2421_v47 = vpop.f32.mrb[55].mxu1 }
 0x15f   :  { %v1285_v31 = vadd.f32 %v1882_v61, %v1284_v23  ;;  %v1540_v24 = vadd.f32 %v1539_v4, %v1413_v25  ;;  %v1419_v23 = vmul.f32 %v2312_v57, %v2312_v57 }
 0x161   :  { %v1286_v34 = vadd.f32 %v1883_v12, %v1285_v31  ;;  %v1541_v49 = vadd.f32 %v1540_v24, %v1414_v20  ;;  %v1417_v12 = vmul.f32 %v2314_v59, %v2314_v59  ;;  %v1420_v20 = vmul.f32 %v2318_v8, %v2318_v8  ;;  %v2434_v31 = vpop.f32.mrb[56].mxu1 }
 0x162   :  { %v2436_v24 = vpop.f32.mrb[57].mxu1 }
 0x163   :  { %v1542_v60 = vadd.f32 %v1541_v49, %v1415_v45  ;;  %v1287_v9 = vadd.f32 %v1286_v34, %v2310_v52  ;;  %v2439_v34 = vpop.f32.mrb[58].mxu1 }
 0x165   :  { %v1543_v3 = vadd.f32 %v1542_v60, %v1416_v37  ;;  %v1288_v61 = vadd.f32 %v1287_v9, %v2314_v59  ;;  %v1422_v60 = vmul.f32 %v2316_v6, %v2316_v6 }
 0x167   :  { %v1289_v40 = vadd.f32 %v2308_v50, %v1288_v61  ;;  %v1544_v4 = vadd.f32 %v1543_v3, %v1417_v12  ;;  %v2441_v50 = vpop.f32.mrb[59].mxu1 }
 0x169   :  { %v1545_v52 = vadd.f32 %v1544_v4, %v1418_v21  ;;  %v1290_v25 = vadd.f32 %v2312_v57, %v1289_v40  ;;  %v1421_v57 = vmul.f32 %v2322_v15, %v2322_v15  ;;  %v1424_v21 = vmul.f32 %v2326_v28, %v2326_v28  ;;  %v2454_v40 = vpop.f32.mrb[60].mxu1 }
 0x16a   :  { %v2456_v4 = vpop.f32.mrb[61].mxu1 }
 0x16b   :  { %v1291_v59 = vadd.f32 %v1290_v25, %v2318_v8  ;;  %v1546_v45 = vadd.f32 %v1545_v52, %v1419_v23  ;;  %v1423_v8 = vmul.f32 %v2320_v13, %v2320_v13  ;;  %v2459_v52 = vpop.f32.mrb[62].mxu1 }
 0x16d   :  { %v1547_v49 = vadd.f32 %v1546_v45, %v1420_v20  ;;  %v1292_v37 = vadd.f32 %v1291_v59, %v2322_v15  ;;  %v1426_v59 = vmul.f32 %v2324_v26, %v2324_v26 }
 0x16f   :  { %v1293_v9 = vadd.f32 %v2316_v6, %v1292_v37  ;;  %v1548_v3 = vadd.f32 %v1547_v49, %v1421_v57  ;;  %v2461_v6 = vpop.f32.mrb[63].mxu1 }
 0x171   :  { %v1549_v61 = vadd.f32 %v1548_v3, %v1422_v60  ;;  %v1294_v12 = vadd.f32 %v2320_v13, %v1293_v9  ;;  %v1425_v13 = vmul.f32 %v2330_v35, %v2330_v35  ;;  %v1428_v60 = vmul.f32 %v2334_v48, %v2334_v48 }
 0x173   :  { %v1295_v15 = vadd.f32 %v1294_v12, %v2326_v28  ;;  %v1550_v23 = vadd.f32 %v1549_v61, %v1423_v8  ;;  %v1427_v28 = vmul.f32 %v2328_v33, %v2328_v33  ;;  %v1429_v61 = vmul.f32 %v2338_v58, %v2338_v58 }
 0x175   :  { %v1551_v25 = vadd.f32 %v1550_v23, %v1424_v21  ;;  %v1296_v20 = vadd.f32 %v1295_v15, %v2330_v35 }
 0x177   :  { %v1297_v45 = vadd.f32 %v2324_v26, %v1296_v20  ;;  %v1552_v49 = vadd.f32 %v1551_v25, %v1425_v13  ;;  %v1430_v26 = vmul.f32 %v2332_v46, %v2332_v46 }
 0x179   :  { %v1553_v37 = vadd.f32 %v1552_v49, %v1426_v59  ;;  %v1298_v57 = vadd.f32 %v2328_v33, %v1297_v45  ;;  %v1431_v33 = vmul.f32 %v2336_v55, %v2336_v55  ;;  %v1433_v59 = vmul.f32 %v2346_v19, %v2346_v19 }
 0x17b   :  { %v1299_v9 = vadd.f32 %v1298_v57, %v2334_v48  ;;  %v1554_v3 = vadd.f32 %v1553_v37, %v1427_v28  ;;  %v1432_v48 = vmul.f32 %v2342_v10, %v2342_v10 }
 0x17d   :  { %v1555_v8 = vadd.f32 %v1554_v3, %v1428_v60  ;;  %v1300_v35 = vadd.f32 %v1299_v9, %v2338_v58  ;;  %v1437_v3 = vmul.f32 %v2354_v43, %v2354_v43 }
 0x17f   :  { %v1301_v12 = vadd.f32 %v2332_v46, %v1300_v35  ;;  %v1556_v21 = vadd.f32 %v1555_v8, %v1429_v61  ;;  %v1434_v46 = vmul.f32 %v2340_v7, %v2340_v7 }
 0x181   :  { %v1557_v15 = vadd.f32 %v1556_v21, %v1430_v26  ;;  %v1302_v23 = vadd.f32 %v2336_v55, %v1301_v12  ;;  %v1435_v55 = vmul.f32 %v2344_v17, %v2344_v17 }
 0x183   :  { %v1303_v25 = vadd.f32 %v1302_v23, %v2342_v10  ;;  %v1558_v20 = vadd.f32 %v1557_v15, %v1431_v33  ;;  %v1436_v10 = vmul.f32 %v2350_v36, %v2350_v36  ;;  %v1441_v15 = vmul.f32 %v2362_v11, %v2362_v11 }
 0x185   :  { %v1559_v13 = vadd.f32 %v1558_v20, %v1432_v48  ;;  %v1304_v58 = vadd.f32 %v1303_v25, %v2346_v19 }
 0x187   :  { %v1305_v45 = vadd.f32 %v2340_v7, %v1304_v58  ;;  %v1560_v49 = vadd.f32 %v1559_v13, %v1433_v59  ;;  %v1438_v7 = vmul.f32 %v2348_v32, %v2348_v32 }
 0x189   :  { %v1561_v28 = vadd.f32 %v1560_v49, %v1434_v46  ;;  %v1306_v37 = vadd.f32 %v2344_v17, %v1305_v45  ;;  %v1439_v17 = vmul.f32 %v2352_v41, %v2352_v41  ;;  %v1445_v46 = vmul.f32 %v2370_v42, %v2370_v42 }
 0x18b   :  { %v1307_v57 = vadd.f32 %v1306_v37, %v2350_v36  ;;  %v1562_v60 = vadd.f32 %v1561_v28, %v1435_v55  ;;  %v1440_v36 = vmul.f32 %v2358_v0, %v2358_v0 }
 0x18d   :  { %v1563_v9 = vadd.f32 %v1562_v60, %v1436_v10  ;;  %v1308_v19 = vadd.f32 %v1307_v57, %v2354_v43  ;;  %v1449_v60 = vmul.f32 %v2378_v18, %v2378_v18 }
 0x18f   :  { %v1309_v8 = vadd.f32 %v2348_v32, %v1308_v19  ;;  %v1564_v35 = vadd.f32 %v1563_v9, %v1437_v3  ;;  %v1442_v32 = vmul.f32 %v2356_v62, %v2356_v62 }
 0x191   :  { %v1565_v61 = vadd.f32 %v1564_v35, %v1438_v7  ;;  %v1310_v26 = vadd.f32 %v2352_v41, %v1309_v8  ;;  %v1443_v41 = vmul.f32 %v2360_v5, %v2360_v5 }
 0x193   :  { %v1311_v12 = vadd.f32 %v1310_v26, %v2358_v0  ;;  %v1566_v21 = vadd.f32 %v1565_v61, %v1439_v17  ;;  %v1444_v0 = vmul.f32 %v2366_v30, %v2366_v30  ;;  %v1453_v61 = vmul.f32 %v2386_v56, %v2386_v56 }
 0x195   :  { %v1567_v33 = vadd.f32 %v1566_v21, %v1440_v36  ;;  %v1312_v43 = vadd.f32 %v1311_v12, %v2362_v11 }
 0x197   :  { %v1313_v23 = vadd.f32 %v2356_v62, %v1312_v43  ;;  %v1568_v48 = vadd.f32 %v1567_v33, %v1441_v15  ;;  %v1446_v62 = vmul.f32 %v2364_v27, %v2364_v27 }
 0x199   :  { %v1569_v25 = vadd.f32 %v1568_v48, %v1442_v32  ;;  %v1314_v20 = vadd.f32 %v2360_v5, %v1313_v23  ;;  %v1447_v5 = vmul.f32 %v2368_v39, %v2368_v39 }
 0x19b   :  { %v1315_v13 = vadd.f32 %v1314_v20, %v2366_v30  ;;  %v1570_v58 = vadd.f32 %v1569_v25, %v1443_v41  ;;  %v1448_v30 = vmul.f32 %v2374_v2, %v2374_v2 }
 0x19d   :  { %v1571_v59 = vadd.f32 %v1570_v58, %v1444_v0  ;;  %v1316_v11 = vadd.f32 %v1315_v13, %v2370_v42  ;;  %v2659_v0 = vld [vmem:[#allocation4_spill] sm:$0xff] }
 0x19f   :  { %v1317_v45 = vadd.f32 %v2364_v27, %v1316_v11  ;;  %v1572_v49 = vadd.f32 %v1571_v59, %v1445_v46  ;;  %v1450_v27 = vmul.f32 %v2372_v63, %v2372_v63  ;;  %v2660_v59 = vld [vmem:[#allocation7_spill] sm:$0xff] }
 0x1a0   :  { %v1460_v11 = vmul.f32 %v2660_v59, %v2660_v59 }
 0x1a1   :  { %v1573_v55 = vadd.f32 %v1572_v49, %v1446_v62  ;;  %v1318_v28 = vadd.f32 %v2368_v39, %v1317_v45  ;;  %v1451_v39 = vmul.f32 %v2376_v14, %v2376_v14  ;;  %v2661_v49 = vld [vmem:[#allocation9_spill] sm:$0xff] }
 0x1a3   :  { %v1319_v37 = vadd.f32 %v1318_v28, %v2374_v2  ;;  %v1574_v10 = vadd.f32 %v1573_v55, %v1447_v5  ;;  %v1452_v2 = vmul.f32 %v2382_v44, %v2382_v44  ;;  %v1461_v55 = vmul.f32 %v2661_v49, %v2661_v49  ;;  %v2662_v28 = vld [vmem:[#allocation6_spill] sm:$0xff] }
 0x1a5   :  { %v1575_v57 = vadd.f32 %v1574_v10, %v1448_v30  ;;  %v1320_v42 = vadd.f32 %v1319_v37, %v2378_v18  ;;  %v1462_v30 = vmul.f32 %v2662_v28, %v2662_v28 }
 0x1a7   :  { %v1321_v9 = vadd.f32 %v2372_v63, %v1320_v42  ;;  %v1576_v19 = vadd.f32 %v1575_v57, %v1449_v60  ;;  %v1454_v63 = vmul.f32 %v2380_v38, %v2380_v38  ;;  %v2663_v57 = vld [vmem:[#allocation8_spill] sm:$0xff] }
 0x1a8   :  { %v1463_v42 = vmul.f32 %v2663_v57, %v2663_v57 }
 0x1a9   :  { %v1577_v3 = vadd.f32 %v1576_v19, %v1450_v27  ;;  %v1322_v7 = vadd.f32 %v2376_v14, %v1321_v9  ;;  %v1455_v14 = vmul.f32 %v2384_v53, %v2384_v53  ;;  %v1464_v9 = vmul.f32 %v2406_v1, %v2406_v1 }
 0x1ab   :  { %v1323_v8 = vadd.f32 %v1322_v7, %v2382_v44  ;;  %v1578_v35 = vadd.f32 %v1577_v3, %v1451_v39  ;;  %v2656_v44 = vld [vmem:[#allocation3_spill] sm:$0xff] }
 0x1ac   :  { %v1456_v33 = vmul.f32 %v2656_v44, %v2656_v44 }
 0x1ad   :  { %v1579_v17 = vadd.f32 %v1578_v35, %v1452_v2  ;;  %v1324_v18 = vadd.f32 %v1323_v8, %v2386_v56  ;;  %v2657_v56 = vld [vmem:[#allocation5_spill] sm:$0xff]  ;;  %v1465_v2 = vmul.f32 %v2410_v16, %v2410_v16  ;;  %v1466_v8 = vmul.f32 %v2404_v22, %v2404_v22 }
 0x1ae   :  { %v1457_v48 = vmul.f32 %v2657_v56, %v2657_v56 }
 0x1af   :  { %v1325_v26 = vadd.f32 %v2380_v38, %v1324_v18  ;;  %v1580_v36 = vadd.f32 %v1579_v17, %v1453_v61  ;;  %v2658_v38 = vld [vmem:[#allocation2_spill] sm:$0xff] }
 0x1b0   :  { %v1458_v41 = vmul.f32 %v2658_v38, %v2658_v38  ;;  %v2664_v18 = vld [vmem:[#allocation10_spill] sm:$0xff] }
 0x1b1   :  { %v1581_v12 = vadd.f32 %v1580_v36, %v1454_v63  ;;  %v1326_v21 = vadd.f32 %v2384_v53, %v1325_v26  ;;  %v1459_v53 = vmul.f32 %v2659_v0, %v2659_v0  ;;  %v1467_v61 = vmul.f32 %v2664_v18, %v2664_v18 }
 0x1b3   :  { %v1327_v43 = vadd.f32 %v1326_v21, %v2656_v44  ;;  %v1582_v15 = vadd.f32 %v1581_v12, %v1455_v14  ;;  %v1469_v21 = vmul.f32 %v2421_v47, %v2421_v47 }
 0x1b5   :  { %v1583_v32 = vadd.f32 %v1582_v15, %v1456_v33  ;;  %v1328_v23 = vadd.f32 %v1327_v43, %v2657_v56  ;;  %v1471_v43 = vmul.f32 %v2419_v29, %v2419_v29 }
 0x1b7   :  { %v1329_v25 = vadd.f32 %v2658_v38, %v1328_v23  ;;  %v1584_v20 = vadd.f32 %v1583_v32, %v1457_v48  ;;  %v1473_v38 = vmul.f32 %v2441_v50, %v2441_v50 }
 0x1b9   :  { %v1585_v13 = vadd.f32 %v1584_v20, %v1458_v41  ;;  %v1330_v58 = vadd.f32 %v2659_v0, %v1329_v25 }
 0x1bb   :  { %v1331_v46 = vadd.f32 %v1330_v58, %v2660_v59  ;;  %v1586_v62 = vadd.f32 %v1585_v13, %v1459_v53  ;;  %v1477_v59 = vmul.f32 %v2461_v6, %v2461_v6 }
 0x1bd   :  { %v1587_v45 = vadd.f32 %v1586_v62, %v1460_v11  ;;  %v1332_v5 = vadd.f32 %v1331_v46, %v2661_v49 }
 0x1bf   :  { %v1333_v37 = vadd.f32 %v2662_v28, %v1332_v5  ;;  %v1588_v10 = vadd.f32 %v1587_v45, %v1461_v55 }
 0x1c1   :  { %v1589_v60 = vadd.f32 %v1588_v10, %v1462_v30  ;;  %v1334_v27 = vadd.f32 %v2663_v57, %v1333_v37 }
 0x1c3   :  { %v1335_v19 = vadd.f32 %v1334_v27, %v2406_v1  ;;  %v1590_v39 = vadd.f32 %v1589_v60, %v1463_v42  ;;  %v1468_v1 = vmul.f32 %v2416_v54, %v2416_v54 }
 0x1c5   :  { %v1591_v3 = vadd.f32 %v1590_v39, %v1464_v9  ;;  %v1336_v7 = vadd.f32 %v1335_v19, %v2410_v16 }
 0x1c7   :  { %v1337_v35 = vadd.f32 %v2404_v22, %v1336_v7  ;;  %v1592_v17 = vadd.f32 %v1591_v3, %v1465_v2  ;;  %v1470_v22 = vmul.f32 %v2414_v51, %v2414_v51 }
 0x1c9   :  { %v1593_v63 = vadd.f32 %v1592_v17, %v1466_v8  ;;  %v1338_v26 = vadd.f32 %v2664_v18, %v1337_v35 }
 0x1cb   :  { %v1339_v36 = vadd.f32 %v1338_v26, %v2416_v54  ;;  %v1594_v14 = vadd.f32 %v1593_v63, %v1467_v61  ;;  %v1472_v54 = vmul.f32 %v2436_v24, %v2436_v24 }
 0x1cd   :  { %v1595_v12 = vadd.f32 %v1594_v14, %v1468_v1  ;;  %v1340_v16 = vadd.f32 %v1339_v36, %v2421_v47 }
 0x1cf   :  { %v1341_v44 = vadd.f32 %v2414_v51, %v1340_v16  ;;  %v1596_v33 = vadd.f32 %v1595_v12, %v1469_v21  ;;  %v1474_v51 = vmul.f32 %v2434_v31, %v2434_v31 }
 0x1d1   :  { %v1597_v15 = vadd.f32 %v1596_v33, %v1470_v22  ;;  %v1342_v32 = vadd.f32 %v2419_v29, %v1341_v44  ;;  %v1475_v29 = vmul.f32 %v2439_v34, %v2439_v34 }
 0x1d3   :  { %v1343_v56 = vadd.f32 %v1342_v32, %v2436_v24  ;;  %v1598_v23 = vadd.f32 %v1597_v15, %v1471_v43  ;;  %v1476_v24 = vmul.f32 %v2456_v4, %v2456_v4 }
 0x1d5   :  { %v1599_v48 = vadd.f32 %v1598_v23, %v1472_v54  ;;  %v1344_v47 = vadd.f32 %v1343_v56, %v2441_v50 }
 0x1d7   :  { %v1345_v41 = vadd.f32 %v2434_v31, %v1344_v47  ;;  %v1600_v25 = vadd.f32 %v1599_v48, %v1473_v38  ;;  %v1478_v31 = vmul.f32 %v2454_v40, %v2454_v40 }
 0x1d9   :  { %v1601_v20 = vadd.f32 %v1600_v25, %v1474_v51  ;;  %v1346_v0 = vadd.f32 %v2439_v34, %v1345_v41  ;;  %v1479_v34 = vmul.f32 %v2459_v52, %v2459_v52 }
 0x1db   :  { %v1347_v53 = vadd.f32 %v1346_v0, %v2456_v4  ;;  %v1602_v13 = vadd.f32 %v1601_v20, %v1475_v29 }
 0x1dd   :  { %v1603_v58 = vadd.f32 %v1602_v13, %v1476_v24  ;;  %v1348_v50 = vadd.f32 %v1347_v53, %v2461_v6 }
 0x1df   :  { %v1349_v11 = vadd.f32 %v2454_v40, %v1348_v50  ;;  %v1604_v46 = vadd.f32 %v1603_v58, %v1477_v59 }
 0x1e1   :  { %v1350_v62 = vadd.f32 %v2459_v52, %v1349_v11  ;;  %v1605_v45 = vadd.f32 %v1604_v46, %v1478_v31 }
 0x1e3   :  { %1351 = vst [vmem:[%s2636_s2] sm:$0xff] %v1350_v62  ;;  %v1606_v4 = vadd.f32 %v1605_v45, %v1479_v34 }
 0x1e5   :  { %1607 = vst [vmem:[%s2637_s3] sm:$0xff] %v1606_v4 }

// kernel: _lambda_.8
= control target key start
LH: loop header
LB: loop body
LE: loop exit
PB: predicated region body
PF: predicated region fallthrough
CT: control target
= control target key end

     0   :  { %vm486_vm0 = vcmask 293888   ;;  %vm679_vm1 = vcmask 1041408   ;;  %s3119_s1 = inlined_call_operand.vmem [shape: bf16[36,128], index: 1, kind: input, shape index: {}]   ;;  %s3120_s0 = inlined_call_operand.vmem [shape: bf16[1024,36], index: 0, kind: input, shape index: {}]   ;;  %s3121_s2 = inlined_call_operand.vmem [shape: f32[1,128], index: 2, kind: input, shape index: {}]   ;;  %s3122_s3 = inlined_call_operand.vmem [shape: f32[1,128], index: 3, kind: input, shape index: {}]   ;;  %s3123_s4 = inlined_call_operand.vmem [shape: f32[1024,128], index: 4, kind: output, shape index: {}]  }
   0x1   :  { %v2100_v0 = vld [vmem:[%s3119_s1] sm:$0xff]   ;;  %v2101_v1 = vld [vmem:[%s3119_s1 + $0x8] sm:$0xff]   ;;  %v2102_v2 = vld [vmem:[%s3119_s1 + $0x10] ss:$0 sps:$4 sm:$0x33]  }
   0x2   :  { %1958 = vmatprep.subr.bf16.mxu0 %v2100_v0  ;;  %2092 = vmatprep.subr.bf16.mxu1 %v2100_v0  ;;  %v2103_v3 = vld [vmem:[%s3120_s0] sm:$0xff]   ;;  %v681_v5 = vsel %vm679_vm1, %v2102_v2, 0  ;;  %v2105_v6 = vld [vmem:[%s3120_s0 + $0x8] sm:$0xff]   ;;  %v2107_v8 = vld [vmem:[%s3120_s0 + $0x10] sm:$0xff]  }
   0x3   :  { %1959 = vmatpush3.bf16.msra.mxu0 %v2100_v0  ;;  %2095 = vmatpush3.bf16.msra.mxu1 %v2100_v0  ;;  %v2104_v4 = vld [vmem:[%s3120_s0 + $0x100] sm:$0xff]   ;;  %v2106_v7 = vld [vmem:[%s3120_s0 + $0x108] sm:$0xff]   ;;  %v2108_v9 = vld [vmem:[%s3120_s0 + $0x110] sm:$0xff]  }
   0x4   :  { %1960 = vmatprep.subr.bf16.mxu0 %v2101_v1  ;;  %2093 = vmatprep.subr.bf16.mxu1 %v2101_v1  ;;  %v2109_v10 = vld [vmem:[%s3120_s0 + $0x18] sm:$0xff]   ;;  %v2111_v12 = vld [vmem:[%s3120_s0 + $0x20] sm:$0xff]   ;;  %v2113_v14 = vld [vmem:[%s3120_s0 + $0x28] sm:$0xff]  }
   0x5   :  { %1964 = vmatprep.mubr.msk.bf16.mxu0 %vm486_vm0, %v2103_v3  ;;  %2028 = vmatprep.mubr.msk.bf16.mxu1 %vm486_vm0, %v2104_v4  ;;  %v2110_v11 = vld [vmem:[%s3120_s0 + $0x118] sm:$0xff]   ;;  %v2112_v13 = vld [vmem:[%s3120_s0 + $0x120] sm:$0xff]   ;;  %v2114_v15 = vld [vmem:[%s3120_s0 + $0x128] sm:$0xff]  }
   0x6   :  { %v2115_v16 = vld [vmem:[%s3120_s0 + $0x30] sm:$0xff]   ;;  %v2117_v18 = vld [vmem:[%s3120_s0 + $0x38] sm:$0xff]   ;;  %v2119_v20 = vld [vmem:[%s3120_s0 + $0x40] sm:$0xff]  }
   0x7   :  { %1961 = vmatpush3.bf16.msra.mxu0 %v2101_v1  ;;  %2096 = vmatpush3.bf16.msra.mxu1 %v2101_v1  ;;  %v2116_v17 = vld [vmem:[%s3120_s0 + $0x130] sm:$0xff]   ;;  %v2118_v19 = vld [vmem:[%s3120_s0 + $0x138] sm:$0xff]   ;;  %v2120_v21 = vld [vmem:[%s3120_s0 + $0x140] sm:$0xff]  }
   0x8   :  { %2098 = vmatprep.subr.msk.bf16.mxu0 %vm679_vm1, %v2102_v2  ;;  %2099 = vmatprep.subr.msk.bf16.mxu1 %vm679_vm1, %v2102_v2  ;;  %v2121_v22 = vld [vmem:[%s3120_s0 + $0x48] sm:$0xff]   ;;  %v2123_v24 = vld [vmem:[%s3120_s0 + $0x50] sm:$0xff]   ;;  %v2125_v26 = vld [vmem:[%s3120_s0 + $0x58] sm:$0xff]  }
   0x9   :  { %v2122_v23 = vld [vmem:[%s3120_s0 + $0x148] sm:$0xff]   ;;  %v2124_v25 = vld [vmem:[%s3120_s0 + $0x150] sm:$0xff]   ;;  %v2126_v27 = vld [vmem:[%s3120_s0 + $0x158] sm:$0xff]  }
   0xa   :  { %v2127_v28 = vld [vmem:[%s3120_s0 + $0x60] sm:$0xff]   ;;  %v2129_v30 = vld [vmem:[%s3120_s0 + $0x68] sm:$0xff]   ;;  %v2131_v32 = vld [vmem:[%s3120_s0 + $0x70] sm:$0xff]  }
   0xb   :  { %1963 = vmatpush3.bf16.msra.mxu0 %v681_v5  ;;  %2097 = vmatpush3.bf16.msra.mxu1 %v681_v5  ;;  %v2128_v29 = vld [vmem:[%s3120_s0 + $0x160] sm:$0xff]   ;;  %v2130_v31 = vld [vmem:[%s3120_s0 + $0x168] sm:$0xff]   ;;  %v2132_v33 = vld [vmem:[%s3120_s0 + $0x170] sm:$0xff]  }
   0xc   :  { %v2133_v34 = vld [vmem:[%s3120_s0 + $0x78] sm:$0xff]   ;;  %v2135_v36 = vld [vmem:[%s3120_s0 + $0x80] sm:$0xff]   ;;  %v2137_v38 = vld [vmem:[%s3120_s0 + $0x88] sm:$0xff]  }
   0xd   :  { %v2134_v35 = vld [vmem:[%s3120_s0 + $0x178] sm:$0xff]   ;;  %v2136_v37 = vld [vmem:[%s3120_s0 + $0x180] sm:$0xff]   ;;  %v2138_v39 = vld [vmem:[%s3120_s0 + $0x188] sm:$0xff]  }
   0xe   :  { %1965 = vmatmul.mubr.msk.bf16.vlgmr.msra.gmra.mrb[0].mxu0 %vm486_vm0, %v2105_v6  ;;  %2029 = vmatmul.mubr.msk.bf16.vlgmr.msra.gmra.mrb[0].mxu1 %vm486_vm0, %v2106_v7  ;;  %v2139_v40 = vld [vmem:[%s3120_s0 + $0x90] sm:$0xff]   ;;  %v2141_v42 = vld [vmem:[%s3120_s0 + $0x98] sm:$0xff]   ;;  %v2143_v44 = vld [vmem:[%s3120_s0 + $0xa0] sm:$0xff]  }
   0xf   :  { %1968 = vmatprep.mubr.msk.bf16.mxu0 %vm486_vm0, %v2107_v8  ;;  %2032 = vmatprep.mubr.msk.bf16.mxu1 %vm486_vm0, %v2108_v9  ;;  %v2140_v41 = vld [vmem:[%s3120_s0 + $0x190] sm:$0xff]   ;;  %v2142_v43 = vld [vmem:[%s3120_s0 + $0x198] sm:$0xff]   ;;  %v2144_v45 = vld [vmem:[%s3120_s0 + $0x1a0] sm:$0xff]  }
  0x10   :  { %v2145_v46 = vld [vmem:[%s3120_s0 + $0xa8] sm:$0xff]   ;;  %v2147_v48 = vld [vmem:[%s3120_s0 + $0xb0] sm:$0xff]   ;;  %v2149_v50 = vld [vmem:[%s3120_s0 + $0xb8] sm:$0xff]  }
  0x11   :  { %v2146_v47 = vld [vmem:[%s3120_s0 + $0x1a8] sm:$0xff]   ;;  %v2148_v49 = vld [vmem:[%s3120_s0 + $0x1b0] sm:$0xff]   ;;  %v2150_v51 = vld [vmem:[%s3120_s0 + $0x1b8] sm:$0xff]  }
  0x12   :  { %v2151_v52 = vld [vmem:[%s3120_s0 + $0xc0] sm:$0xff]   ;;  %v2153_v54 = vld [vmem:[%s3120_s0 + $0xc8] sm:$0xff]   ;;  %v2155_v56 = vld [vmem:[%s3120_s0 + $0xd0] sm:$0xff]  }
  0x13   :  { %v2152_v53 = vld [vmem:[%s3120_s0 + $0x1c0] sm:$0xff]   ;;  %v2154_v55 = vld [vmem:[%s3120_s0 + $0x1c8] sm:$0xff]   ;;  %v2156_v57 = vld [vmem:[%s3120_s0 + $0x1d0] sm:$0xff]  }
  0x14   :  { %v2157_v58 = vld [vmem:[%s3120_s0 + $0xd8] sm:$0xff]   ;;  %v2159_v60 = vld [vmem:[%s3120_s0 + $0xe0] sm:$0xff]   ;;  %v2161_v62 = vld [vmem:[%s3120_s0 + $0xe8] sm:$0xff]  }
  0x15   :  { %v2158_v59 = vld [vmem:[%s3120_s0 + $0x1d8] sm:$0xff]   ;;  %v2160_v61 = vld [vmem:[%s3120_s0 + $0x1e0] sm:$0xff]   ;;  %v2162_v63 = vld [vmem:[%s3120_s0 + $0x1e8] sm:$0xff]  }
  0x16   :  { %1969 = vmatmul.mubr.msk.bf16.gmra.mrb[4].mxu0 %vm486_vm0, %v2109_v10  ;;  %2033 = vmatmul.mubr.msk.bf16.gmra.mrb[4].mxu1 %vm486_vm0, %v2110_v11  ;;  %v2163_v0 = vld [vmem:[%s3120_s0 + $0xf0] sm:$0xff]   ;;  %v2165_v2 = vld [vmem:[%s3120_s0 + $0xf8] sm:$0xff]   ;;  %v2462_v4 = vld [vmem:[%s3121_s2] ss:$0 sm:$0xff] }
  0x17   :  { %1972 = vmatprep.mubr.msk.bf16.mxu0 %vm486_vm0, %v2111_v12  ;;  %2036 = vmatprep.mubr.msk.bf16.mxu1 %vm486_vm0, %v2112_v13  ;;  %v2164_v1 = vld [vmem:[%s3120_s0 + $0x1f0] sm:$0xff]   ;;  %v2166_v3 = vld [vmem:[%s3120_s0 + $0x1f8] sm:$0xff]   ;;  %v2467_v6 = vld [vmem:[%s3122_s3] ss:$0 sm:$0xff] }
  0x1e   :  { %1973 = vmatmul.mubr.msk.bf16.gmra.mrb[8].mxu0 %vm486_vm0, %v2113_v14  ;;  %2037 = vmatmul.mubr.msk.bf16.gmra.mrb[8].mxu1 %vm486_vm0, %v2114_v15 }
  0x1f   :  { %1976 = vmatprep.mubr.msk.bf16.mxu0 %vm486_vm0, %v2115_v16  ;;  %2040 = vmatprep.mubr.msk.bf16.mxu1 %vm486_vm0, %v2116_v17 }
  0x26   :  { %1977 = vmatmul.mubr.msk.bf16.gmra.mrb[12].mxu0 %vm486_vm0, %v2117_v18  ;;  %2041 = vmatmul.mubr.msk.bf16.gmra.mrb[12].mxu1 %vm486_vm0, %v2118_v19 }
  0x27   :  { %1980 = vmatprep.mubr.msk.bf16.mxu0 %vm486_vm0, %v2119_v20  ;;  %2044 = vmatprep.mubr.msk.bf16.mxu1 %vm486_vm0, %v2120_v21 }
  0x2e   :  { %1981 = vmatmul.mubr.msk.bf16.gmra.mrb[16].mxu0 %vm486_vm0, %v2121_v22  ;;  %2045 = vmatmul.mubr.msk.bf16.gmra.mrb[16].mxu1 %vm486_vm0, %v2122_v23 }
  0x2f   :  { %1984 = vmatprep.mubr.msk.bf16.mxu0 %vm486_vm0, %v2123_v24  ;;  %2048 = vmatprep.mubr.msk.bf16.mxu1 %vm486_vm0, %v2124_v25 }
  0x36   :  { %1985 = vmatmul.mubr.msk.bf16.gmra.mrb[20].mxu0 %vm486_vm0, %v2125_v26  ;;  %2049 = vmatmul.mubr.msk.bf16.gmra.mrb[20].mxu1 %vm486_vm0, %v2126_v27 }
  0x37   :  { %1988 = vmatprep.mubr.msk.bf16.mxu0 %vm486_vm0, %v2127_v28  ;;  %2052 = vmatprep.mubr.msk.bf16.mxu1 %vm486_vm0, %v2128_v29 }
  0x3e   :  { %1989 = vmatmul.mubr.msk.bf16.gmra.mrb[24].mxu0 %vm486_vm0, %v2129_v30  ;;  %2053 = vmatmul.mubr.msk.bf16.gmra.mrb[24].mxu1 %vm486_vm0, %v2130_v31 }
  0x3f   :  { %1992 = vmatprep.mubr.msk.bf16.mxu0 %vm486_vm0, %v2131_v32  ;;  %2056 = vmatprep.mubr.msk.bf16.mxu1 %vm486_vm0, %v2132_v33 }
  0x46   :  { %1993 = vmatmul.mubr.msk.bf16.gmra.mrb[28].mxu0 %vm486_vm0, %v2133_v34  ;;  %2057 = vmatmul.mubr.msk.bf16.gmra.mrb[28].mxu1 %vm486_vm0, %v2134_v35 }
  0x47   :  { %1996 = vmatprep.mubr.msk.bf16.mxu0 %vm486_vm0, %v2135_v36  ;;  %2060 = vmatprep.mubr.msk.bf16.mxu1 %vm486_vm0, %v2136_v37 }
  0x4e   :  { %1997 = vmatmul.mubr.msk.bf16.gmra.mrb[32].mxu0 %vm486_vm0, %v2137_v38  ;;  %2061 = vmatmul.mubr.msk.bf16.gmra.mrb[32].mxu1 %vm486_vm0, %v2138_v39 }
  0x4f   :  { %2000 = vmatprep.mubr.msk.bf16.mxu0 %vm486_vm0, %v2139_v40  ;;  %2064 = vmatprep.mubr.msk.bf16.mxu1 %vm486_vm0, %v2140_v41 }
  0x56   :  { %2001 = vmatmul.mubr.msk.bf16.gmra.mrb[36].mxu0 %vm486_vm0, %v2141_v42  ;;  %2065 = vmatmul.mubr.msk.bf16.gmra.mrb[36].mxu1 %vm486_vm0, %v2142_v43 }
  0x57   :  { %2004 = vmatprep.mubr.msk.bf16.mxu0 %vm486_vm0, %v2143_v44  ;;  %2068 = vmatprep.mubr.msk.bf16.mxu1 %vm486_vm0, %v2144_v45 }
  0x5e   :  { %2005 = vmatmul.mubr.msk.bf16.gmra.mrb[40].mxu0 %vm486_vm0, %v2145_v46  ;;  %2069 = vmatmul.mubr.msk.bf16.gmra.mrb[40].mxu1 %vm486_vm0, %v2146_v47 }
  0x5f   :  { %2008 = vmatprep.mubr.msk.bf16.mxu0 %vm486_vm0, %v2147_v48  ;;  %2072 = vmatprep.mubr.msk.bf16.mxu1 %vm486_vm0, %v2148_v49 }
  0x66   :  { %2009 = vmatmul.mubr.msk.bf16.gmra.mrb[44].mxu0 %vm486_vm0, %v2149_v50  ;;  %2073 = vmatmul.mubr.msk.bf16.gmra.mrb[44].mxu1 %vm486_vm0, %v2150_v51 }
  0x67   :  { %2012 = vmatprep.mubr.msk.bf16.mxu0 %vm486_vm0, %v2151_v52  ;;  %2076 = vmatprep.mubr.msk.bf16.mxu1 %vm486_vm0, %v2152_v53 }
  0x6e   :  { %2013 = vmatmul.mubr.msk.bf16.gmra.mrb[48].mxu0 %vm486_vm0, %v2153_v54  ;;  %2077 = vmatmul.mubr.msk.bf16.gmra.mrb[48].mxu1 %vm486_vm0, %v2154_v55 }
  0x6f   :  { %2016 = vmatprep.mubr.msk.bf16.mxu0 %vm486_vm0, %v2155_v56  ;;  %2080 = vmatprep.mubr.msk.bf16.mxu1 %vm486_vm0, %v2156_v57 }
  0x76   :  { %2017 = vmatmul.mubr.msk.bf16.gmra.mrb[52].mxu0 %vm486_vm0, %v2157_v58  ;;  %2081 = vmatmul.mubr.msk.bf16.gmra.mrb[52].mxu1 %vm486_vm0, %v2158_v59 }
  0x77   :  { %2020 = vmatprep.mubr.msk.bf16.mxu0 %vm486_vm0, %v2159_v60  ;;  %2084 = vmatprep.mubr.msk.bf16.mxu1 %vm486_vm0, %v2160_v61 }
  0x7e   :  { %2021 = vmatmul.mubr.msk.bf16.gmra.mrb[56].mxu0 %vm486_vm0, %v2161_v62  ;;  %2085 = vmatmul.mubr.msk.bf16.gmra.mrb[56].mxu1 %vm486_vm0, %v2162_v63 }
  0x7f   :  { %2024 = vmatprep.mubr.msk.bf16.mxu0 %vm486_vm0, %v2163_v0  ;;  %2088 = vmatprep.mubr.msk.bf16.mxu1 %vm486_vm0, %v2164_v1 }
  0x86   :  { %2025 = vmatmul.mubr.msk.bf16.gmra.mrb[60].mxu0 %vm486_vm0, %v2165_v2  ;;  %2089 = vmatmul.mubr.msk.bf16.gmra.mrb[60].mxu1 %vm486_vm0, %v2166_v3 }
  0xe1   :  { %v1966_v5 = vpop.f32.mrb[0].mxu0  ;;  %v2030_v7 = vpop.f32.mrb[0].mxu1 }
  0xe2   :  { %v1237_v8 = vmul.f32 %v1966_v5, %v2462_v4  ;;  %v1301_v9 = vmul.f32 %v2030_v7, %v2462_v4  ;;  %v717_v10 = vpop.f32.mrb[1].mxu0  ;;  %v973_v11 = vpop.f32.mrb[1].mxu1 }
  0xe3   :  { %v1235_v12 = vmul.f32 %v2462_v4, %v717_v10  ;;  %v1299_v13 = vmul.f32 %v2462_v4, %v973_v11  ;;  %v1967_v14 = vpop.f32.mrb[2].mxu0  ;;  %v2031_v15 = vpop.f32.mrb[2].mxu1 }
  0xe4   :  { %v1372_v16 = vadd.f32 %v2467_v6, %v1237_v8  ;;  %v1436_v17 = vadd.f32 %v2467_v6, %v1301_v9  ;;  %v1238_v18 = vmul.f32 %v1967_v14, %v2462_v4  ;;  %v1302_v19 = vmul.f32 %v2031_v15, %v2462_v4  ;;  %v720_v20 = vpop.f32.mrb[3].mxu0  ;;  %v976_v21 = vpop.f32.mrb[3].mxu1 }
  0xe5   :  { %v1370_v22 = vadd.f32 %v2467_v6, %v1235_v12  ;;  %v1434_v23 = vadd.f32 %v2467_v6, %v1299_v13  ;;  %v1236_v24 = vmul.f32 %v2462_v4, %v720_v20  ;;  %v1300_v25 = vmul.f32 %v2462_v4, %v976_v21 }
  0xe6   :  { %v1500_v26 = vmax.f32 %v1372_v16, 0.0  ;;  %v1564_v27 = vmax.f32 %v1436_v17, 0.0  ;;  %v1373_v28 = vadd.f32 %v2467_v6, %v1238_v18  ;;  %v1437_v29 = vadd.f32 %v2467_v6, %v1302_v19 }
  0xe7   :  { %v1498_v30 = vmax.f32 %v1370_v22, 0.0  ;;  %v1562_v31 = vmax.f32 %v1434_v23, 0.0  ;;  %v1371_v32 = vadd.f32 %v2467_v6, %v1236_v24  ;;  %v1435_v33 = vadd.f32 %v2467_v6, %v1300_v25 }
  0xe8   :  { %1628 = vst [vmem:[%s3123_s4 + $0x10] sm:$0xff] %v1500_v26  ;;  %1692 = vst [vmem:[%s3123_s4 + $0x210] sm:$0xff] %v1564_v27  ;;  %v1501_v34 = vmax.f32 %v1373_v28, 0.0  ;;  %v1565_v35 = vmax.f32 %v1437_v29, 0.0 }
  0xe9   :  { %1626 = vst [vmem:[%s3123_s4] sm:$0xff] %v1498_v30  ;;  %1690 = vst [vmem:[%s3123_s4 + $0x200] sm:$0xff] %v1562_v31  ;;  %v1499_v36 = vmax.f32 %v1371_v32, 0.0  ;;  %v1563_v37 = vmax.f32 %v1435_v33, 0.0  ;;  %v1970_v38 = vpop.f32.mrb[4].mxu0  ;;  %v2034_v39 = vpop.f32.mrb[4].mxu1 }
  0xea   :  { %1629 = vst [vmem:[%s3123_s4 + $0x18] sm:$0xff] %v1501_v34  ;;  %1693 = vst [vmem:[%s3123_s4 + $0x218] sm:$0xff] %v1565_v35  ;;  %v1241_v40 = vmul.f32 %v1970_v38, %v2462_v4  ;;  %v1305_v41 = vmul.f32 %v2034_v39, %v2462_v4  ;;  %v733_v42 = vpop.f32.mrb[5].mxu0  ;;  %v989_v43 = vpop.f32.mrb[5].mxu1 }
  0xeb   :  { %1627 = vst [vmem:[%s3123_s4 + $0x8] sm:$0xff] %v1499_v36  ;;  %1691 = vst [vmem:[%s3123_s4 + $0x208] sm:$0xff] %v1563_v37  ;;  %v1239_v44 = vmul.f32 %v2462_v4, %v733_v42  ;;  %v1303_v45 = vmul.f32 %v2462_v4, %v989_v43  ;;  %v1971_v46 = vpop.f32.mrb[6].mxu0  ;;  %v2035_v47 = vpop.f32.mrb[6].mxu1 }
  0xec   :  { %v1376_v48 = vadd.f32 %v2467_v6, %v1241_v40  ;;  %v1440_v49 = vadd.f32 %v2467_v6, %v1305_v41  ;;  %v1242_v50 = vmul.f32 %v1971_v46, %v2462_v4  ;;  %v1306_v51 = vmul.f32 %v2035_v47, %v2462_v4  ;;  %v736_v52 = vpop.f32.mrb[7].mxu0  ;;  %v992_v53 = vpop.f32.mrb[7].mxu1 }
  0xed   :  { %v1374_v54 = vadd.f32 %v2467_v6, %v1239_v44  ;;  %v1438_v55 = vadd.f32 %v2467_v6, %v1303_v45  ;;  %v1240_v56 = vmul.f32 %v2462_v4, %v736_v52  ;;  %v1304_v57 = vmul.f32 %v2462_v4, %v992_v53 }
  0xee   :  { %v1504_v58 = vmax.f32 %v1376_v48, 0.0  ;;  %v1568_v59 = vmax.f32 %v1440_v49, 0.0  ;;  %v1377_v60 = vadd.f32 %v2467_v6, %v1242_v50  ;;  %v1441_v61 = vadd.f32 %v2467_v6, %v1306_v51 }
  0xef   :  { %v1502_v62 = vmax.f32 %v1374_v54, 0.0  ;;  %v1566_v63 = vmax.f32 %v1438_v55, 0.0  ;;  %v1375_v0 = vadd.f32 %v2467_v6, %v1240_v56  ;;  %v1439_v1 = vadd.f32 %v2467_v6, %v1304_v57 }
  0xf0   :  { %1632 = vst [vmem:[%s3123_s4 + $0x30] sm:$0xff] %v1504_v58  ;;  %1696 = vst [vmem:[%s3123_s4 + $0x230] sm:$0xff] %v1568_v59  ;;  %v1505_v2 = vmax.f32 %v1377_v60, 0.0  ;;  %v1569_v3 = vmax.f32 %v1441_v61, 0.0 }
  0xf1   :  { %1630 = vst [vmem:[%s3123_s4 + $0x20] sm:$0xff] %v1502_v62  ;;  %1694 = vst [vmem:[%s3123_s4 + $0x220] sm:$0xff] %v1566_v63  ;;  %v1503_v5 = vmax.f32 %v1375_v0, 0.0  ;;  %v1567_v7 = vmax.f32 %v1439_v1, 0.0  ;;  %v1974_v8 = vpop.f32.mrb[8].mxu0  ;;  %v2038_v9 = vpop.f32.mrb[8].mxu1 }
  0xf2   :  { %1633 = vst [vmem:[%s3123_s4 + $0x38] sm:$0xff] %v1505_v2  ;;  %1697 = vst [vmem:[%s3123_s4 + $0x238] sm:$0xff] %v1569_v3  ;;  %v1245_v10 = vmul.f32 %v1974_v8, %v2462_v4  ;;  %v1309_v11 = vmul.f32 %v2038_v9, %v2462_v4  ;;  %v749_v12 = vpop.f32.mrb[9].mxu0  ;;  %v1005_v13 = vpop.f32.mrb[9].mxu1 }
  0xf3   :  { %1631 = vst [vmem:[%s3123_s4 + $0x28] sm:$0xff] %v1503_v5  ;;  %1695 = vst [vmem:[%s3123_s4 + $0x228] sm:$0xff] %v1567_v7  ;;  %v1243_v14 = vmul.f32 %v2462_v4, %v749_v12  ;;  %v1307_v15 = vmul.f32 %v2462_v4, %v1005_v13  ;;  %v1975_v16 = vpop.f32.mrb[10].mxu0  ;;  %v2039_v17 = vpop.f32.mrb[10].mxu1 }
  0xf4   :  { %v1380_v18 = vadd.f32 %v2467_v6, %v1245_v10  ;;  %v1444_v19 = vadd.f32 %v2467_v6, %v1309_v11  ;;  %v1246_v20 = vmul.f32 %v1975_v16, %v2462_v4  ;;  %v1310_v21 = vmul.f32 %v2039_v17, %v2462_v4  ;;  %v752_v22 = vpop.f32.mrb[11].mxu0  ;;  %v1008_v23 = vpop.f32.mrb[11].mxu1 }
  0xf5   :  { %v1378_v24 = vadd.f32 %v2467_v6, %v1243_v14  ;;  %v1442_v25 = vadd.f32 %v2467_v6, %v1307_v15  ;;  %v1244_v26 = vmul.f32 %v2462_v4, %v752_v22  ;;  %v1308_v27 = vmul.f32 %v2462_v4, %v1008_v23 }
  0xf6   :  { %v1508_v28 = vmax.f32 %v1380_v18, 0.0  ;;  %v1572_v29 = vmax.f32 %v1444_v19, 0.0  ;;  %v1381_v30 = vadd.f32 %v2467_v6, %v1246_v20  ;;  %v1445_v31 = vadd.f32 %v2467_v6, %v1310_v21 }
  0xf7   :  { %v1506_v32 = vmax.f32 %v1378_v24, 0.0  ;;  %v1570_v33 = vmax.f32 %v1442_v25, 0.0  ;;  %v1379_v34 = vadd.f32 %v2467_v6, %v1244_v26  ;;  %v1443_v35 = vadd.f32 %v2467_v6, %v1308_v27 }
  0xf8   :  { %1636 = vst [vmem:[%s3123_s4 + $0x50] sm:$0xff] %v1508_v28  ;;  %1700 = vst [vmem:[%s3123_s4 + $0x250] sm:$0xff] %v1572_v29  ;;  %v1509_v36 = vmax.f32 %v1381_v30, 0.0  ;;  %v1573_v37 = vmax.f32 %v1445_v31, 0.0 }
  0xf9   :  { %1634 = vst [vmem:[%s3123_s4 + $0x40] sm:$0xff] %v1506_v32  ;;  %1698 = vst [vmem:[%s3123_s4 + $0x240] sm:$0xff] %v1570_v33  ;;  %v1507_v38 = vmax.f32 %v1379_v34, 0.0  ;;  %v1571_v39 = vmax.f32 %v1443_v35, 0.0  ;;  %v1978_v40 = vpop.f32.mrb[12].mxu0  ;;  %v2042_v41 = vpop.f32.mrb[12].mxu1 }
  0xfa   :  { %1637 = vst [vmem:[%s3123_s4 + $0x58] sm:$0xff] %v1509_v36  ;;  %1701 = vst [vmem:[%s3123_s4 + $0x258] sm:$0xff] %v1573_v37  ;;  %v1249_v42 = vmul.f32 %v1978_v40, %v2462_v4  ;;  %v1313_v43 = vmul.f32 %v2042_v41, %v2462_v4  ;;  %v765_v44 = vpop.f32.mrb[13].mxu0  ;;  %v1021_v45 = vpop.f32.mrb[13].mxu1 }
  0xfb   :  { %1635 = vst [vmem:[%s3123_s4 + $0x48] sm:$0xff] %v1507_v38  ;;  %1699 = vst [vmem:[%s3123_s4 + $0x248] sm:$0xff] %v1571_v39  ;;  %v1247_v46 = vmul.f32 %v2462_v4, %v765_v44  ;;  %v1311_v47 = vmul.f32 %v2462_v4, %v1021_v45  ;;  %v1979_v48 = vpop.f32.mrb[14].mxu0  ;;  %v2043_v49 = vpop.f32.mrb[14].mxu1 }
  0xfc   :  { %v1384_v50 = vadd.f32 %v2467_v6, %v1249_v42  ;;  %v1448_v51 = vadd.f32 %v2467_v6, %v1313_v43  ;;  %v1250_v52 = vmul.f32 %v1979_v48, %v2462_v4  ;;  %v1314_v53 = vmul.f32 %v2043_v49, %v2462_v4  ;;  %v768_v54 = vpop.f32.mrb[15].mxu0  ;;  %v1024_v55 = vpop.f32.mrb[15].mxu1 }
  0xfd   :  { %v1382_v56 = vadd.f32 %v2467_v6, %v1247_v46  ;;  %v1446_v57 = vadd.f32 %v2467_v6, %v1311_v47  ;;  %v1248_v58 = vmul.f32 %v2462_v4, %v768_v54  ;;  %v1312_v59 = vmul.f32 %v2462_v4, %v1024_v55 }
  0xfe   :  { %v1512_v60 = vmax.f32 %v1384_v50, 0.0  ;;  %v1576_v61 = vmax.f32 %v1448_v51, 0.0  ;;  %v1385_v62 = vadd.f32 %v2467_v6, %v1250_v52  ;;  %v1449_v63 = vadd.f32 %v2467_v6, %v1314_v53 }
  0xff   :  { %v1510_v0 = vmax.f32 %v1382_v56, 0.0  ;;  %v1574_v1 = vmax.f32 %v1446_v57, 0.0  ;;  %v1383_v2 = vadd.f32 %v2467_v6, %v1248_v58  ;;  %v1447_v3 = vadd.f32 %v2467_v6, %v1312_v59 }
 0x100   :  { %1640 = vst [vmem:[%s3123_s4 + $0x70] sm:$0xff] %v1512_v60  ;;  %1704 = vst [vmem:[%s3123_s4 + $0x270] sm:$0xff] %v1576_v61  ;;  %v1513_v5 = vmax.f32 %v1385_v62, 0.0  ;;  %v1577_v7 = vmax.f32 %v1449_v63, 0.0 }
 0x101   :  { %1638 = vst [vmem:[%s3123_s4 + $0x60] sm:$0xff] %v1510_v0  ;;  %1702 = vst [vmem:[%s3123_s4 + $0x260] sm:$0xff] %v1574_v1  ;;  %v1511_v8 = vmax.f32 %v1383_v2, 0.0  ;;  %v1575_v9 = vmax.f32 %v1447_v3, 0.0  ;;  %v1982_v10 = vpop.f32.mrb[16].mxu0  ;;  %v2046_v11 = vpop.f32.mrb[16].mxu1 }
 0x102   :  { %1641 = vst [vmem:[%s3123_s4 + $0x78] sm:$0xff] %v1513_v5  ;;  %1705 = vst [vmem:[%s3123_s4 + $0x278] sm:$0xff] %v1577_v7  ;;  %v1253_v12 = vmul.f32 %v1982_v10, %v2462_v4  ;;  %v1317_v13 = vmul.f32 %v2046_v11, %v2462_v4  ;;  %v781_v14 = vpop.f32.mrb[17].mxu0  ;;  %v1037_v15 = vpop.f32.mrb[17].mxu1 }
 0x103   :  { %1639 = vst [vmem:[%s3123_s4 + $0x68] sm:$0xff] %v1511_v8  ;;  %1703 = vst [vmem:[%s3123_s4 + $0x268] sm:$0xff] %v1575_v9  ;;  %v1251_v16 = vmul.f32 %v2462_v4, %v781_v14  ;;  %v1315_v17 = vmul.f32 %v2462_v4, %v1037_v15  ;;  %v1983_v18 = vpop.f32.mrb[18].mxu0  ;;  %v2047_v19 = vpop.f32.mrb[18].mxu1 }
 0x104   :  { %v1388_v20 = vadd.f32 %v2467_v6, %v1253_v12  ;;  %v1452_v21 = vadd.f32 %v2467_v6, %v1317_v13  ;;  %v1254_v22 = vmul.f32 %v1983_v18, %v2462_v4  ;;  %v1318_v23 = vmul.f32 %v2047_v19, %v2462_v4  ;;  %v784_v24 = vpop.f32.mrb[19].mxu0  ;;  %v1040_v25 = vpop.f32.mrb[19].mxu1 }
 0x105   :  { %v1386_v26 = vadd.f32 %v2467_v6, %v1251_v16  ;;  %v1450_v27 = vadd.f32 %v2467_v6, %v1315_v17  ;;  %v1252_v28 = vmul.f32 %v2462_v4, %v784_v24  ;;  %v1316_v29 = vmul.f32 %v2462_v4, %v1040_v25 }
 0x106   :  { %v1516_v30 = vmax.f32 %v1388_v20, 0.0  ;;  %v1580_v31 = vmax.f32 %v1452_v21, 0.0  ;;  %v1389_v32 = vadd.f32 %v2467_v6, %v1254_v22  ;;  %v1453_v33 = vadd.f32 %v2467_v6, %v1318_v23 }
 0x107   :  { %v1514_v34 = vmax.f32 %v1386_v26, 0.0  ;;  %v1578_v35 = vmax.f32 %v1450_v27, 0.0  ;;  %v1387_v36 = vadd.f32 %v2467_v6, %v1252_v28  ;;  %v1451_v37 = vadd.f32 %v2467_v6, %v1316_v29 }
 0x108   :  { %1644 = vst [vmem:[%s3123_s4 + $0x90] sm:$0xff] %v1516_v30  ;;  %1708 = vst [vmem:[%s3123_s4 + $0x290] sm:$0xff] %v1580_v31  ;;  %v1517_v38 = vmax.f32 %v1389_v32, 0.0  ;;  %v1581_v39 = vmax.f32 %v1453_v33, 0.0 }
 0x109   :  { %1642 = vst [vmem:[%s3123_s4 + $0x80] sm:$0xff] %v1514_v34  ;;  %1706 = vst [vmem:[%s3123_s4 + $0x280] sm:$0xff] %v1578_v35  ;;  %v1515_v40 = vmax.f32 %v1387_v36, 0.0  ;;  %v1579_v41 = vmax.f32 %v1451_v37, 0.0  ;;  %v1986_v42 = vpop.f32.mrb[20].mxu0  ;;  %v2050_v43 = vpop.f32.mrb[20].mxu1 }
 0x10a   :  { %1645 = vst [vmem:[%s3123_s4 + $0x98] sm:$0xff] %v1517_v38  ;;  %1709 = vst [vmem:[%s3123_s4 + $0x298] sm:$0xff] %v1581_v39  ;;  %v1257_v44 = vmul.f32 %v1986_v42, %v2462_v4  ;;  %v1321_v45 = vmul.f32 %v2050_v43, %v2462_v4  ;;  %v797_v46 = vpop.f32.mrb[21].mxu0  ;;  %v1053_v47 = vpop.f32.mrb[21].mxu1 }
 0x10b   :  { %1643 = vst [vmem:[%s3123_s4 + $0x88] sm:$0xff] %v1515_v40  ;;  %1707 = vst [vmem:[%s3123_s4 + $0x288] sm:$0xff] %v1579_v41  ;;  %v1255_v48 = vmul.f32 %v2462_v4, %v797_v46  ;;  %v1319_v49 = vmul.f32 %v2462_v4, %v1053_v47  ;;  %v1987_v50 = vpop.f32.mrb[22].mxu0  ;;  %v2051_v51 = vpop.f32.mrb[22].mxu1 }
 0x10c   :  { %v1392_v52 = vadd.f32 %v2467_v6, %v1257_v44  ;;  %v1456_v53 = vadd.f32 %v2467_v6, %v1321_v45  ;;  %v1258_v54 = vmul.f32 %v1987_v50, %v2462_v4  ;;  %v1322_v55 = vmul.f32 %v2051_v51, %v2462_v4  ;;  %v800_v56 = vpop.f32.mrb[23].mxu0  ;;  %v1056_v57 = vpop.f32.mrb[23].mxu1 }
 0x10d   :  { %v1390_v58 = vadd.f32 %v2467_v6, %v1255_v48  ;;  %v1454_v59 = vadd.f32 %v2467_v6, %v1319_v49  ;;  %v1256_v60 = vmul.f32 %v2462_v4, %v800_v56  ;;  %v1320_v61 = vmul.f32 %v2462_v4, %v1056_v57 }
 0x10e   :  { %v1520_v62 = vmax.f32 %v1392_v52, 0.0  ;;  %v1584_v63 = vmax.f32 %v1456_v53, 0.0  ;;  %v1393_v0 = vadd.f32 %v2467_v6, %v1258_v54  ;;  %v1457_v1 = vadd.f32 %v2467_v6, %v1322_v55 }
 0x10f   :  { %v1518_v2 = vmax.f32 %v1390_v58, 0.0  ;;  %v1582_v3 = vmax.f32 %v1454_v59, 0.0  ;;  %v1391_v5 = vadd.f32 %v2467_v6, %v1256_v60  ;;  %v1455_v7 = vadd.f32 %v2467_v6, %v1320_v61 }
 0x110   :  { %1648 = vst [vmem:[%s3123_s4 + $0xb0] sm:$0xff] %v1520_v62  ;;  %1712 = vst [vmem:[%s3123_s4 + $0x2b0] sm:$0xff] %v1584_v63  ;;  %v1521_v8 = vmax.f32 %v1393_v0, 0.0  ;;  %v1585_v9 = vmax.f32 %v1457_v1, 0.0 }
 0x111   :  { %1646 = vst [vmem:[%s3123_s4 + $0xa0] sm:$0xff] %v1518_v2  ;;  %1710 = vst [vmem:[%s3123_s4 + $0x2a0] sm:$0xff] %v1582_v3  ;;  %v1519_v10 = vmax.f32 %v1391_v5, 0.0  ;;  %v1583_v11 = vmax.f32 %v1455_v7, 0.0  ;;  %v1990_v12 = vpop.f32.mrb[24].mxu0  ;;  %v2054_v13 = vpop.f32.mrb[24].mxu1 }
 0x112   :  { %1649 = vst [vmem:[%s3123_s4 + $0xb8] sm:$0xff] %v1521_v8  ;;  %1713 = vst [vmem:[%s3123_s4 + $0x2b8] sm:$0xff] %v1585_v9  ;;  %v1261_v14 = vmul.f32 %v1990_v12, %v2462_v4  ;;  %v1325_v15 = vmul.f32 %v2054_v13, %v2462_v4  ;;  %v813_v16 = vpop.f32.mrb[25].mxu0  ;;  %v1069_v17 = vpop.f32.mrb[25].mxu1 }
 0x113   :  { %1647 = vst [vmem:[%s3123_s4 + $0xa8] sm:$0xff] %v1519_v10  ;;  %1711 = vst [vmem:[%s3123_s4 + $0x2a8] sm:$0xff] %v1583_v11  ;;  %v1259_v18 = vmul.f32 %v2462_v4, %v813_v16  ;;  %v1323_v19 = vmul.f32 %v2462_v4, %v1069_v17  ;;  %v1991_v20 = vpop.f32.mrb[26].mxu0  ;;  %v2055_v21 = vpop.f32.mrb[26].mxu1 }
 0x114   :  { %v1396_v22 = vadd.f32 %v2467_v6, %v1261_v14  ;;  %v1460_v23 = vadd.f32 %v2467_v6, %v1325_v15  ;;  %v1262_v24 = vmul.f32 %v1991_v20, %v2462_v4  ;;  %v1326_v25 = vmul.f32 %v2055_v21, %v2462_v4  ;;  %v816_v26 = vpop.f32.mrb[27].mxu0  ;;  %v1072_v27 = vpop.f32.mrb[27].mxu1 }
 0x115   :  { %v1394_v28 = vadd.f32 %v2467_v6, %v1259_v18  ;;  %v1458_v29 = vadd.f32 %v2467_v6, %v1323_v19  ;;  %v1260_v30 = vmul.f32 %v2462_v4, %v816_v26  ;;  %v1324_v31 = vmul.f32 %v2462_v4, %v1072_v27 }
 0x116   :  { %v1524_v32 = vmax.f32 %v1396_v22, 0.0  ;;  %v1588_v33 = vmax.f32 %v1460_v23, 0.0  ;;  %v1397_v34 = vadd.f32 %v2467_v6, %v1262_v24  ;;  %v1461_v35 = vadd.f32 %v2467_v6, %v1326_v25 }
 0x117   :  { %v1522_v36 = vmax.f32 %v1394_v28, 0.0  ;;  %v1586_v37 = vmax.f32 %v1458_v29, 0.0  ;;  %v1395_v38 = vadd.f32 %v2467_v6, %v1260_v30  ;;  %v1459_v39 = vadd.f32 %v2467_v6, %v1324_v31 }
 0x118   :  { %1652 = vst [vmem:[%s3123_s4 + $0xd0] sm:$0xff] %v1524_v32  ;;  %1716 = vst [vmem:[%s3123_s4 + $0x2d0] sm:$0xff] %v1588_v33  ;;  %v1525_v40 = vmax.f32 %v1397_v34, 0.0  ;;  %v1589_v41 = vmax.f32 %v1461_v35, 0.0 }
 0x119   :  { %1650 = vst [vmem:[%s3123_s4 + $0xc0] sm:$0xff] %v1522_v36  ;;  %1714 = vst [vmem:[%s3123_s4 + $0x2c0] sm:$0xff] %v1586_v37  ;;  %v1523_v42 = vmax.f32 %v1395_v38, 0.0  ;;  %v1587_v43 = vmax.f32 %v1459_v39, 0.0  ;;  %v1994_v44 = vpop.f32.mrb[28].mxu0  ;;  %v2058_v45 = vpop.f32.mrb[28].mxu1 }
 0x11a   :  { %1653 = vst [vmem:[%s3123_s4 + $0xd8] sm:$0xff] %v1525_v40  ;;  %1717 = vst [vmem:[%s3123_s4 + $0x2d8] sm:$0xff] %v1589_v41  ;;  %v1265_v46 = vmul.f32 %v1994_v44, %v2462_v4  ;;  %v1329_v47 = vmul.f32 %v2058_v45, %v2462_v4  ;;  %v829_v48 = vpop.f32.mrb[29].mxu0  ;;  %v1085_v49 = vpop.f32.mrb[29].mxu1 }
 0x11b   :  { %1651 = vst [vmem:[%s3123_s4 + $0xc8] sm:$0xff] %v1523_v42  ;;  %1715 = vst [vmem:[%s3123_s4 + $0x2c8] sm:$0xff] %v1587_v43  ;;  %v1263_v50 = vmul.f32 %v2462_v4, %v829_v48  ;;  %v1327_v51 = vmul.f32 %v2462_v4, %v1085_v49  ;;  %v1995_v52 = vpop.f32.mrb[30].mxu0  ;;  %v2059_v53 = vpop.f32.mrb[30].mxu1 }
 0x11c   :  { %v1400_v54 = vadd.f32 %v2467_v6, %v1265_v46  ;;  %v1464_v55 = vadd.f32 %v2467_v6, %v1329_v47  ;;  %v1266_v56 = vmul.f32 %v1995_v52, %v2462_v4  ;;  %v1330_v57 = vmul.f32 %v2059_v53, %v2462_v4  ;;  %v832_v58 = vpop.f32.mrb[31].mxu0  ;;  %v1088_v59 = vpop.f32.mrb[31].mxu1 }
 0x11d   :  { %v1398_v60 = vadd.f32 %v2467_v6, %v1263_v50  ;;  %v1462_v61 = vadd.f32 %v2467_v6, %v1327_v51  ;;  %v1264_v62 = vmul.f32 %v2462_v4, %v832_v58  ;;  %v1328_v63 = vmul.f32 %v2462_v4, %v1088_v59 }
 0x11e   :  { %v1528_v0 = vmax.f32 %v1400_v54, 0.0  ;;  %v1592_v1 = vmax.f32 %v1464_v55, 0.0  ;;  %v1401_v2 = vadd.f32 %v2467_v6, %v1266_v56  ;;  %v1465_v3 = vadd.f32 %v2467_v6, %v1330_v57 }
 0x11f   :  { %v1526_v5 = vmax.f32 %v1398_v60, 0.0  ;;  %v1590_v7 = vmax.f32 %v1462_v61, 0.0  ;;  %v1399_v8 = vadd.f32 %v2467_v6, %v1264_v62  ;;  %v1463_v9 = vadd.f32 %v2467_v6, %v1328_v63 }
 0x120   :  { %1656 = vst [vmem:[%s3123_s4 + $0xf0] sm:$0xff] %v1528_v0  ;;  %1720 = vst [vmem:[%s3123_s4 + $0x2f0] sm:$0xff] %v1592_v1  ;;  %v1529_v10 = vmax.f32 %v1401_v2, 0.0  ;;  %v1593_v11 = vmax.f32 %v1465_v3, 0.0 }
 0x121   :  { %1654 = vst [vmem:[%s3123_s4 + $0xe0] sm:$0xff] %v1526_v5  ;;  %1718 = vst [vmem:[%s3123_s4 + $0x2e0] sm:$0xff] %v1590_v7  ;;  %v1527_v12 = vmax.f32 %v1399_v8, 0.0  ;;  %v1591_v13 = vmax.f32 %v1463_v9, 0.0  ;;  %v1998_v14 = vpop.f32.mrb[32].mxu0  ;;  %v2062_v15 = vpop.f32.mrb[32].mxu1 }
 0x122   :  { %1657 = vst [vmem:[%s3123_s4 + $0xf8] sm:$0xff] %v1529_v10  ;;  %1721 = vst [vmem:[%s3123_s4 + $0x2f8] sm:$0xff] %v1593_v11  ;;  %v1269_v16 = vmul.f32 %v1998_v14, %v2462_v4  ;;  %v1333_v17 = vmul.f32 %v2062_v15, %v2462_v4  ;;  %v845_v18 = vpop.f32.mrb[33].mxu0  ;;  %v1101_v19 = vpop.f32.mrb[33].mxu1 }
 0x123   :  { %1655 = vst [vmem:[%s3123_s4 + $0xe8] sm:$0xff] %v1527_v12  ;;  %1719 = vst [vmem:[%s3123_s4 + $0x2e8] sm:$0xff] %v1591_v13  ;;  %v1267_v20 = vmul.f32 %v2462_v4, %v845_v18  ;;  %v1331_v21 = vmul.f32 %v2462_v4, %v1101_v19  ;;  %v1999_v22 = vpop.f32.mrb[34].mxu0  ;;  %v2063_v23 = vpop.f32.mrb[34].mxu1 }
 0x124   :  { %v1404_v24 = vadd.f32 %v2467_v6, %v1269_v16  ;;  %v1468_v25 = vadd.f32 %v2467_v6, %v1333_v17  ;;  %v1270_v26 = vmul.f32 %v1999_v22, %v2462_v4  ;;  %v1334_v27 = vmul.f32 %v2063_v23, %v2462_v4  ;;  %v848_v28 = vpop.f32.mrb[35].mxu0  ;;  %v1104_v29 = vpop.f32.mrb[35].mxu1 }
 0x125   :  { %v1402_v30 = vadd.f32 %v2467_v6, %v1267_v20  ;;  %v1466_v31 = vadd.f32 %v2467_v6, %v1331_v21  ;;  %v1268_v32 = vmul.f32 %v2462_v4, %v848_v28  ;;  %v1332_v33 = vmul.f32 %v2462_v4, %v1104_v29 }
 0x126   :  { %v1532_v34 = vmax.f32 %v1404_v24, 0.0  ;;  %v1596_v35 = vmax.f32 %v1468_v25, 0.0  ;;  %v1405_v36 = vadd.f32 %v2467_v6, %v1270_v26  ;;  %v1469_v37 = vadd.f32 %v2467_v6, %v1334_v27 }
 0x127   :  { %v1530_v38 = vmax.f32 %v1402_v30, 0.0  ;;  %v1594_v39 = vmax.f32 %v1466_v31, 0.0  ;;  %v1403_v40 = vadd.f32 %v2467_v6, %v1268_v32  ;;  %v1467_v41 = vadd.f32 %v2467_v6, %v1332_v33 }
 0x128   :  { %1660 = vst [vmem:[%s3123_s4 + $0x110] sm:$0xff] %v1532_v34  ;;  %1724 = vst [vmem:[%s3123_s4 + $0x310] sm:$0xff] %v1596_v35  ;;  %v1533_v42 = vmax.f32 %v1405_v36, 0.0  ;;  %v1597_v43 = vmax.f32 %v1469_v37, 0.0 }
 0x129   :  { %1658 = vst [vmem:[%s3123_s4 + $0x100] sm:$0xff] %v1530_v38  ;;  %1722 = vst [vmem:[%s3123_s4 + $0x300] sm:$0xff] %v1594_v39  ;;  %v1531_v44 = vmax.f32 %v1403_v40, 0.0  ;;  %v1595_v45 = vmax.f32 %v1467_v41, 0.0  ;;  %v2002_v46 = vpop.f32.mrb[36].mxu0  ;;  %v2066_v47 = vpop.f32.mrb[36].mxu1 }
 0x12a   :  { %1661 = vst [vmem:[%s3123_s4 + $0x118] sm:$0xff] %v1533_v42  ;;  %1725 = vst [vmem:[%s3123_s4 + $0x318] sm:$0xff] %v1597_v43  ;;  %v1273_v48 = vmul.f32 %v2002_v46, %v2462_v4  ;;  %v1337_v49 = vmul.f32 %v2066_v47, %v2462_v4  ;;  %v861_v50 = vpop.f32.mrb[37].mxu0  ;;  %v1117_v51 = vpop.f32.mrb[37].mxu1 }
 0x12b   :  { %1659 = vst [vmem:[%s3123_s4 + $0x108] sm:$0xff] %v1531_v44  ;;  %1723 = vst [vmem:[%s3123_s4 + $0x308] sm:$0xff] %v1595_v45  ;;  %v1271_v52 = vmul.f32 %v2462_v4, %v861_v50  ;;  %v1335_v53 = vmul.f32 %v2462_v4, %v1117_v51  ;;  %v2003_v54 = vpop.f32.mrb[38].mxu0  ;;  %v2067_v55 = vpop.f32.mrb[38].mxu1 }
 0x12c   :  { %v1408_v56 = vadd.f32 %v2467_v6, %v1273_v48  ;;  %v1472_v57 = vadd.f32 %v2467_v6, %v1337_v49  ;;  %v1274_v58 = vmul.f32 %v2003_v54, %v2462_v4  ;;  %v1338_v59 = vmul.f32 %v2067_v55, %v2462_v4  ;;  %v864_v60 = vpop.f32.mrb[39].mxu0  ;;  %v1120_v61 = vpop.f32.mrb[39].mxu1 }
 0x12d   :  { %v1406_v62 = vadd.f32 %v2467_v6, %v1271_v52  ;;  %v1470_v63 = vadd.f32 %v2467_v6, %v1335_v53  ;;  %v1272_v0 = vmul.f32 %v2462_v4, %v864_v60  ;;  %v1336_v1 = vmul.f32 %v2462_v4, %v1120_v61 }
 0x12e   :  { %v1536_v2 = vmax.f32 %v1408_v56, 0.0  ;;  %v1600_v3 = vmax.f32 %v1472_v57, 0.0  ;;  %v1409_v5 = vadd.f32 %v2467_v6, %v1274_v58  ;;  %v1473_v7 = vadd.f32 %v2467_v6, %v1338_v59 }
 0x12f   :  { %v1534_v8 = vmax.f32 %v1406_v62, 0.0  ;;  %v1598_v9 = vmax.f32 %v1470_v63, 0.0  ;;  %v1407_v10 = vadd.f32 %v2467_v6, %v1272_v0  ;;  %v1471_v11 = vadd.f32 %v2467_v6, %v1336_v1 }
 0x130   :  { %1664 = vst [vmem:[%s3123_s4 + $0x130] sm:$0xff] %v1536_v2  ;;  %1728 = vst [vmem:[%s3123_s4 + $0x330] sm:$0xff] %v1600_v3  ;;  %v1537_v12 = vmax.f32 %v1409_v5, 0.0  ;;  %v1601_v13 = vmax.f32 %v1473_v7, 0.0 }
 0x131   :  { %1662 = vst [vmem:[%s3123_s4 + $0x120] sm:$0xff] %v1534_v8  ;;  %1726 = vst [vmem:[%s3123_s4 + $0x320] sm:$0xff] %v1598_v9  ;;  %v1535_v14 = vmax.f32 %v1407_v10, 0.0  ;;  %v1599_v15 = vmax.f32 %v1471_v11, 0.0  ;;  %v2006_v16 = vpop.f32.mrb[40].mxu0  ;;  %v2070_v17 = vpop.f32.mrb[40].mxu1 }
 0x132   :  { %1665 = vst [vmem:[%s3123_s4 + $0x138] sm:$0xff] %v1537_v12  ;;  %1729 = vst [vmem:[%s3123_s4 + $0x338] sm:$0xff] %v1601_v13  ;;  %v1277_v18 = vmul.f32 %v2006_v16, %v2462_v4  ;;  %v1341_v19 = vmul.f32 %v2070_v17, %v2462_v4  ;;  %v877_v20 = vpop.f32.mrb[41].mxu0  ;;  %v1133_v21 = vpop.f32.mrb[41].mxu1 }
 0x133   :  { %1663 = vst [vmem:[%s3123_s4 + $0x128] sm:$0xff] %v1535_v14  ;;  %1727 = vst [vmem:[%s3123_s4 + $0x328] sm:$0xff] %v1599_v15  ;;  %v1275_v22 = vmul.f32 %v2462_v4, %v877_v20  ;;  %v1339_v23 = vmul.f32 %v2462_v4, %v1133_v21  ;;  %v2007_v24 = vpop.f32.mrb[42].mxu0  ;;  %v2071_v25 = vpop.f32.mrb[42].mxu1 }
 0x134   :  { %v1412_v26 = vadd.f32 %v2467_v6, %v1277_v18  ;;  %v1476_v27 = vadd.f32 %v2467_v6, %v1341_v19  ;;  %v1278_v28 = vmul.f32 %v2007_v24, %v2462_v4  ;;  %v1342_v29 = vmul.f32 %v2071_v25, %v2462_v4  ;;  %v880_v30 = vpop.f32.mrb[43].mxu0  ;;  %v1136_v31 = vpop.f32.mrb[43].mxu1 }
 0x135   :  { %v1410_v32 = vadd.f32 %v2467_v6, %v1275_v22  ;;  %v1474_v33 = vadd.f32 %v2467_v6, %v1339_v23  ;;  %v1276_v34 = vmul.f32 %v2462_v4, %v880_v30  ;;  %v1340_v35 = vmul.f32 %v2462_v4, %v1136_v31 }
 0x136   :  { %v1540_v36 = vmax.f32 %v1412_v26, 0.0  ;;  %v1604_v37 = vmax.f32 %v1476_v27, 0.0  ;;  %v1413_v38 = vadd.f32 %v2467_v6, %v1278_v28  ;;  %v1477_v39 = vadd.f32 %v2467_v6, %v1342_v29 }
 0x137   :  { %v1538_v40 = vmax.f32 %v1410_v32, 0.0  ;;  %v1602_v41 = vmax.f32 %v1474_v33, 0.0  ;;  %v1411_v42 = vadd.f32 %v2467_v6, %v1276_v34  ;;  %v1475_v43 = vadd.f32 %v2467_v6, %v1340_v35 }
 0x138   :  { %1668 = vst [vmem:[%s3123_s4 + $0x150] sm:$0xff] %v1540_v36  ;;  %1732 = vst [vmem:[%s3123_s4 + $0x350] sm:$0xff] %v1604_v37  ;;  %v1541_v44 = vmax.f32 %v1413_v38, 0.0  ;;  %v1605_v45 = vmax.f32 %v1477_v39, 0.0 }
 0x139   :  { %1666 = vst [vmem:[%s3123_s4 + $0x140] sm:$0xff] %v1538_v40  ;;  %1730 = vst [vmem:[%s3123_s4 + $0x340] sm:$0xff] %v1602_v41  ;;  %v1539_v46 = vmax.f32 %v1411_v42, 0.0  ;;  %v1603_v47 = vmax.f32 %v1475_v43, 0.0  ;;  %v2010_v48 = vpop.f32.mrb[44].mxu0  ;;  %v2074_v49 = vpop.f32.mrb[44].mxu1 }
 0x13a   :  { %1669 = vst [vmem:[%s3123_s4 + $0x158] sm:$0xff] %v1541_v44  ;;  %1733 = vst [vmem:[%s3123_s4 + $0x358] sm:$0xff] %v1605_v45  ;;  %v1281_v50 = vmul.f32 %v2010_v48, %v2462_v4  ;;  %v1345_v51 = vmul.f32 %v2074_v49, %v2462_v4  ;;  %v893_v52 = vpop.f32.mrb[45].mxu0  ;;  %v1149_v53 = vpop.f32.mrb[45].mxu1 }
 0x13b   :  { %1667 = vst [vmem:[%s3123_s4 + $0x148] sm:$0xff] %v1539_v46  ;;  %1731 = vst [vmem:[%s3123_s4 + $0x348] sm:$0xff] %v1603_v47  ;;  %v1279_v54 = vmul.f32 %v2462_v4, %v893_v52  ;;  %v1343_v55 = vmul.f32 %v2462_v4, %v1149_v53  ;;  %v2011_v56 = vpop.f32.mrb[46].mxu0  ;;  %v2075_v57 = vpop.f32.mrb[46].mxu1 }
 0x13c   :  { %v1416_v58 = vadd.f32 %v2467_v6, %v1281_v50  ;;  %v1480_v59 = vadd.f32 %v2467_v6, %v1345_v51  ;;  %v1282_v60 = vmul.f32 %v2011_v56, %v2462_v4  ;;  %v1346_v61 = vmul.f32 %v2075_v57, %v2462_v4  ;;  %v896_v62 = vpop.f32.mrb[47].mxu0  ;;  %v1152_v63 = vpop.f32.mrb[47].mxu1  ;;  %v2986_v50 = vld [vmem:[%s3121_s2] ss:$0 sm:$0xff] }
 0x13d   :  { %v1414_v0 = vadd.f32 %v2467_v6, %v1279_v54  ;;  %v1478_v1 = vadd.f32 %v2467_v6, %v1343_v55  ;;  %v1280_v2 = vmul.f32 %v2462_v4, %v896_v62  ;;  %v1344_v3 = vmul.f32 %v2462_v4, %v1152_v63 }
 0x13e   :  { %v1544_v5 = vmax.f32 %v1416_v58, 0.0  ;;  %v1608_v7 = vmax.f32 %v1480_v59, 0.0  ;;  %v1417_v8 = vadd.f32 %v2467_v6, %v1282_v60  ;;  %v1481_v9 = vadd.f32 %v2467_v6, %v1346_v61  ;;  %v3001_v59 = vld [vmem:[%s3122_s3] ss:$0 sm:$0xff] }
 0x13f   :  { %v1542_v10 = vmax.f32 %v1414_v0, 0.0  ;;  %v1606_v11 = vmax.f32 %v1478_v1, 0.0  ;;  %v1415_v12 = vadd.f32 %v2467_v6, %v1280_v2  ;;  %v1479_v13 = vadd.f32 %v2467_v6, %v1344_v3 }
 0x140   :  { %1672 = vst [vmem:[%s3123_s4 + $0x170] sm:$0xff] %v1544_v5  ;;  %1736 = vst [vmem:[%s3123_s4 + $0x370] sm:$0xff] %v1608_v7  ;;  %v1545_v14 = vmax.f32 %v1417_v8, 0.0  ;;  %v1609_v15 = vmax.f32 %v1481_v9, 0.0 }
 0x141   :  { %1670 = vst [vmem:[%s3123_s4 + $0x160] sm:$0xff] %v1542_v10  ;;  %1734 = vst [vmem:[%s3123_s4 + $0x360] sm:$0xff] %v1606_v11  ;;  %v1543_v16 = vmax.f32 %v1415_v12, 0.0  ;;  %v1607_v17 = vmax.f32 %v1479_v13, 0.0  ;;  %v2014_v18 = vpop.f32.mrb[48].mxu0  ;;  %v2078_v19 = vpop.f32.mrb[48].mxu1 }
 0x142   :  { %1673 = vst [vmem:[%s3123_s4 + $0x178] sm:$0xff] %v1545_v14  ;;  %1737 = vst [vmem:[%s3123_s4 + $0x378] sm:$0xff] %v1609_v15  ;;  %v1285_v20 = vmul.f32 %v2014_v18, %v2462_v4  ;;  %v1349_v21 = vmul.f32 %v2078_v19, %v2462_v4  ;;  %v909_v22 = vpop.f32.mrb[49].mxu0  ;;  %v1165_v23 = vpop.f32.mrb[49].mxu1 }
 0x143   :  { %1671 = vst [vmem:[%s3123_s4 + $0x168] sm:$0xff] %v1543_v16  ;;  %1735 = vst [vmem:[%s3123_s4 + $0x368] sm:$0xff] %v1607_v17  ;;  %v1283_v24 = vmul.f32 %v2462_v4, %v909_v22  ;;  %v1347_v25 = vmul.f32 %v2462_v4, %v1165_v23  ;;  %v2015_v26 = vpop.f32.mrb[50].mxu0  ;;  %v2079_v27 = vpop.f32.mrb[50].mxu1 }
 0x144   :  { %v1420_v28 = vadd.f32 %v2467_v6, %v1285_v20  ;;  %v1484_v29 = vadd.f32 %v2467_v6, %v1349_v21  ;;  %v1286_v30 = vmul.f32 %v2015_v26, %v2462_v4  ;;  %v1350_v31 = vmul.f32 %v2079_v27, %v2462_v4  ;;  %v912_v32 = vpop.f32.mrb[51].mxu0  ;;  %v1168_v33 = vpop.f32.mrb[51].mxu1 }
 0x145   :  { %v1418_v34 = vadd.f32 %v2467_v6, %v1283_v24  ;;  %v1482_v35 = vadd.f32 %v2467_v6, %v1347_v25  ;;  %v1284_v36 = vmul.f32 %v2462_v4, %v912_v32  ;;  %v1348_v37 = vmul.f32 %v2462_v4, %v1168_v33 }
 0x146   :  { %v1548_v38 = vmax.f32 %v1420_v28, 0.0  ;;  %v1612_v39 = vmax.f32 %v1484_v29, 0.0  ;;  %v1421_v40 = vadd.f32 %v2467_v6, %v1286_v30  ;;  %v1485_v41 = vadd.f32 %v2467_v6, %v1350_v31 }
 0x147   :  { %v1546_v42 = vmax.f32 %v1418_v34, 0.0  ;;  %v1610_v43 = vmax.f32 %v1482_v35, 0.0  ;;  %v1419_v44 = vadd.f32 %v2467_v6, %v1284_v36  ;;  %v1483_v45 = vadd.f32 %v2467_v6, %v1348_v37 }
 0x148   :  { %1676 = vst [vmem:[%s3123_s4 + $0x190] sm:$0xff] %v1548_v38  ;;  %1740 = vst [vmem:[%s3123_s4 + $0x390] sm:$0xff] %v1612_v39  ;;  %v1549_v4 = vmax.f32 %v1421_v40, 0.0  ;;  %v1613_v46 = vmax.f32 %v1485_v41, 0.0 }
 0x149   :  { %1674 = vst [vmem:[%s3123_s4 + $0x180] sm:$0xff] %v1546_v42  ;;  %1738 = vst [vmem:[%s3123_s4 + $0x380] sm:$0xff] %v1610_v43  ;;  %v1547_v47 = vmax.f32 %v1419_v44, 0.0  ;;  %v1611_v6 = vmax.f32 %v1483_v45, 0.0  ;;  %v2018_v48 = vpop.f32.mrb[52].mxu0  ;;  %v2082_v49 = vpop.f32.mrb[52].mxu1 }
 0x14a   :  { %1677 = vst [vmem:[%s3123_s4 + $0x198] sm:$0xff] %v1549_v4  ;;  %1741 = vst [vmem:[%s3123_s4 + $0x398] sm:$0xff] %v1613_v46  ;;  %v1289_v51 = vmul.f32 %v2986_v50, %v2018_v48  ;;  %v1353_v52 = vmul.f32 %v2986_v50, %v2082_v49  ;;  %v925_v53 = vpop.f32.mrb[53].mxu0  ;;  %v1181_v54 = vpop.f32.mrb[53].mxu1 }
 0x14b   :  { %1675 = vst [vmem:[%s3123_s4 + $0x188] sm:$0xff] %v1547_v47  ;;  %1739 = vst [vmem:[%s3123_s4 + $0x388] sm:$0xff] %v1611_v6  ;;  %v1287_v55 = vmul.f32 %v2986_v50, %v925_v53  ;;  %v1351_v56 = vmul.f32 %v2986_v50, %v1181_v54  ;;  %v2019_v57 = vpop.f32.mrb[54].mxu0  ;;  %v2083_v58 = vpop.f32.mrb[54].mxu1 }
 0x14c   :  { %v1424_v60 = vadd.f32 %v3001_v59, %v1289_v51  ;;  %v1488_v61 = vadd.f32 %v3001_v59, %v1353_v52  ;;  %v1290_v62 = vmul.f32 %v2986_v50, %v2019_v57  ;;  %v1354_v63 = vmul.f32 %v2986_v50, %v2083_v58  ;;  %v928_v0 = vpop.f32.mrb[55].mxu0  ;;  %v1184_v1 = vpop.f32.mrb[55].mxu1 }
 0x14d   :  { %v1422_v2 = vadd.f32 %v3001_v59, %v1287_v55  ;;  %v1486_v3 = vadd.f32 %v3001_v59, %v1351_v56  ;;  %v1288_v5 = vmul.f32 %v2986_v50, %v928_v0  ;;  %v1352_v7 = vmul.f32 %v2986_v50, %v1184_v1 }
 0x14e   :  { %v1552_v8 = vmax.f32 %v1424_v60, 0.0  ;;  %v1616_v9 = vmax.f32 %v1488_v61, 0.0  ;;  %v1425_v10 = vadd.f32 %v3001_v59, %v1290_v62  ;;  %v1489_v11 = vadd.f32 %v3001_v59, %v1354_v63 }
 0x14f   :  { %v1550_v12 = vmax.f32 %v1422_v2, 0.0  ;;  %v1614_v13 = vmax.f32 %v1486_v3, 0.0  ;;  %v1423_v14 = vadd.f32 %v3001_v59, %v1288_v5  ;;  %v1487_v15 = vadd.f32 %v3001_v59, %v1352_v7 }
 0x150   :  { %1680 = vst [vmem:[%s3123_s4 + $0x1b0] sm:$0xff] %v1552_v8  ;;  %1744 = vst [vmem:[%s3123_s4 + $0x3b0] sm:$0xff] %v1616_v9  ;;  %v1553_v16 = vmax.f32 %v1425_v10, 0.0  ;;  %v1617_v17 = vmax.f32 %v1489_v11, 0.0 }
 0x151   :  { %1678 = vst [vmem:[%s3123_s4 + $0x1a0] sm:$0xff] %v1550_v12  ;;  %1742 = vst [vmem:[%s3123_s4 + $0x3a0] sm:$0xff] %v1614_v13  ;;  %v1551_v18 = vmax.f32 %v1423_v14, 0.0  ;;  %v1615_v19 = vmax.f32 %v1487_v15, 0.0  ;;  %v2022_v20 = vpop.f32.mrb[56].mxu0  ;;  %v2086_v21 = vpop.f32.mrb[56].mxu1 }
 0x152   :  { %1681 = vst [vmem:[%s3123_s4 + $0x1b8] sm:$0xff] %v1553_v16  ;;  %1745 = vst [vmem:[%s3123_s4 + $0x3b8] sm:$0xff] %v1617_v17  ;;  %v1293_v22 = vmul.f32 %v2986_v50, %v2022_v20  ;;  %v1357_v23 = vmul.f32 %v2986_v50, %v2086_v21  ;;  %v941_v24 = vpop.f32.mrb[57].mxu0  ;;  %v1197_v25 = vpop.f32.mrb[57].mxu1 }
 0x153   :  { %1679 = vst [vmem:[%s3123_s4 + $0x1a8] sm:$0xff] %v1551_v18  ;;  %1743 = vst [vmem:[%s3123_s4 + $0x3a8] sm:$0xff] %v1615_v19  ;;  %v1291_v26 = vmul.f32 %v2986_v50, %v941_v24  ;;  %v1355_v27 = vmul.f32 %v2986_v50, %v1197_v25  ;;  %v2023_v28 = vpop.f32.mrb[58].mxu0  ;;  %v2087_v29 = vpop.f32.mrb[58].mxu1 }
 0x154   :  { %v1428_v30 = vadd.f32 %v3001_v59, %v1293_v22  ;;  %v1492_v31 = vadd.f32 %v3001_v59, %v1357_v23  ;;  %v1294_v32 = vmul.f32 %v2986_v50, %v2023_v28  ;;  %v1358_v33 = vmul.f32 %v2986_v50, %v2087_v29  ;;  %v944_v34 = vpop.f32.mrb[59].mxu0  ;;  %v1200_v35 = vpop.f32.mrb[59].mxu1 }
 0x155   :  { %v1426_v36 = vadd.f32 %v3001_v59, %v1291_v26  ;;  %v1490_v37 = vadd.f32 %v3001_v59, %v1355_v27  ;;  %v1292_v38 = vmul.f32 %v2986_v50, %v944_v34  ;;  %v1356_v39 = vmul.f32 %v2986_v50, %v1200_v35 }
 0x156   :  { %v1556_v40 = vmax.f32 %v1428_v30, 0.0  ;;  %v1620_v41 = vmax.f32 %v1492_v31, 0.0  ;;  %v1429_v42 = vadd.f32 %v3001_v59, %v1294_v32  ;;  %v1493_v43 = vadd.f32 %v3001_v59, %v1358_v33 }
 0x157   :  { %v1554_v44 = vmax.f32 %v1426_v36, 0.0  ;;  %v1618_v45 = vmax.f32 %v1490_v37, 0.0  ;;  %v1427_v4 = vadd.f32 %v3001_v59, %v1292_v38  ;;  %v1491_v46 = vadd.f32 %v3001_v59, %v1356_v39 }
 0x158   :  { %1684 = vst [vmem:[%s3123_s4 + $0x1d0] sm:$0xff] %v1556_v40  ;;  %1748 = vst [vmem:[%s3123_s4 + $0x3d0] sm:$0xff] %v1620_v41  ;;  %v1557_v47 = vmax.f32 %v1429_v42, 0.0  ;;  %v1621_v6 = vmax.f32 %v1493_v43, 0.0 }
 0x159   :  { %1682 = vst [vmem:[%s3123_s4 + $0x1c0] sm:$0xff] %v1554_v44  ;;  %1746 = vst [vmem:[%s3123_s4 + $0x3c0] sm:$0xff] %v1618_v45  ;;  %v1555_v48 = vmax.f32 %v1427_v4, 0.0  ;;  %v1619_v49 = vmax.f32 %v1491_v46, 0.0  ;;  %v2026_v51 = vpop.f32.mrb[60].mxu0  ;;  %v2090_v52 = vpop.f32.mrb[60].mxu1 }
 0x15a   :  { %1685 = vst [vmem:[%s3123_s4 + $0x1d8] sm:$0xff] %v1557_v47  ;;  %1749 = vst [vmem:[%s3123_s4 + $0x3d8] sm:$0xff] %v1621_v6  ;;  %v1297_v53 = vmul.f32 %v2986_v50, %v2026_v51  ;;  %v1361_v54 = vmul.f32 %v2986_v50, %v2090_v52  ;;  %v957_v55 = vpop.f32.mrb[61].mxu0  ;;  %v1213_v56 = vpop.f32.mrb[61].mxu1 }
 0x15b   :  { %1683 = vst [vmem:[%s3123_s4 + $0x1c8] sm:$0xff] %v1555_v48  ;;  %1747 = vst [vmem:[%s3123_s4 + $0x3c8] sm:$0xff] %v1619_v49  ;;  %v1295_v57 = vmul.f32 %v2986_v50, %v957_v55  ;;  %v1359_v58 = vmul.f32 %v2986_v50, %v1213_v56  ;;  %v2027_v60 = vpop.f32.mrb[62].mxu0  ;;  %v2091_v61 = vpop.f32.mrb[62].mxu1 }
 0x15c   :  { %v1432_v62 = vadd.f32 %v3001_v59, %v1297_v53  ;;  %v1496_v63 = vadd.f32 %v3001_v59, %v1361_v54  ;;  %v1298_v0 = vmul.f32 %v2986_v50, %v2027_v60  ;;  %v1362_v1 = vmul.f32 %v2986_v50, %v2091_v61  ;;  %v960_v2 = vpop.f32.mrb[63].mxu0  ;;  %v1216_v3 = vpop.f32.mrb[63].mxu1 }
 0x15d   :  { %v1430_v5 = vadd.f32 %v3001_v59, %v1295_v57  ;;  %v1494_v7 = vadd.f32 %v3001_v59, %v1359_v58  ;;  %v1296_v8 = vmul.f32 %v2986_v50, %v960_v2  ;;  %v1360_v9 = vmul.f32 %v2986_v50, %v1216_v3 }
 0x15e   :  { %v1560_v10 = vmax.f32 %v1432_v62, 0.0  ;;  %v1624_v11 = vmax.f32 %v1496_v63, 0.0  ;;  %v1433_v12 = vadd.f32 %v3001_v59, %v1298_v0  ;;  %v1497_v13 = vadd.f32 %v3001_v59, %v1362_v1 }
 0x15f   :  { %v1558_v14 = vmax.f32 %v1430_v5, 0.0  ;;  %v1622_v15 = vmax.f32 %v1494_v7, 0.0  ;;  %v1431_v16 = vadd.f32 %v3001_v59, %v1296_v8  ;;  %v1495_v17 = vadd.f32 %v3001_v59, %v1360_v9 }
 0x160   :  { %1688 = vst [vmem:[%s3123_s4 + $0x1f0] sm:$0xff] %v1560_v10  ;;  %1752 = vst [vmem:[%s3123_s4 + $0x3f0] sm:$0xff] %v1624_v11  ;;  %v1561_v50 = vmax.f32 %v1433_v12, 0.0  ;;  %v1625_v18 = vmax.f32 %v1497_v13, 0.0 }
 0x161   :  { %1686 = vst [vmem:[%s3123_s4 + $0x1e0] sm:$0xff] %v1558_v14  ;;  %1750 = vst [vmem:[%s3123_s4 + $0x3e0] sm:$0xff] %v1622_v15  ;;  %v1559_v19 = vmax.f32 %v1431_v16, 0.0  ;;  %v1623_v59 = vmax.f32 %v1495_v17, 0.0 }
 0x162   :  { %1689 = vst [vmem:[%s3123_s4 + $0x1f8] sm:$0xff] %v1561_v50  ;;  %1753 = vst [vmem:[%s3123_s4 + $0x3f8] sm:$0xff] %v1625_v18 }
 0x163   :  { %1687 = vst [vmem:[%s3123_s4 + $0x1e8] sm:$0xff] %v1559_v19  ;;  %1751 = vst [vmem:[%s3123_s4 + $0x3e8] sm:$0xff] %v1623_v59 }

// kernel: _lambda_.9
= control target key start
LH: loop header
LB: loop body
LE: loop exit
PB: predicated region body
PF: predicated region fallthrough
CT: control target
= control target key end

     0   :  { %vm146_vm0 = vcmask 293888   ;;  %vm195_vm1 = vcmask 1041408   ;;  %s732_s1 = inlined_call_operand.vmem [shape: bf16[36,128], index: 1, kind: input, shape index: {}]   ;;  %s733_s0 = inlined_call_operand.vmem [shape: bf16[256,36], index: 0, kind: input, shape index: {}]   ;;  %s734_s2 = inlined_call_operand.vmem [shape: f32[8,128], index: 2, kind: output, shape index: {0}]   ;;  %s735_s3 = inlined_call_operand.vmem [shape: f32[8,128], index: 3, kind: output, shape index: {1}]  }
   0x1   :  { %v564_v0 = vld [vmem:[%s732_s1] sm:$0xff]   ;;  %v565_v1 = vld [vmem:[%s732_s1 + $0x8] sm:$0xff]   ;;  %v566_v2 = vld [vmem:[%s732_s1 + $0x10] ss:$0 sps:$4 sm:$0x33]  }
   0x2   :  { %518 = vmatprep.subr.bf16.mxu0 %v564_v0  ;;  %v567_v3 = vld [vmem:[%s733_s0] sm:$0xff]   ;;  %556 = vmatprep.subr.bf16.mxu1 %v564_v0  ;;  %v197_v4 = vsel %vm195_vm1, %v566_v2, 0  ;;  %v568_v5 = vld [vmem:[%s733_s0 + $0x8] sm:$0xff]   ;;  %v569_v6 = vld [vmem:[%s733_s0 + $0x10] sm:$0xff]  }
   0x3   :  { %519 = vmatpush3.bf16.msra.mxu0 %v564_v0  ;;  %559 = vmatpush3.bf16.msra.mxu1 %v564_v0  ;;  %v575_v7 = vld [vmem:[%s733_s0 + $0x40] sm:$0xff]   ;;  %v576_v8 = vld [vmem:[%s733_s0 + $0x48] sm:$0xff]   ;;  %v577_v9 = vld [vmem:[%s733_s0 + $0x50] sm:$0xff]  }
   0x4   :  { %520 = vmatprep.subr.bf16.mxu0 %v565_v1  ;;  %524 = vmatprep.mubr.msk.bf16.mxu0 %vm146_vm0, %v567_v3  ;;  %v570_v10 = vld [vmem:[%s733_s0 + $0x18] sm:$0xff]   ;;  %v571_v12 = vld [vmem:[%s733_s0 + $0x20] sm:$0xff]   ;;  %v572_v14 = vld [vmem:[%s733_s0 + $0x28] sm:$0xff]  }
   0x5   :  { %557 = vmatprep.subr.bf16.mxu1 %v565_v1  ;;  %540 = vmatprep.mubr.msk.bf16.mxu1 %vm146_vm0, %v575_v7  ;;  %v578_v11 = vld [vmem:[%s733_s0 + $0x58] sm:$0xff]   ;;  %v579_v13 = vld [vmem:[%s733_s0 + $0x60] sm:$0xff]   ;;  %v580_v15 = vld [vmem:[%s733_s0 + $0x68] sm:$0xff]  }
   0x6   :  { %v573_v16 = vld [vmem:[%s733_s0 + $0x30] sm:$0xff]   ;;  %v574_v18 = vld [vmem:[%s733_s0 + $0x38] sm:$0xff]  }
   0x7   :  { %521 = vmatpush3.bf16.msra.mxu0 %v565_v1  ;;  %560 = vmatpush3.bf16.msra.mxu1 %v565_v1  ;;  %v581_v17 = vld [vmem:[%s733_s0 + $0x70] sm:$0xff]   ;;  %v582_v19 = vld [vmem:[%s733_s0 + $0x78] sm:$0xff]  }
   0x8   :  { %562 = vmatprep.subr.msk.bf16.mxu0 %vm195_vm1, %v566_v2  ;;  %563 = vmatprep.subr.msk.bf16.mxu1 %vm195_vm1, %v566_v2 }
   0xb   :  { %523 = vmatpush3.bf16.msra.mxu0 %v197_v4  ;;  %561 = vmatpush3.bf16.msra.mxu1 %v197_v4 }
   0xe   :  { %525 = vmatmul.mubr.msk.bf16.vlgmr.msra.gmra.mrb[0].mxu0 %vm146_vm0, %v568_v5  ;;  %541 = vmatmul.mubr.msk.bf16.vlgmr.msra.gmra.mrb[0].mxu1 %vm146_vm0, %v576_v8 }
   0xf   :  { %528 = vmatprep.mubr.msk.bf16.mxu0 %vm146_vm0, %v569_v6  ;;  %544 = vmatprep.mubr.msk.bf16.mxu1 %vm146_vm0, %v577_v9 }
  0x16   :  { %529 = vmatmul.mubr.msk.bf16.gmra.mrb[4].mxu0 %vm146_vm0, %v570_v10  ;;  %545 = vmatmul.mubr.msk.bf16.gmra.mrb[4].mxu1 %vm146_vm0, %v578_v11 }
  0x17   :  { %532 = vmatprep.mubr.msk.bf16.mxu0 %vm146_vm0, %v571_v12  ;;  %548 = vmatprep.mubr.msk.bf16.mxu1 %vm146_vm0, %v579_v13 }
  0x1e   :  { %533 = vmatmul.mubr.msk.bf16.gmra.mrb[8].mxu0 %vm146_vm0, %v572_v14  ;;  %549 = vmatmul.mubr.msk.bf16.gmra.mrb[8].mxu1 %vm146_vm0, %v580_v15 }
  0x1f   :  { %536 = vmatprep.mubr.msk.bf16.mxu0 %vm146_vm0, %v573_v16  ;;  %552 = vmatprep.mubr.msk.bf16.mxu1 %vm146_vm0, %v581_v17 }
  0x26   :  { %537 = vmatmul.mubr.msk.bf16.gmra.mrb[12].mxu0 %vm146_vm0, %v574_v18  ;;  %553 = vmatmul.mubr.msk.bf16.gmra.mrb[12].mxu1 %vm146_vm0, %v582_v19 }
  0xe1   :  { %v526_v20 = vpop.f32.mrb[0].mxu0  ;;  %v676_v21 = vpop.f32.mrb[0].mxu1 }
  0xe2   :  { %v233_v22 = vpop.f32.mrb[1].mxu0  ;;  %v678_v23 = vpop.f32.mrb[1].mxu1  ;;  %v394_v31 = vmul.f32 %v526_v20, %v526_v20 }
  0xe3   :  { %v527_v24 = vpop.f32.mrb[2].mxu0  ;;  %v680_v25 = vpop.f32.mrb[2].mxu1  ;;  %v392_v28 = vmul.f32 %v233_v22, %v233_v22 }
  0xe4   :  { %v236_v26 = vpop.f32.mrb[3].mxu0  ;;  %v682_v27 = vpop.f32.mrb[3].mxu1  ;;  %v395_v34 = vmul.f32 %v527_v24, %v527_v24 }
  0xe5   :  { %v360_v29 = vadd.f32 %v236_v26, %v233_v22  ;;  %v393_v30 = vmul.f32 %v236_v26, %v236_v26 }
  0xe7   :  { %v361_v32 = vadd.f32 %v526_v20, %v360_v29  ;;  %v424_v33 = vadd.f32 %v393_v30, %v392_v28 }
  0xe9   :  { %v425_v35 = vadd.f32 %v424_v33, %v394_v31  ;;  %v530_v36 = vpop.f32.mrb[4].mxu0  ;;  %v362_v37 = vadd.f32 %v527_v24, %v361_v32  ;;  %v684_v38 = vpop.f32.mrb[4].mxu1 }
  0xea   :  { %v249_v39 = vpop.f32.mrb[5].mxu0  ;;  %v686_v40 = vpop.f32.mrb[5].mxu1  ;;  %v398_v51 = vmul.f32 %v530_v36, %v530_v36 }
  0xeb   :  { %v363_v41 = vadd.f32 %v362_v37, %v249_v39  ;;  %v396_v42 = vmul.f32 %v249_v39, %v249_v39  ;;  %v426_v43 = vadd.f32 %v425_v35, %v395_v34  ;;  %v531_v44 = vpop.f32.mrb[6].mxu0  ;;  %v688_v45 = vpop.f32.mrb[6].mxu1  ;;  %v408_v37 = vmul.f32 %v678_v23, %v678_v23 }
  0xec   :  { %v252_v46 = vpop.f32.mrb[7].mxu0  ;;  %v690_v47 = vpop.f32.mrb[7].mxu1  ;;  %v399_v54 = vmul.f32 %v531_v44, %v531_v44 }
  0xed   :  { %v427_v48 = vadd.f32 %v426_v43, %v396_v42  ;;  %v364_v49 = vadd.f32 %v363_v41, %v252_v46  ;;  %v397_v50 = vmul.f32 %v252_v46, %v252_v46  ;;  %v410_v46 = vmul.f32 %v676_v21, %v676_v21 }
  0xef   :  { %v365_v52 = vadd.f32 %v530_v36, %v364_v49  ;;  %v428_v53 = vadd.f32 %v427_v48, %v397_v50  ;;  %v411_v50 = vmul.f32 %v680_v25, %v680_v25 }
  0xf1   :  { %v429_v55 = vadd.f32 %v428_v53, %v398_v51  ;;  %v534_v56 = vpop.f32.mrb[8].mxu0  ;;  %v366_v57 = vadd.f32 %v531_v44, %v365_v52  ;;  %v692_v58 = vpop.f32.mrb[8].mxu1  ;;  %v409_v44 = vmul.f32 %v682_v27, %v682_v27 }
  0xf2   :  { %v265_v59 = vpop.f32.mrb[9].mxu0  ;;  %v329_v60 = vpop.f32.mrb[9].mxu1  ;;  %v402_v7 = vmul.f32 %v534_v56, %v534_v56 }
  0xf3   :  { %v367_v61 = vadd.f32 %v366_v57, %v265_v59  ;;  %v400_v62 = vmul.f32 %v265_v59, %v265_v59  ;;  %v430_v63 = vadd.f32 %v429_v55, %v399_v54  ;;  %v535_v0 = vpop.f32.mrb[10].mxu0  ;;  %v694_v1 = vpop.f32.mrb[10].mxu1 }
  0xf4   :  { %v268_v2 = vpop.f32.mrb[11].mxu0  ;;  %v332_v3 = vpop.f32.mrb[11].mxu1  ;;  %v403_v10 = vmul.f32 %v535_v0, %v535_v0 }
  0xf5   :  { %v431_v4 = vadd.f32 %v430_v63, %v400_v62  ;;  %v368_v5 = vadd.f32 %v367_v61, %v268_v2  ;;  %v401_v6 = vmul.f32 %v268_v2, %v268_v2 }
  0xf7   :  { %v369_v8 = vadd.f32 %v534_v56, %v368_v5  ;;  %v432_v9 = vadd.f32 %v431_v4, %v401_v6  ;;  %v413_v56 = vmul.f32 %v690_v47, %v690_v47  ;;  %v417_v5 = vmul.f32 %v332_v3, %v332_v3 }
  0xf9   :  { %v433_v11 = vadd.f32 %v432_v9, %v402_v7  ;;  %v538_v12 = vpop.f32.mrb[12].mxu0  ;;  %v370_v13 = vadd.f32 %v535_v0, %v369_v8  ;;  %v554_v14 = vpop.f32.mrb[12].mxu1 }
  0xfa   :  { %v281_v15 = vpop.f32.mrb[13].mxu0  ;;  %v345_v16 = vpop.f32.mrb[13].mxu1  ;;  %v406_v31 = vmul.f32 %v538_v12, %v538_v12 }
  0xfb   :  { %v371_v17 = vadd.f32 %v370_v13, %v281_v15  ;;  %v404_v18 = vmul.f32 %v281_v15, %v281_v15  ;;  %v434_v19 = vadd.f32 %v433_v11, %v403_v10  ;;  %v539_v20 = vpop.f32.mrb[14].mxu0  ;;  %v555_v22 = vpop.f32.mrb[14].mxu1  ;;  %v420_v10 = vmul.f32 %v345_v16, %v345_v16 }
  0xfc   :  { %v284_v24 = vpop.f32.mrb[15].mxu0  ;;  %v348_v26 = vpop.f32.mrb[15].mxu1  ;;  %v407_v34 = vmul.f32 %v539_v20, %v539_v20  ;;  %v422_v15 = vmul.f32 %v554_v14, %v554_v14 }
  0xfd   :  { %v435_v28 = vadd.f32 %v434_v19, %v404_v18  ;;  %v372_v29 = vadd.f32 %v371_v17, %v284_v24  ;;  %v405_v30 = vmul.f32 %v284_v24, %v284_v24  ;;  %v421_v13 = vmul.f32 %v348_v26, %v348_v26 }
  0xfe   :  { %v423_v18 = vmul.f32 %v555_v22, %v555_v22 }
  0xff   :  { %v373_v32 = vadd.f32 %v538_v12, %v372_v29  ;;  %v436_v33 = vadd.f32 %v435_v28, %v405_v30 }
 0x101   :  { %v437_v35 = vadd.f32 %v436_v33, %v406_v31  ;;  %v374_v36 = vadd.f32 %v539_v20, %v373_v32 }
 0x103   :  { %v375_v39 = vadd.f32 %v374_v36, %v678_v23  ;;  %v438_v41 = vadd.f32 %v437_v35, %v407_v34  ;;  %v412_v23 = vmul.f32 %v686_v40, %v686_v40 }
 0x105   :  { %v439_v42 = vadd.f32 %v438_v41, %v408_v37  ;;  %v376_v43 = vadd.f32 %v375_v39, %v682_v27 }
 0x107   :  { %v377_v48 = vadd.f32 %v676_v21, %v376_v43  ;;  %v440_v49 = vadd.f32 %v439_v42, %v409_v44  ;;  %v414_v21 = vmul.f32 %v684_v38, %v684_v38 }
 0x109   :  { %v441_v51 = vadd.f32 %v440_v49, %v410_v46  ;;  %v378_v52 = vadd.f32 %v680_v25, %v377_v48  ;;  %v415_v25 = vmul.f32 %v688_v45, %v688_v45 }
 0x10b   :  { %v379_v53 = vadd.f32 %v378_v52, %v686_v40  ;;  %v442_v54 = vadd.f32 %v441_v51, %v411_v50  ;;  %v416_v40 = vmul.f32 %v329_v60, %v329_v60 }
 0x10d   :  { %v443_v55 = vadd.f32 %v442_v54, %v412_v23  ;;  %v380_v27 = vadd.f32 %v379_v53, %v690_v47  ;;  %v418_v47 = vmul.f32 %v692_v58, %v692_v58 }
 0x10f   :  { %v381_v57 = vadd.f32 %v684_v38, %v380_v27  ;;  %v444_v59 = vadd.f32 %v443_v55, %v413_v56  ;;  %v419_v38 = vmul.f32 %v694_v1, %v694_v1 }
 0x111   :  { %v445_v61 = vadd.f32 %v444_v59, %v414_v21  ;;  %v382_v62 = vadd.f32 %v688_v45, %v381_v57 }
 0x113   :  { %v383_v63 = vadd.f32 %v382_v62, %v329_v60  ;;  %v446_v0 = vadd.f32 %v445_v61, %v415_v25 }
 0x115   :  { %v447_v2 = vadd.f32 %v446_v0, %v416_v40  ;;  %v384_v4 = vadd.f32 %v383_v63, %v332_v3 }
 0x117   :  { %v385_v6 = vadd.f32 %v692_v58, %v384_v4  ;;  %v448_v7 = vadd.f32 %v447_v2, %v417_v5 }
 0x119   :  { %v449_v8 = vadd.f32 %v448_v7, %v418_v47  ;;  %v386_v9 = vadd.f32 %v694_v1, %v385_v6 }
 0x11b   :  { %v387_v45 = vadd.f32 %v386_v9, %v345_v16  ;;  %v450_v11 = vadd.f32 %v449_v8, %v419_v38 }
 0x11d   :  { %v451_v60 = vadd.f32 %v450_v11, %v420_v10  ;;  %v388_v12 = vadd.f32 %v387_v45, %v348_v26 }
 0x11f   :  { %v389_v3 = vadd.f32 %v554_v14, %v388_v12  ;;  %v452_v17 = vadd.f32 %v451_v60, %v421_v13 }
 0x121   :  { %v390_v19 = vadd.f32 %v555_v22, %v389_v3  ;;  %v453_v20 = vadd.f32 %v452_v17, %v422_v15 }
 0x123   :  { %391 = vst [vmem:[%s734_s2] sm:$0xff] %v390_v19  ;;  %v454_v58 = vadd.f32 %v453_v20, %v423_v18 }
 0x125   :  { %455 = vst [vmem:[%s735_s3] sm:$0xff] %v454_v58 }

// kernel: _lambda_.10
= control target key start
LH: loop header
LB: loop body
LE: loop exit
PB: predicated region body
PF: predicated region fallthrough
CT: control target
= control target key end

     0   :  { %vm150_vm0 = vcmask 293888   ;;  %vm199_vm1 = vcmask 1041408   ;;  %s899_s1 = inlined_call_operand.vmem [shape: bf16[36,128], index: 1, kind: input, shape index: {}]   ;;  %s900_s0 = inlined_call_operand.vmem [shape: bf16[256,36], index: 0, kind: input, shape index: {}]   ;;  %s901_s2 = inlined_call_operand.vmem [shape: f32[1,128], index: 2, kind: input, shape index: {}]   ;;  %s902_s3 = inlined_call_operand.vmem [shape: f32[1,128], index: 3, kind: input, shape index: {}]   ;;  %s903_s4 = inlined_call_operand.vmem [shape: f32[256,128], index: 4, kind: output, shape index: {}]  }
   0x1   :  { %v612_v0 = vld [vmem:[%s899_s1] sm:$0xff]   ;;  %v613_v1 = vld [vmem:[%s899_s1 + $0x8] sm:$0xff]   ;;  %v614_v2 = vld [vmem:[%s899_s1 + $0x10] ss:$0 sps:$4 sm:$0x33]  }
   0x2   :  { %566 = vmatprep.subr.bf16.mxu0 %v612_v0  ;;  %604 = vmatprep.subr.bf16.mxu1 %v612_v0  ;;  %v615_v3 = vld [vmem:[%s900_s0] sm:$0xff]   ;;  %v201_v5 = vsel %vm199_vm1, %v614_v2, 0  ;;  %v617_v6 = vld [vmem:[%s900_s0 + $0x8] sm:$0xff]   ;;  %v619_v8 = vld [vmem:[%s900_s0 + $0x10] sm:$0xff]  }
   0x3   :  { %567 = vmatpush3.bf16.msra.mxu0 %v612_v0  ;;  %607 = vmatpush3.bf16.msra.mxu1 %v612_v0  ;;  %v616_v4 = vld [vmem:[%s900_s0 + $0x40] sm:$0xff]   ;;  %v618_v7 = vld [vmem:[%s900_s0 + $0x48] sm:$0xff]   ;;  %v620_v9 = vld [vmem:[%s900_s0 + $0x50] sm:$0xff]  }
   0x4   :  { %568 = vmatprep.subr.bf16.mxu0 %v613_v1  ;;  %605 = vmatprep.subr.bf16.mxu1 %v613_v1  ;;  %v621_v10 = vld [vmem:[%s900_s0 + $0x18] sm:$0xff]   ;;  %v623_v12 = vld [vmem:[%s900_s0 + $0x20] sm:$0xff]   ;;  %v625_v14 = vld [vmem:[%s900_s0 + $0x28] sm:$0xff]  }
   0x5   :  { %572 = vmatprep.mubr.msk.bf16.mxu0 %vm150_vm0, %v615_v3  ;;  %588 = vmatprep.mubr.msk.bf16.mxu1 %vm150_vm0, %v616_v4  ;;  %v622_v11 = vld [vmem:[%s900_s0 + $0x58] sm:$0xff]   ;;  %v624_v13 = vld [vmem:[%s900_s0 + $0x60] sm:$0xff]   ;;  %v626_v15 = vld [vmem:[%s900_s0 + $0x68] sm:$0xff]  }
   0x6   :  { %v627_v16 = vld [vmem:[%s900_s0 + $0x30] sm:$0xff]   ;;  %v629_v18 = vld [vmem:[%s900_s0 + $0x38] sm:$0xff]   ;;  %v732_v20 = vld [vmem:[%s901_s2] ss:$0 sm:$0xff] }
   0x7   :  { %569 = vmatpush3.bf16.msra.mxu0 %v613_v1  ;;  %608 = vmatpush3.bf16.msra.mxu1 %v613_v1  ;;  %v628_v17 = vld [vmem:[%s900_s0 + $0x70] sm:$0xff]   ;;  %v630_v19 = vld [vmem:[%s900_s0 + $0x78] sm:$0xff]   ;;  %v737_v22 = vld [vmem:[%s902_s3] ss:$0 sm:$0xff] }
   0x8   :  { %610 = vmatprep.subr.msk.bf16.mxu0 %vm199_vm1, %v614_v2  ;;  %611 = vmatprep.subr.msk.bf16.mxu1 %vm199_vm1, %v614_v2 }
   0xb   :  { %571 = vmatpush3.bf16.msra.mxu0 %v201_v5  ;;  %609 = vmatpush3.bf16.msra.mxu1 %v201_v5 }
   0xe   :  { %573 = vmatmul.mubr.msk.bf16.vlgmr.msra.gmra.mrb[0].mxu0 %vm150_vm0, %v617_v6  ;;  %589 = vmatmul.mubr.msk.bf16.vlgmr.msra.gmra.mrb[0].mxu1 %vm150_vm0, %v618_v7 }
   0xf   :  { %576 = vmatprep.mubr.msk.bf16.mxu0 %vm150_vm0, %v619_v8  ;;  %592 = vmatprep.mubr.msk.bf16.mxu1 %vm150_vm0, %v620_v9 }
  0x16   :  { %577 = vmatmul.mubr.msk.bf16.gmra.mrb[4].mxu0 %vm150_vm0, %v621_v10  ;;  %593 = vmatmul.mubr.msk.bf16.gmra.mrb[4].mxu1 %vm150_vm0, %v622_v11 }
  0x17   :  { %580 = vmatprep.mubr.msk.bf16.mxu0 %vm150_vm0, %v623_v12  ;;  %596 = vmatprep.mubr.msk.bf16.mxu1 %vm150_vm0, %v624_v13 }
  0x1e   :  { %581 = vmatmul.mubr.msk.bf16.gmra.mrb[8].mxu0 %vm150_vm0, %v625_v14  ;;  %597 = vmatmul.mubr.msk.bf16.gmra.mrb[8].mxu1 %vm150_vm0, %v626_v15 }
  0x1f   :  { %584 = vmatprep.mubr.msk.bf16.mxu0 %vm150_vm0, %v627_v16  ;;  %600 = vmatprep.mubr.msk.bf16.mxu1 %vm150_vm0, %v628_v17 }
  0x26   :  { %585 = vmatmul.mubr.msk.bf16.gmra.mrb[12].mxu0 %vm150_vm0, %v629_v18  ;;  %601 = vmatmul.mubr.msk.bf16.gmra.mrb[12].mxu1 %vm150_vm0, %v630_v19 }
  0xe1   :  { %v574_v21 = vpop.f32.mrb[0].mxu0  ;;  %v590_v23 = vpop.f32.mrb[0].mxu1 }
  0xe2   :  { %v373_v24 = vmul.f32 %v574_v21, %v732_v20  ;;  %v389_v25 = vmul.f32 %v590_v23, %v732_v20  ;;  %v237_v26 = vpop.f32.mrb[1].mxu0  ;;  %v301_v27 = vpop.f32.mrb[1].mxu1 }
  0xe3   :  { %v371_v28 = vmul.f32 %v732_v20, %v237_v26  ;;  %v387_v29 = vmul.f32 %v732_v20, %v301_v27  ;;  %v575_v30 = vpop.f32.mrb[2].mxu0  ;;  %v591_v31 = vpop.f32.mrb[2].mxu1 }
  0xe4   :  { %v412_v32 = vadd.f32 %v737_v22, %v373_v24  ;;  %v428_v33 = vadd.f32 %v737_v22, %v389_v25  ;;  %v374_v34 = vmul.f32 %v575_v30, %v732_v20  ;;  %v390_v35 = vmul.f32 %v591_v31, %v732_v20  ;;  %v240_v36 = vpop.f32.mrb[3].mxu0  ;;  %v304_v37 = vpop.f32.mrb[3].mxu1 }
  0xe5   :  { %v410_v38 = vadd.f32 %v737_v22, %v371_v28  ;;  %v426_v39 = vadd.f32 %v737_v22, %v387_v29  ;;  %v372_v40 = vmul.f32 %v732_v20, %v240_v36  ;;  %v388_v41 = vmul.f32 %v732_v20, %v304_v37 }
  0xe6   :  { %v444_v42 = vmax.f32 %v412_v32, 0.0  ;;  %v460_v43 = vmax.f32 %v428_v33, 0.0  ;;  %v413_v44 = vadd.f32 %v737_v22, %v374_v34  ;;  %v429_v45 = vadd.f32 %v737_v22, %v390_v35 }
  0xe7   :  { %v442_v46 = vmax.f32 %v410_v38, 0.0  ;;  %v458_v47 = vmax.f32 %v426_v39, 0.0  ;;  %v411_v48 = vadd.f32 %v737_v22, %v372_v40  ;;  %v427_v49 = vadd.f32 %v737_v22, %v388_v41 }
  0xe8   :  { %476 = vst [vmem:[%s903_s4 + $0x10] sm:$0xff] %v444_v42  ;;  %492 = vst [vmem:[%s903_s4 + $0x90] sm:$0xff] %v460_v43  ;;  %v445_v50 = vmax.f32 %v413_v44, 0.0  ;;  %v461_v51 = vmax.f32 %v429_v45, 0.0 }
  0xe9   :  { %474 = vst [vmem:[%s903_s4] sm:$0xff] %v442_v46  ;;  %490 = vst [vmem:[%s903_s4 + $0x80] sm:$0xff] %v458_v47  ;;  %v443_v52 = vmax.f32 %v411_v48, 0.0  ;;  %v459_v53 = vmax.f32 %v427_v49, 0.0  ;;  %v578_v54 = vpop.f32.mrb[4].mxu0  ;;  %v594_v55 = vpop.f32.mrb[4].mxu1 }
  0xea   :  { %477 = vst [vmem:[%s903_s4 + $0x18] sm:$0xff] %v445_v50  ;;  %493 = vst [vmem:[%s903_s4 + $0x98] sm:$0xff] %v461_v51  ;;  %v377_v56 = vmul.f32 %v578_v54, %v732_v20  ;;  %v393_v57 = vmul.f32 %v594_v55, %v732_v20  ;;  %v253_v58 = vpop.f32.mrb[5].mxu0  ;;  %v317_v59 = vpop.f32.mrb[5].mxu1 }
  0xeb   :  { %475 = vst [vmem:[%s903_s4 + $0x8] sm:$0xff] %v443_v52  ;;  %491 = vst [vmem:[%s903_s4 + $0x88] sm:$0xff] %v459_v53  ;;  %v375_v60 = vmul.f32 %v732_v20, %v253_v58  ;;  %v391_v61 = vmul.f32 %v732_v20, %v317_v59  ;;  %v579_v62 = vpop.f32.mrb[6].mxu0  ;;  %v595_v63 = vpop.f32.mrb[6].mxu1 }
  0xec   :  { %v416_v0 = vadd.f32 %v737_v22, %v377_v56  ;;  %v432_v1 = vadd.f32 %v737_v22, %v393_v57  ;;  %v378_v2 = vmul.f32 %v579_v62, %v732_v20  ;;  %v394_v3 = vmul.f32 %v595_v63, %v732_v20  ;;  %v256_v4 = vpop.f32.mrb[7].mxu0  ;;  %v320_v5 = vpop.f32.mrb[7].mxu1 }
  0xed   :  { %v414_v6 = vadd.f32 %v737_v22, %v375_v60  ;;  %v430_v7 = vadd.f32 %v737_v22, %v391_v61  ;;  %v376_v8 = vmul.f32 %v732_v20, %v256_v4  ;;  %v392_v9 = vmul.f32 %v732_v20, %v320_v5 }
  0xee   :  { %v448_v10 = vmax.f32 %v416_v0, 0.0  ;;  %v464_v11 = vmax.f32 %v432_v1, 0.0  ;;  %v417_v12 = vadd.f32 %v737_v22, %v378_v2  ;;  %v433_v13 = vadd.f32 %v737_v22, %v394_v3 }
  0xef   :  { %v446_v14 = vmax.f32 %v414_v6, 0.0  ;;  %v462_v15 = vmax.f32 %v430_v7, 0.0  ;;  %v415_v16 = vadd.f32 %v737_v22, %v376_v8  ;;  %v431_v17 = vadd.f32 %v737_v22, %v392_v9 }
  0xf0   :  { %480 = vst [vmem:[%s903_s4 + $0x30] sm:$0xff] %v448_v10  ;;  %496 = vst [vmem:[%s903_s4 + $0xb0] sm:$0xff] %v464_v11  ;;  %v449_v18 = vmax.f32 %v417_v12, 0.0  ;;  %v465_v19 = vmax.f32 %v433_v13, 0.0 }
  0xf1   :  { %478 = vst [vmem:[%s903_s4 + $0x20] sm:$0xff] %v446_v14  ;;  %494 = vst [vmem:[%s903_s4 + $0xa0] sm:$0xff] %v462_v15  ;;  %v447_v21 = vmax.f32 %v415_v16, 0.0  ;;  %v463_v23 = vmax.f32 %v431_v17, 0.0  ;;  %v582_v24 = vpop.f32.mrb[8].mxu0  ;;  %v598_v25 = vpop.f32.mrb[8].mxu1 }
  0xf2   :  { %481 = vst [vmem:[%s903_s4 + $0x38] sm:$0xff] %v449_v18  ;;  %497 = vst [vmem:[%s903_s4 + $0xb8] sm:$0xff] %v465_v19  ;;  %v381_v26 = vmul.f32 %v582_v24, %v732_v20  ;;  %v397_v27 = vmul.f32 %v598_v25, %v732_v20  ;;  %v269_v28 = vpop.f32.mrb[9].mxu0  ;;  %v333_v29 = vpop.f32.mrb[9].mxu1 }
  0xf3   :  { %479 = vst [vmem:[%s903_s4 + $0x28] sm:$0xff] %v447_v21  ;;  %495 = vst [vmem:[%s903_s4 + $0xa8] sm:$0xff] %v463_v23  ;;  %v379_v30 = vmul.f32 %v732_v20, %v269_v28  ;;  %v395_v31 = vmul.f32 %v732_v20, %v333_v29  ;;  %v583_v32 = vpop.f32.mrb[10].mxu0  ;;  %v599_v33 = vpop.f32.mrb[10].mxu1 }
  0xf4   :  { %v420_v34 = vadd.f32 %v737_v22, %v381_v26  ;;  %v436_v35 = vadd.f32 %v737_v22, %v397_v27  ;;  %v382_v36 = vmul.f32 %v583_v32, %v732_v20  ;;  %v398_v37 = vmul.f32 %v599_v33, %v732_v20  ;;  %v272_v38 = vpop.f32.mrb[11].mxu0  ;;  %v336_v39 = vpop.f32.mrb[11].mxu1 }
  0xf5   :  { %v418_v40 = vadd.f32 %v737_v22, %v379_v30  ;;  %v434_v41 = vadd.f32 %v737_v22, %v395_v31  ;;  %v380_v42 = vmul.f32 %v732_v20, %v272_v38  ;;  %v396_v43 = vmul.f32 %v732_v20, %v336_v39 }
  0xf6   :  { %v452_v44 = vmax.f32 %v420_v34, 0.0  ;;  %v468_v45 = vmax.f32 %v436_v35, 0.0  ;;  %v421_v46 = vadd.f32 %v737_v22, %v382_v36  ;;  %v437_v47 = vadd.f32 %v737_v22, %v398_v37 }
  0xf7   :  { %v450_v48 = vmax.f32 %v418_v40, 0.0  ;;  %v466_v49 = vmax.f32 %v434_v41, 0.0  ;;  %v419_v50 = vadd.f32 %v737_v22, %v380_v42  ;;  %v435_v51 = vadd.f32 %v737_v22, %v396_v43 }
  0xf8   :  { %484 = vst [vmem:[%s903_s4 + $0x50] sm:$0xff] %v452_v44  ;;  %500 = vst [vmem:[%s903_s4 + $0xd0] sm:$0xff] %v468_v45  ;;  %v453_v52 = vmax.f32 %v421_v46, 0.0  ;;  %v469_v53 = vmax.f32 %v437_v47, 0.0 }
  0xf9   :  { %482 = vst [vmem:[%s903_s4 + $0x40] sm:$0xff] %v450_v48  ;;  %498 = vst [vmem:[%s903_s4 + $0xc0] sm:$0xff] %v466_v49  ;;  %v451_v54 = vmax.f32 %v419_v50, 0.0  ;;  %v467_v55 = vmax.f32 %v435_v51, 0.0  ;;  %v586_v56 = vpop.f32.mrb[12].mxu0  ;;  %v602_v57 = vpop.f32.mrb[12].mxu1 }
  0xfa   :  { %485 = vst [vmem:[%s903_s4 + $0x58] sm:$0xff] %v453_v52  ;;  %501 = vst [vmem:[%s903_s4 + $0xd8] sm:$0xff] %v469_v53  ;;  %v385_v58 = vmul.f32 %v586_v56, %v732_v20  ;;  %v401_v59 = vmul.f32 %v602_v57, %v732_v20  ;;  %v285_v60 = vpop.f32.mrb[13].mxu0  ;;  %v349_v61 = vpop.f32.mrb[13].mxu1 }
  0xfb   :  { %483 = vst [vmem:[%s903_s4 + $0x48] sm:$0xff] %v451_v54  ;;  %499 = vst [vmem:[%s903_s4 + $0xc8] sm:$0xff] %v467_v55  ;;  %v383_v62 = vmul.f32 %v732_v20, %v285_v60  ;;  %v399_v63 = vmul.f32 %v732_v20, %v349_v61  ;;  %v587_v0 = vpop.f32.mrb[14].mxu0  ;;  %v603_v1 = vpop.f32.mrb[14].mxu1 }
  0xfc   :  { %v424_v2 = vadd.f32 %v737_v22, %v385_v58  ;;  %v440_v3 = vadd.f32 %v737_v22, %v401_v59  ;;  %v386_v4 = vmul.f32 %v587_v0, %v732_v20  ;;  %v402_v5 = vmul.f32 %v603_v1, %v732_v20  ;;  %v288_v6 = vpop.f32.mrb[15].mxu0  ;;  %v352_v7 = vpop.f32.mrb[15].mxu1 }
  0xfd   :  { %v422_v8 = vadd.f32 %v737_v22, %v383_v62  ;;  %v438_v9 = vadd.f32 %v737_v22, %v399_v63  ;;  %v384_v10 = vmul.f32 %v732_v20, %v288_v6  ;;  %v400_v11 = vmul.f32 %v732_v20, %v352_v7 }
  0xfe   :  { %v456_v12 = vmax.f32 %v424_v2, 0.0  ;;  %v472_v13 = vmax.f32 %v440_v3, 0.0  ;;  %v425_v14 = vadd.f32 %v737_v22, %v386_v4  ;;  %v441_v15 = vadd.f32 %v737_v22, %v402_v5 }
  0xff   :  { %v454_v16 = vmax.f32 %v422_v8, 0.0  ;;  %v470_v17 = vmax.f32 %v438_v9, 0.0  ;;  %v423_v18 = vadd.f32 %v737_v22, %v384_v10  ;;  %v439_v19 = vadd.f32 %v737_v22, %v400_v11 }
 0x100   :  { %488 = vst [vmem:[%s903_s4 + $0x70] sm:$0xff] %v456_v12  ;;  %504 = vst [vmem:[%s903_s4 + $0xf0] sm:$0xff] %v472_v13  ;;  %v457_v20 = vmax.f32 %v425_v14, 0.0  ;;  %v473_v21 = vmax.f32 %v441_v15, 0.0 }
 0x101   :  { %486 = vst [vmem:[%s903_s4 + $0x60] sm:$0xff] %v454_v16  ;;  %502 = vst [vmem:[%s903_s4 + $0xe0] sm:$0xff] %v470_v17  ;;  %v455_v23 = vmax.f32 %v423_v18, 0.0  ;;  %v471_v22 = vmax.f32 %v439_v19, 0.0 }
 0x102   :  { %489 = vst [vmem:[%s903_s4 + $0x78] sm:$0xff] %v457_v20  ;;  %505 = vst [vmem:[%s903_s4 + $0xf8] sm:$0xff] %v473_v21 }
 0x103   :  { %487 = vst [vmem:[%s903_s4 + $0x68] sm:$0xff] %v455_v23  ;;  %503 = vst [vmem:[%s903_s4 + $0xe8] sm:$0xff] %v471_v22 }

// kernel: _lambda_.11
= control target key start
LH: loop header
LB: loop body
LE: loop exit
PB: predicated region body
PF: predicated region fallthrough
CT: control target
= control target key end

     0   :  { %vm78_vm0 = vcmask 588800   ;;  %vm91_vm1 = vcmask 1043456   ;;  %s310_s1 = inlined_call_operand.vmem [shape: bf16[72,128], index: 1, kind: input, shape index: {}]   ;;  %s311_s0 = inlined_call_operand.vmem [shape: bf16[64,72], index: 0, kind: input, shape index: {}]   ;;  %s312_s2 = inlined_call_operand.vmem [shape: f32[8,128], index: 2, kind: output, shape index: {0}]   ;;  %s313_s3 = inlined_call_operand.vmem [shape: f32[8,128], index: 3, kind: output, shape index: {1}]  }
   0x1   :  { %v244_v0 = vld [vmem:[%s310_s1] sm:$0xff]   ;;  %v245_v1 = vld [vmem:[%s310_s1 + $0x8] sm:$0xff]   ;;  %v246_v2 = vld [vmem:[%s310_s1 + $0x10] sm:$0xff]  }
   0x2   :  { %214 = vmatprep.subr.bf16.mxu0 %v244_v0  ;;  %232 = vmatprep.subr.bf16.mxu1 %v244_v0  ;;  %v249_v3 = vld [vmem:[%s311_s0] sm:$0xff]   ;;  %v251_v4 = vld [vmem:[%s311_s0 + $0x10] sm:$0xff]   ;;  %v247_v5 = vld [vmem:[%s310_s1 + $0x18] sm:$0xff]  }
   0x3   :  { %215 = vmatpush3.bf16.msra.mxu0 %v244_v0  ;;  %237 = vmatpush3.bf16.msra.mxu1 %v244_v0  ;;  %v248_v6 = vld [vmem:[%s310_s1 + $0x20] ss:$0 sps:$4 sm:$0xff]   ;;  %v250_v8 = vld [vmem:[%s311_s0 + $0x8] sm:$0xff]   ;;  %v252_v9 = vld [vmem:[%s311_s0 + $0x18] sm:$0xff]  }
   0x4   :  { %216 = vmatprep.subr.bf16.mxu0 %v245_v1  ;;  %233 = vmatprep.subr.bf16.mxu1 %v245_v1  ;;  %v93_v7 = vsel %vm91_vm1, %v248_v6, 0 }
   0x5   :  { %224 = vmatprep.mubr.msk.bf16.mxu0 %vm78_vm0, %v249_v3  ;;  %228 = vmatprep.mubr.msk.bf16.mxu1 %vm78_vm0, %v251_v4 }
   0x7   :  { %217 = vmatpush3.bf16.msra.mxu0 %v245_v1  ;;  %238 = vmatpush3.bf16.msra.mxu1 %v245_v1 }
   0x8   :  { %218 = vmatprep.subr.bf16.mxu0 %v246_v2  ;;  %234 = vmatprep.subr.bf16.mxu1 %v246_v2 }
   0xb   :  { %219 = vmatpush3.bf16.msra.mxu0 %v246_v2  ;;  %239 = vmatpush3.bf16.msra.mxu1 %v246_v2 }
   0xc   :  { %220 = vmatprep.subr.bf16.mxu0 %v247_v5  ;;  %235 = vmatprep.subr.bf16.mxu1 %v247_v5 }
   0xf   :  { %221 = vmatpush3.bf16.msra.mxu0 %v247_v5  ;;  %240 = vmatpush3.bf16.msra.mxu1 %v247_v5 }
  0x10   :  { %242 = vmatprep.subr.msk.bf16.mxu0 %vm91_vm1, %v248_v6  ;;  %243 = vmatprep.subr.msk.bf16.mxu1 %vm91_vm1, %v248_v6 }
  0x13   :  { %223 = vmatpush3.bf16.msra.mxu0 %v93_v7  ;;  %241 = vmatpush3.bf16.msra.mxu1 %v93_v7 }
  0x16   :  { %225 = vmatmul.mubr.msk.bf16.vlgmr.msra.gmra.mrb[0].mxu0 %vm78_vm0, %v250_v8  ;;  %229 = vmatmul.mubr.msk.bf16.vlgmr.msra.gmra.mrb[0].mxu1 %vm78_vm0, %v252_v9 }
  0xe9   :  { %v226_v10 = vpop.f32.mrb[0].mxu0  ;;  %v230_v11 = vpop.f32.mrb[0].mxu1 }
  0xea   :  { %v129_v12 = vpop.f32.mrb[1].mxu0  ;;  %v145_v13 = vpop.f32.mrb[1].mxu1  ;;  %v170_v21 = vmul.f32 %v226_v10, %v226_v10  ;;  %v174_v33 = vmul.f32 %v230_v11, %v230_v11 }
  0xeb   :  { %v227_v14 = vpop.f32.mrb[2].mxu0  ;;  %v231_v15 = vpop.f32.mrb[2].mxu1  ;;  %v168_v18 = vmul.f32 %v129_v12, %v129_v12  ;;  %v172_v27 = vmul.f32 %v145_v13, %v145_v13 }
  0xec   :  { %v132_v16 = vpop.f32.mrb[3].mxu0  ;;  %v148_v17 = vpop.f32.mrb[3].mxu1  ;;  %v171_v24 = vmul.f32 %v227_v14, %v227_v14  ;;  %v175_v36 = vmul.f32 %v231_v15, %v231_v15 }
  0xed   :  { %v160_v19 = vadd.f32 %v132_v16, %v129_v12  ;;  %v169_v20 = vmul.f32 %v132_v16, %v132_v16  ;;  %v173_v32 = vmul.f32 %v148_v17, %v148_v17 }
  0xef   :  { %v161_v22 = vadd.f32 %v226_v10, %v160_v19  ;;  %v176_v23 = vadd.f32 %v169_v20, %v168_v18 }
  0xf1   :  { %v177_v25 = vadd.f32 %v176_v23, %v170_v21  ;;  %v162_v26 = vadd.f32 %v227_v14, %v161_v22 }
  0xf3   :  { %v163_v28 = vadd.f32 %v162_v26, %v145_v13  ;;  %v178_v29 = vadd.f32 %v177_v25, %v171_v24 }
  0xf5   :  { %v179_v30 = vadd.f32 %v178_v29, %v172_v27  ;;  %v164_v31 = vadd.f32 %v163_v28, %v148_v17 }
  0xf7   :  { %v165_v34 = vadd.f32 %v230_v11, %v164_v31  ;;  %v180_v35 = vadd.f32 %v179_v30, %v173_v32 }
  0xf9   :  { %v166_v37 = vadd.f32 %v231_v15, %v165_v34  ;;  %v181_v38 = vadd.f32 %v180_v35, %v174_v33 }
  0xfb   :  { %167 = vst [vmem:[%s312_s2] sm:$0xff] %v166_v37  ;;  %v182_v39 = vadd.f32 %v181_v38, %v175_v36 }
  0xfd   :  { %183 = vst [vmem:[%s313_s3] sm:$0xff] %v182_v39 }

// kernel: _lambda_.12
= control target key start
LH: loop header
LB: loop body
LE: loop exit
PB: predicated region body
PF: predicated region fallthrough
CT: control target
= control target key end

     0   :  { %vm82_vm0 = vcmask 588800   ;;  %vm95_vm1 = vcmask 1043456   ;;  %s363_s1 = inlined_call_operand.vmem [shape: bf16[72,128], index: 1, kind: input, shape index: {}]   ;;  %s364_s0 = inlined_call_operand.vmem [shape: bf16[64,72], index: 0, kind: input, shape index: {}]   ;;  %s365_s2 = inlined_call_operand.vmem [shape: f32[1,128], index: 2, kind: input, shape index: {}]   ;;  %s366_s3 = inlined_call_operand.vmem [shape: f32[1,128], index: 3, kind: input, shape index: {}]   ;;  %s367_s4 = inlined_call_operand.vmem [shape: f32[64,128], index: 4, kind: output, shape index: {}]  }
   0x1   :  { %v268_v0 = vld [vmem:[%s363_s1] sm:$0xff]   ;;  %v269_v1 = vld [vmem:[%s363_s1 + $0x8] sm:$0xff]   ;;  %v270_v2 = vld [vmem:[%s363_s1 + $0x10] sm:$0xff]  }
   0x2   :  { %238 = vmatprep.subr.bf16.mxu0 %v268_v0  ;;  %256 = vmatprep.subr.bf16.mxu1 %v268_v0  ;;  %v273_v3 = vld [vmem:[%s364_s0] sm:$0xff]   ;;  %v274_v4 = vld [vmem:[%s364_s0 + $0x10] sm:$0xff]   ;;  %v271_v5 = vld [vmem:[%s363_s1 + $0x18] sm:$0xff]  }
   0x3   :  { %239 = vmatpush3.bf16.msra.mxu0 %v268_v0  ;;  %261 = vmatpush3.bf16.msra.mxu1 %v268_v0  ;;  %v272_v6 = vld [vmem:[%s363_s1 + $0x20] ss:$0 sps:$4 sm:$0xff]   ;;  %v275_v8 = vld [vmem:[%s364_s0 + $0x8] sm:$0xff]   ;;  %v276_v9 = vld [vmem:[%s364_s0 + $0x18] sm:$0xff]  }
   0x4   :  { %240 = vmatprep.subr.bf16.mxu0 %v269_v1  ;;  %257 = vmatprep.subr.bf16.mxu1 %v269_v1  ;;  %v97_v7 = vsel %vm95_vm1, %v272_v6, 0  ;;  %v227_v10 = vld [vmem:[%s365_s2] ss:$0 sm:$0xff] }
   0x5   :  { %248 = vmatprep.mubr.msk.bf16.mxu0 %vm82_vm0, %v273_v3  ;;  %252 = vmatprep.mubr.msk.bf16.mxu1 %vm82_vm0, %v274_v4  ;;  %v228_v12 = vld [vmem:[%s366_s3] ss:$0 sm:$0xff] }
   0x7   :  { %241 = vmatpush3.bf16.msra.mxu0 %v269_v1  ;;  %262 = vmatpush3.bf16.msra.mxu1 %v269_v1 }
   0x8   :  { %242 = vmatprep.subr.bf16.mxu0 %v270_v2  ;;  %258 = vmatprep.subr.bf16.mxu1 %v270_v2 }
   0xb   :  { %243 = vmatpush3.bf16.msra.mxu0 %v270_v2  ;;  %263 = vmatpush3.bf16.msra.mxu1 %v270_v2 }
   0xc   :  { %244 = vmatprep.subr.bf16.mxu0 %v271_v5  ;;  %259 = vmatprep.subr.bf16.mxu1 %v271_v5 }
   0xf   :  { %245 = vmatpush3.bf16.msra.mxu0 %v271_v5  ;;  %264 = vmatpush3.bf16.msra.mxu1 %v271_v5 }
  0x10   :  { %266 = vmatprep.subr.msk.bf16.mxu0 %vm95_vm1, %v272_v6  ;;  %267 = vmatprep.subr.msk.bf16.mxu1 %vm95_vm1, %v272_v6 }
  0x13   :  { %247 = vmatpush3.bf16.msra.mxu0 %v97_v7  ;;  %265 = vmatpush3.bf16.msra.mxu1 %v97_v7 }
  0x16   :  { %249 = vmatmul.mubr.msk.bf16.vlgmr.msra.gmra.mrb[0].mxu0 %vm82_vm0, %v275_v8  ;;  %253 = vmatmul.mubr.msk.bf16.vlgmr.msra.gmra.mrb[0].mxu1 %vm82_vm0, %v276_v9 }
  0xe9   :  { %v250_v11 = vpop.f32.mrb[0].mxu0  ;;  %v254_v13 = vpop.f32.mrb[0].mxu1 }
  0xea   :  { %v173_v14 = vmul.f32 %v250_v11, %v227_v10  ;;  %v177_v15 = vmul.f32 %v254_v13, %v227_v10  ;;  %v133_v16 = vpop.f32.mrb[1].mxu0  ;;  %v149_v17 = vpop.f32.mrb[1].mxu1 }
  0xeb   :  { %v171_v18 = vmul.f32 %v227_v10, %v133_v16  ;;  %v175_v19 = vmul.f32 %v227_v10, %v149_v17  ;;  %v251_v20 = vpop.f32.mrb[2].mxu0  ;;  %v255_v21 = vpop.f32.mrb[2].mxu1 }
  0xec   :  { %v188_v22 = vadd.f32 %v228_v12, %v173_v14  ;;  %v192_v23 = vadd.f32 %v228_v12, %v177_v15  ;;  %v174_v24 = vmul.f32 %v251_v20, %v227_v10  ;;  %v178_v25 = vmul.f32 %v255_v21, %v227_v10  ;;  %v136_v26 = vpop.f32.mrb[3].mxu0  ;;  %v152_v27 = vpop.f32.mrb[3].mxu1 }
  0xed   :  { %v186_v28 = vadd.f32 %v228_v12, %v171_v18  ;;  %v190_v29 = vadd.f32 %v228_v12, %v175_v19  ;;  %v172_v30 = vmul.f32 %v227_v10, %v136_v26  ;;  %v176_v31 = vmul.f32 %v227_v10, %v152_v27 }
  0xee   :  { %v196_v32 = vmax.f32 %v188_v22, 0.0  ;;  %v200_v33 = vmax.f32 %v192_v23, 0.0  ;;  %v189_v34 = vadd.f32 %v228_v12, %v174_v24  ;;  %v193_v35 = vadd.f32 %v228_v12, %v178_v25 }
  0xef   :  { %v194_v36 = vmax.f32 %v186_v28, 0.0  ;;  %v198_v37 = vmax.f32 %v190_v29, 0.0  ;;  %v187_v38 = vadd.f32 %v228_v12, %v172_v30  ;;  %v191_v39 = vadd.f32 %v228_v12, %v176_v31 }
  0xf0   :  { %204 = vst [vmem:[%s367_s4 + $0x10] sm:$0xff] %v196_v32  ;;  %208 = vst [vmem:[%s367_s4 + $0x30] sm:$0xff] %v200_v33  ;;  %v197_v40 = vmax.f32 %v189_v34, 0.0  ;;  %v201_v41 = vmax.f32 %v193_v35, 0.0 }
  0xf1   :  { %202 = vst [vmem:[%s367_s4] sm:$0xff] %v194_v36  ;;  %206 = vst [vmem:[%s367_s4 + $0x20] sm:$0xff] %v198_v37  ;;  %v195_v42 = vmax.f32 %v187_v38, 0.0  ;;  %v199_v43 = vmax.f32 %v191_v39, 0.0 }
  0xf2   :  { %205 = vst [vmem:[%s367_s4 + $0x18] sm:$0xff] %v197_v40  ;;  %209 = vst [vmem:[%s367_s4 + $0x38] sm:$0xff] %v201_v41 }
  0xf3   :  { %203 = vst [vmem:[%s367_s4 + $0x8] sm:$0xff] %v195_v42  ;;  %207 = vst [vmem:[%s367_s4 + $0x28] sm:$0xff] %v199_v43 }

// kernel: _lambda_.13
= control target key start
LH: loop header
LB: loop body
LE: loop exit
PB: predicated region body
PF: predicated region fallthrough
CT: control target
= control target key end

     0   :  { %v2749_v1 = vmov 0   ;;  %vm151_vm0 = vcmask 523264   ;;  %v3407_v50 = vmov 0.0|0.0   ;;  %vm2751_vm1 = vmmov 0   ;;  %s3399_s1 = inlined_call_operand.vmem [shape: bf16[64,384], index: 1, kind: input, shape index: {}]   ;;  %s3400_s0 = inlined_call_operand.vmem [shape: bf16[64,64], index: 0, kind: input, shape index: {}]   ;;  %s3401_s3 = inlined_call_operand.vmem [shape: f32[128,384], index: 3, kind: input, shape index: {}]   ;;  %s3402_s2 = inlined_call_operand.vmem [shape: f32[1,384], index: 2, kind: input, shape index: {}]   ;;  %s3403_s4 = inlined_call_operand.vmem [shape: f32[1,128], index: 4, kind: input, shape index: {}]   ;;  %s3404_s5 = inlined_call_operand.vmem [shape: f32[8,128], index: 5, kind: output, shape index: {}]  }
   0x1   :  { %v2649_v0 = vld [vmem:[%s3399_s1 + $0x4] ss:$12 sps:$4 sm:$0xff]   ;;  %196 = vmatprep.mubr.bf16.mxu0 %v2749_v1  ;;  %v2651_v2 = vld [vmem:[%s3399_s1] ss:$12 sps:$4 sm:$0xff]   ;;  %v2652_v3 = vld [vmem:[%s3399_s1 + $0x1c] ss:$12 sps:$4 sm:$0xff]  }
   0x2   :  { %164 = vmatprep.subr.bf16.mxu0 %v2649_v0  ;;  %v2654_v4 = vld [vmem:[%s3399_s1 + $0x18] ss:$12 sps:$4 sm:$0xff]   ;;  %v2655_v5 = vld [vmem:[%s3399_s1 + $0x34] ss:$12 sps:$4 sm:$0xff]   ;;  %v2657_v7 = vld [vmem:[%s3399_s1 + $0x30] ss:$12 sps:$4 sm:$0xff]  }
   0x3   :  { %165 = vmatpush1.bf16.msra.mxu0 %v2651_v2  ;;  %v2661_v6 = vld [vmem:[%s3400_s0] sm:$0xff]   ;;  %v2658_v8 = vld [vmem:[%s3399_s1 + $0x4c] ss:$12 sps:$4 sm:$0xff]   ;;  %v2660_v11 = vld [vmem:[%s3399_s1 + $0x48] ss:$12 sps:$4 sm:$0xff]  }
   0x4   :  { %166 = vmatprep.subr.bf16.mxu0 %v2652_v3  ;;  %v327_v9 = vld [vmem:[%s3401_s3 + $0x8] sm:$0xff]  ;;  %1909 = vmatprep.mubr.msk.bf16.mxu1 %vm151_vm0, %v2661_v6  ;;  %v330_v10 = vld [vmem:[%s3401_s3 + $0x20] sm:$0xff]  ;;  %v329_v15 = vld [vmem:[%s3401_s3 + $0x18] sm:$0xff] }
   0x5   :  { %v326_v12 = vld [vmem:[%s3401_s3] sm:$0xff]  ;;  %v2663_v13 = vld [vmem:[%s3399_s1 + $0x8] ss:$12 sps:$4 sm:$0xff]   ;;  %v2824_v14 = vpack.c.bf16 %v330_v10, %v327_v9  ;;  %v333_v16 = vld [vmem:[%s3401_s3 + $0x38] sm:$0xff]  ;;  %v3405_v9 = vmov 0.0  }
   0x6   :  { %v336_v17 = vld [vmem:[%s3401_s3 + $0x50] sm:$0xff]  ;;  %1901 = vmatprep.subr.bf16.mxu1 %v2663_v13  ;;  %v2664_v18 = vld [vmem:[%s3399_s1 + $0x20] ss:$12 sps:$4 sm:$0xff]   ;;  %v2838_v19 = vpack.c.bf16 %v329_v15, %v326_v12  ;;  %v2666_v25 = vld [vmem:[%s3399_s1 + $0x38] ss:$12 sps:$4 sm:$0xff]  }
   0x7   :  { %167 = vmatpush1.bf16.msra.mxu0 %v2654_v4  ;;  %1902 = vmatpush3.bf16.msra.mxu1 %v2663_v13  ;;  %v332_v20 = vld [vmem:[%s3401_s3 + $0x30] sm:$0xff]  ;;  %v2844_v21 = vpack.c.bf16 %v336_v17, %v333_v16  ;;  %v335_v22 = vld [vmem:[%s3401_s3 + $0x48] sm:$0xff]  ;;  %v342_v24 = vld [vmem:[%s3401_s3 + $0x80] sm:$0xff] }
   0x8   :  { %168 = vmatprep.subr.bf16.mxu0 %v2655_v5  ;;  %1903 = vmatprep.subr.bf16.mxu1 %v2664_v18  ;;  %v339_v23 = vld [vmem:[%s3401_s3 + $0x68] sm:$0xff]  ;;  %v2860_v26 = vpack.c.bf16 %v335_v22, %v332_v20  ;;  %v338_v27 = vld [vmem:[%s3401_s3 + $0x60] sm:$0xff]  ;;  %v2667_v28 = vld [vmem:[%s3399_s1 + $0x50] ss:$12 sps:$4 sm:$0xff]  }
   0x9   :  { %v2870_v29 = vpack.c.bf16 %v342_v24, %v339_v23  ;;  %v341_v30 = vld [vmem:[%s3401_s3 + $0x78] sm:$0xff]  ;;  %v348_v32 = vld [vmem:[%s3401_s3 + $0xb0] sm:$0xff]  ;;  %v2662_v33 = vld [vmem:[%s3400_s0 + $0x8] sm:$0xff]  }
   0xa   :  { %v345_v31 = vld [vmem:[%s3401_s3 + $0x98] sm:$0xff]  ;;  %v2885_v34 = vpack.c.bf16 %v341_v30, %v338_v27  ;;  %v328_v35 = vld [vmem:[%s3401_s3 + $0x10] sm:$0xff]  ;;  %v331_v36 = vld [vmem:[%s3401_s3 + $0x28] sm:$0xff] }
   0xb   :  { %169 = vmatpush1.bf16.msra.mxu0 %v2657_v7  ;;  %1904 = vmatpush3.bf16.msra.mxu1 %v2664_v18  ;;  %v2894_v37 = vpack.c.bf16 %v348_v32, %v345_v31  ;;  %v344_v38 = vld [vmem:[%s3401_s3 + $0x90] sm:$0xff]  ;;  %v347_v39 = vld [vmem:[%s3401_s3 + $0xa8] sm:$0xff]  ;;  %v354_v41 = vld [vmem:[%s3401_s3 + $0xe0] sm:$0xff]  ;;  %v2909_v42 = vpack.c.bf16 %v331_v36, %v328_v35  ;;  %v52_v32 = vlaneseq }
   0xc   :  { %170 = vmatprep.subr.bf16.mxu0 %v2658_v8  ;;  %1905 = vmatprep.subr.bf16.mxu1 %v2666_v25  ;;  %v351_v40 = vld [vmem:[%s3401_s3 + $0xc8] sm:$0xff]  ;;  %v2912_v43 = vpack.c.bf16 %v347_v39, %v344_v38  ;;  %v334_v44 = vld [vmem:[%s3401_s3 + $0x40] sm:$0xff]  ;;  %v337_v45 = vld [vmem:[%s3401_s3 + $0x58] sm:$0xff] }
   0xd   :  { %v2665_v46 = vld [vmem:[%s3400_s0 + $0x10] sm:$0xff]   ;;  %v2925_v47 = vpack.c.bf16 %v354_v41, %v351_v40  ;;  %v350_v48 = vld [vmem:[%s3401_s3 + $0xc0] sm:$0xff]  ;;  %v353_v49 = vld [vmem:[%s3401_s3 + $0xd8] sm:$0xff]  ;;  %v2942_v53 = vpack.c.bf16 %v337_v45, %v334_v44 }
   0xe   :  { %v357_v51 = vld [vmem:[%s3401_s3 + $0xf8] sm:$0xff]  ;;  %v360_v52 = vld [vmem:[%s3401_s3 + $0x110] sm:$0xff]  ;;  %v2946_v54 = vpack.c.bf16 %v353_v49, %v350_v48  ;;  %v343_v56 = vld [vmem:[%s3401_s3 + $0x88] sm:$0xff] }
   0xf   :  { %171 = vmatpush1.bf16.msra.mxu0 %v2660_v11  ;;  %1906 = vmatpush3.bf16.msra.mxu1 %v2666_v25  ;;  %v340_v55 = vld [vmem:[%s3401_s3 + $0x70] sm:$0xff]  ;;  %v2956_v57 = vpack.c.bf16 %v360_v52, %v357_v51  ;;  %v359_v59 = vld [vmem:[%s3401_s3 + $0x108] sm:$0xff]  ;;  %v366_v61 = vld [vmem:[%s3401_s3 + $0x140] sm:$0xff] }
  0x10   :  { %2198 = vmatprep.subr.bf16.mxu0 %v2824_v14  ;;  %1907 = vmatprep.subr.bf16.mxu1 %v2667_v28  ;;  %v356_v58 = vld [vmem:[%s3401_s3 + $0xf0] sm:$0xff]  ;;  %v363_v60 = vld [vmem:[%s3401_s3 + $0x128] sm:$0xff]  ;;  %v2972_v62 = vpack.c.bf16 %v343_v56, %v340_v55  ;;  %v2668_v0 = vld [vmem:[%s3400_s0 + $0x18] sm:$0xff]  }
  0x11   :  { %v2975_v63 = vpack.c.bf16 %v359_v59, %v356_v58  ;;  %v346_v2 = vld [vmem:[%s3401_s3 + $0xa0] sm:$0xff]  ;;  %v349_v3 = vld [vmem:[%s3401_s3 + $0xb8] sm:$0xff]  ;;  %v2988_v4 = vpack.c.bf16 %v366_v61, %v363_v60  ;;  %v372_v7 = vld [vmem:[%s3401_s3 + $0x170] sm:$0xff] }
  0x12   :  { %1732 = vmatmul.mubr.msk.bf16.vlgmr.msra.gmra.mrb[0].mxu0 %vm151_vm0, %v2661_v6  ;;  %v365_v5 = vld [vmem:[%s3401_s3 + $0x138] sm:$0xff]  ;;  %v3005_v8 = vpack.c.bf16 %v349_v3, %v346_v2  ;;  %v352_v11 = vld [vmem:[%s3401_s3 + $0xd0] sm:$0xff]  ;;  %v355_v12 = vld [vmem:[%s3401_s3 + $0xe8] sm:$0xff] }
  0x13   :  { %2200 = vmatpush1.bf16.msra.mxu0 %v2838_v19  ;;  %206 = vmatprep.mubr.bf16.mxu0 %v2749_v1  ;;  %v369_v6 = vld [vmem:[%s3401_s3 + $0x158] sm:$0xff]  ;;  %v368_v15 = vld [vmem:[%s3401_s3 + $0x150] sm:$0xff]  ;;  %v371_v16 = vld [vmem:[%s3401_s3 + $0x168] sm:$0xff]  ;;  %v3030_v17 = vpack.c.bf16 %v355_v12, %v352_v11 }
  0x14   :  { %2202 = vmatprep.subr.bf16.mxu0 %v2844_v21  ;;  %1908 = vmatpush3.bf16.msra.mxu1 %v2667_v28  ;;  %v3020_v13 = vpack.c.bf16 %v372_v7, %v369_v6  ;;  %v3033_v18 = vpack.c.bf16 %v371_v16, %v368_v15  ;;  %v358_v20 = vld [vmem:[%s3401_s3 + $0x100] sm:$0xff]  ;;  %v361_v22 = vld [vmem:[%s3401_s3 + $0x118] sm:$0xff]  ;;  %v364_v24 = vld [vmem:[%s3401_s3 + $0x130] sm:$0xff] }
  0x15   :  { %2229 = vmatprep.subr.bf16.mxu1 %v3407_v50  ;;  %v3045_v23 = vpack.c.bf16 %v361_v22, %v358_v20  ;;  %v367_v25 = vld [vmem:[%s3401_s3 + $0x148] sm:$0xff]  ;;  %v370_v28 = vld [vmem:[%s3401_s3 + $0x160] sm:$0xff]  ;;  %v373_v30 = vld [vmem:[%s3401_s3 + $0x178] sm:$0xff] }
  0x16   :  { %v3058_v27 = vpack.c.bf16 %v367_v25, %v364_v24  ;;  %v3071_v31 = vpack.c.bf16 %v373_v30, %v370_v28  ;;  %v50_v36 = vld [vmem:[%s3402_s2] sm:$0x7] }
  0x17   :  { %2204 = vmatpush1.bf16.msra.mxu0 %v2860_v26  ;;  %1910 = vmatmul.mubr.msk.bf16.vlgmr.msra.gmra.mrb[0].mxu1 %vm151_vm0, %v2662_v33 }
  0x18   :  { %2206 = vmatprep.subr.bf16.mxu0 %v2870_v29  ;;  %2231 = vmatpush3.bf16.msra.mxu1 %v2909_v42 }
  0x19   :  { %1913 = vmatprep.mubr.msk.bf16.mxu1 %vm151_vm0, %v2665_v46  ;;  %2232 = vmatprep.subr.bf16.mxu1 %v3407_v50 }
  0x1a   :  { %1733 = vmatmul.mubr.msk.bf16.gmra.mrb[4].mxu0 %vm151_vm0, %v2662_v33  ;;  %v53_v33 = vshrl.u32 %v52_v32, 7 }
  0x1b   :  { %2208 = vmatpush1.bf16.msra.mxu0 %v2885_v34  ;;  %216 = vmatprep.mubr.bf16.mxu0 %v2749_v1 }
  0x1c   :  { %2210 = vmatprep.subr.bf16.mxu0 %v2894_v37  ;;  %2234 = vmatpush3.bf16.msra.mxu1 %v2942_v53  ;;  %v54_v35 = vsub.s32 0, %v53_v33  ;;  %v58_v38 = vsub.s32 1, %v53_v33  ;;  %v62_v51 = vsub.s32 2, %v53_v33 }
  0x1d   :  { %2235 = vmatprep.subr.bf16.mxu1 %v3407_v50 }
  0x1e   :  { %v55_v40 = vrot.slane %v50_v36, %v54_v35  ;;  %v59_v44 = vrot.slane %v50_v36, %v58_v38  ;;  %v63_v55 = vrot.slane %v50_v36, %v62_v51 }
  0x1f   :  { %2212 = vmatpush1.bf16.msra.mxu0 %v2912_v43  ;;  %1914 = vmatmul.mubr.msk.bf16.gmra.mrb[4].mxu1 %vm151_vm0, %v2668_v0 }
  0x20   :  { %2214 = vmatprep.subr.bf16.mxu0 %v2925_v47  ;;  %2237 = vmatpush3.bf16.msra.mxu1 %v2972_v62 }
  0x21   :  { %1949 = vmatprep.mubr.msk.f32.mxu1 %vm2751_vm1, %v3405_v9  ;;  %2238 = vmatprep.subr.bf16.mxu1 %v3407_v50 }
  0x22   :  { %1734 = vmatmul.mubr.msk.bf16.gmra.mrb[8].mxu0 %vm151_vm0, %v2665_v46 }
  0x23   :  { %2216 = vmatpush1.bf16.msra.mxu0 %v2946_v54  ;;  %226 = vmatprep.mubr.bf16.mxu0 %v2749_v1  ;;  %v362_v1 = vld [vmem:[%s3401_s3 + $0x120] sm:$0xff] }
  0x24   :  { %2218 = vmatprep.subr.bf16.mxu0 %v2956_v57  ;;  %v3010_v10 = vpack.c.bf16 %v365_v5, %v362_v1  ;;  %2240 = vmatpush3.bf16.msra.mxu1 %v3005_v8 }
  0x25   :  { %2241 = vmatprep.subr.bf16.mxu1 %v3407_v50 }
  0x27   :  { %2220 = vmatpush1.bf16.msra.mxu0 %v2975_v63 }
  0x28   :  { %2222 = vmatprep.subr.bf16.mxu0 %v2988_v4  ;;  %2243 = vmatpush3.bf16.msra.mxu1 %v3030_v17 }
  0x29   :  { %2244 = vmatprep.subr.bf16.mxu1 %v3407_v50 }
  0x2a   :  { %1735 = vmatmul.mubr.msk.bf16.gmra.mrb[12].mxu0 %vm151_vm0, %v2668_v0 }
  0x2b   :  { %2224 = vmatpush1.bf16.msra.mxu0 %v3010_v10  ;;  %443 = vmatprep.mubr.f32.mxu0 %v3405_v9 }
  0x2c   :  { %2226 = vmatprep.subr.bf16.mxu0 %v3020_v13  ;;  %2246 = vmatpush3.bf16.msra.mxu1 %v3045_v23 }
  0x2d   :  { %2247 = vmatprep.subr.bf16.mxu1 %v3407_v50 }
  0x2f   :  { %2228 = vmatpush1.bf16.msra.mxu0 %v3033_v18 }
  0x30   :  { %2254 = vmatprep.subr.bf16.mxu0 %v2824_v14  ;;  %2249 = vmatpush3.bf16.msra.mxu1 %v3058_v27 }
  0x31   :  { %2250 = vmatprep.subr.bf16.mxu1 %v3407_v50 }
  0x32   :  { %444 = vmatmul.mubr.f32.vlgmr.msra.gmra.mrb[16].mxu0 %v3405_v9 }
  0x33   :  { %2256 = vmatpush1.bf16.msra.mxu0 %v2838_v19  ;;  %615 = vmatprep.mubr.f32.mxu0 %v3405_v9 }
  0x34   :  { %2258 = vmatprep.subr.bf16.mxu0 %v2844_v21  ;;  %2252 = vmatpush3.bf16.msra.mxu1 %v3071_v31 }
  0x35   :  { %2285 = vmatprep.subr.bf16.mxu1 %v3407_v50 }
  0x37   :  { %2260 = vmatpush1.bf16.msra.mxu0 %v2860_v26  ;;  %1950 = vmatmul.mubr.f32.vlgmr.msra.gmra.mrb[8].mxu1 %v3405_v9 }
  0x38   :  { %2262 = vmatprep.subr.bf16.mxu0 %v2870_v29  ;;  %2287 = vmatpush3.bf16.msra.mxu1 %v2909_v42 }
  0x39   :  { %1984 = vmatprep.mubr.msk.f32.mxu1 %vm2751_vm1, %v3405_v9  ;;  %2288 = vmatprep.subr.bf16.mxu1 %v3407_v50 }
  0x3b   :  { %2264 = vmatpush1.bf16.msra.mxu0 %v2885_v34 }
  0x3c   :  { %2266 = vmatprep.subr.bf16.mxu0 %v2894_v37  ;;  %2290 = vmatpush3.bf16.msra.mxu1 %v2942_v53 }
  0x3d   :  { %2291 = vmatprep.subr.bf16.mxu1 %v3407_v50 }
  0x3f   :  { %2268 = vmatpush1.bf16.msra.mxu0 %v2912_v43 }
  0x40   :  { %2270 = vmatprep.subr.bf16.mxu0 %v2925_v47  ;;  %2293 = vmatpush3.bf16.msra.mxu1 %v2972_v62 }
  0x41   :  { %2294 = vmatprep.subr.bf16.mxu1 %v3407_v50 }
  0x43   :  { %2272 = vmatpush1.bf16.msra.mxu0 %v2946_v54 }
  0x44   :  { %2274 = vmatprep.subr.bf16.mxu0 %v2956_v57  ;;  %2296 = vmatpush3.bf16.msra.mxu1 %v3005_v8 }
  0x45   :  { %2297 = vmatprep.subr.bf16.mxu1 %v3407_v50 }
  0x47   :  { %2276 = vmatpush1.bf16.msra.mxu0 %v2975_v63 }
  0x48   :  { %2278 = vmatprep.subr.bf16.mxu0 %v2988_v4  ;;  %2299 = vmatpush3.bf16.msra.mxu1 %v3030_v17 }
  0x49   :  { %2300 = vmatprep.subr.bf16.mxu1 %v3407_v50 }
  0x4b   :  { %2280 = vmatpush1.bf16.msra.mxu0 %v3010_v10 }
  0x4c   :  { %2282 = vmatprep.subr.bf16.mxu0 %v3020_v13  ;;  %2302 = vmatpush3.bf16.msra.mxu1 %v3045_v23 }
  0x4d   :  { %2303 = vmatprep.subr.bf16.mxu1 %v3407_v50 }
  0x4f   :  { %2284 = vmatpush1.bf16.msra.mxu0 %v3033_v18 }
  0x50   :  { %2310 = vmatprep.subr.bf16.mxu0 %v2824_v14  ;;  %2305 = vmatpush3.bf16.msra.mxu1 %v3058_v27 }
  0x51   :  { %2306 = vmatprep.subr.bf16.mxu1 %v3407_v50 }
  0x54   :  { %2308 = vmatpush3.bf16.msra.mxu1 %v3071_v31 }
  0x55   :  { %2341 = vmatprep.subr.bf16.mxu1 %v3407_v50 }
  0xe5   :  { %v198_v39 = vpop.f32.mrb[0].mxu0 }
  0xe6   :  { %v200_v41 = vpop.f32.mrb[1].mxu0 }
  0xe7   :  { %v202_v45 = vpop.f32.mrb[2].mxu0 }
  0xe8   :  { %v3112_v46 = vadd.f32 %v202_v45, %v55_v40  ;;  %v204_v48 = vpop.f32.mrb[3].mxu0 }
  0xe9   :  { %v3114_v49 = vadd.f32 %v204_v48, %v59_v44 }
  0xea   :  { %v1911_v2 = vpop.f32.mrb[0].mxu1 }
  0xeb   :  { %v3124_v1 = vadd.f32 %v1911_v2, %v63_v55  ;;  %v271_v5 = vpop.f32.mrb[1].mxu1 }
  0xec   :  { %v1912_v6 = vpop.f32.mrb[2].mxu1 }
  0xed   :  { %v208_v52 = vpop.f32.mrb[4].mxu0  ;;  %v3126_v7 = vadd.f32 %v1912_v6, %v63_v55  ;;  %v274_v11 = vpop.f32.mrb[3].mxu1 }
  0xee   :  { %v3116_v56 = vadd.f32 %v208_v52, %v55_v40  ;;  %v210_v58 = vpop.f32.mrb[5].mxu0  ;;  %v3128_v12 = vadd.f32 %v274_v11, %v63_v55 }
  0xef   :  { %v3118_v59 = vadd.f32 %v210_v58, %v59_v44  ;;  %v212_v60 = vpop.f32.mrb[6].mxu0 }
  0xf0   :  { %v3120_v61 = vadd.f32 %v212_v60, %v55_v40  ;;  %v214_v0 = vpop.f32.mrb[7].mxu0 }
  0xf1   :  { %v3122_v3 = vadd.f32 %v214_v0, %v59_v44 }
  0xf2   :  { %v1915_v30 = vpop.f32.mrb[4].mxu1 }
  0xf3   :  { %v3138_v33 = vadd.f32 %v1915_v30, %v63_v55  ;;  %v287_v35 = vpop.f32.mrb[5].mxu1 }
  0xf4   :  { %v3140_v36 = vadd.f32 %v287_v35, %v63_v55  ;;  %v1916_v38 = vpop.f32.mrb[6].mxu1 }
  0xf5   :  { %v218_v15 = vpop.f32.mrb[8].mxu0  ;;  %v3142_v45 = vadd.f32 %v1916_v38, %v63_v55  ;;  %v290_v48 = vpop.f32.mrb[7].mxu1 }
  0xf6   :  { %v3130_v16 = vadd.f32 %v218_v15, %v55_v40  ;;  %v220_v20 = vpop.f32.mrb[9].mxu0  ;;  %v3144_v51 = vadd.f32 %v290_v48, %v63_v55 }
  0xf7   :  { %v3132_v22 = vadd.f32 %v220_v20, %v59_v44  ;;  %v222_v24 = vpop.f32.mrb[10].mxu0  ;;  %3409 = vst [vmem:[#allocation4_spill] sm:$0xff] %v3142_v45  ;;  %v199_v20 = vadd.f32 %v198_v39, %v55_v40 }
  0xf8   :  { %v3134_v25 = vadd.f32 %v222_v24, %v55_v40  ;;  %v224_v28 = vpop.f32.mrb[11].mxu0  ;;  %v201_v24 = vadd.f32 %v200_v41, %v59_v44 }
  0xf9   :  { %v3136_v32 = vadd.f32 %v224_v28, %v59_v44 }
  0xfd   :  { %v228_v52 = vpop.f32.mrb[12].mxu0 }
  0xfe   :  { %v3146_v58 = vadd.f32 %v228_v52, %v55_v40  ;;  %v230_v60 = vpop.f32.mrb[13].mxu0 }
  0xff   :  { %v3148_v0 = vadd.f32 %v230_v60, %v59_v44  ;;  %v232_v2 = vpop.f32.mrb[14].mxu0 }
 0x100   :  { %v3150_v6 = vadd.f32 %v232_v2, %v55_v40  ;;  %v234_v11 = vpop.f32.mrb[15].mxu0 }
 0x101   :  { %v3152_v15 = vadd.f32 %v234_v11, %v59_v44  ;;  %v3157_v11 = vld [vmem:[%s3403_s4] ss:$0 sm:$0xff]  ;;  %v272_v44 = vadd.f32 %v271_v5, %v63_v55  ;;  %v3411_v55 = vmov 0.0  }
 0x105   :  { %v445_v28 = vpop.f32.mrb[16].mxu0 }
 0x106   :  { %v520_v30 = vadd.f32 %v445_v28, %v199_v20  ;;  %v447_v35 = vpop.f32.mrb[17].mxu0 }
 0x107   :  { %v527_v38 = vadd.f32 %v447_v35, %v201_v24 }
 0x108   :  { %v1740_v48 = vmul.f32 -1.442695, %v520_v30 }
 0x109   :  { %v1741_v9 = vmul.f32 -1.442695, %v527_v38  ;;  %v3410_v38 = vmov 0.0|0.0  }
 0x10a   :  { %2669 = vpow2.f32 %v1740_v48  ;;  %v516_v52 = vpop.f32.mrb[8].mxu1 }
 0x10b   :  { %2671 = vpow2.f32 %v1741_v9  ;;  %v1951_v50 = vpop.f32.mrb[9].mxu1  ;;  %v540_v40 = vadd.f32 %v3157_v11, %v516_v52 }
 0x114   :  { %v2670_v60 = vpop.eup %2669 }
 0x115   :  { %v524_v45 = vadd.f32 1.0, %v2670_v60  ;;  %v2672_v2 = vpop.eup %2671 }
 0x116   :  { %v531_v39 = vadd.f32 1.0, %v2672_v2 }
 0x117   :  { %2673 = vrcp.f32 %v524_v45 }
 0x118   :  { %2675 = vrcp.f32 %v531_v39 }
 0x121   :  { %v2674_v41 = vpop.eup %2673 }
 0x122   :  { %v541_v20 = vmul.f32 %v2674_v41, %v540_v40  ;;  %v2676_v9 = vpop.eup %2675 }
 0x123   :  { %v544_v50 = vsub.f32 1.0, %v2676_v9  ;;  %v546_v45 = vmul.f32 0.0, %v2676_v9 }
 0x124   :  { %v542_v24 = vadd.f32 %v541_v20, %v272_v44 }
 0x126   :  { %2677 = vtanh.f32 %v542_v24 }
 0x130   :  { %v2678_v28 = vpop.eup %2677 }
 0x131   :  { %v545_v30 = vmul.f32 %v2678_v28, %v544_v50 }
 0x133   :  { %v547_v35 = vadd.f32 %v546_v45, %v545_v30 }
 0x135   :  { %616 = vmatmul.mubr.f32.vlgmr.msra.gmra.mrb[18].mxu0 %v547_v35  ;;  %1985 = vmatmul.mubr.f32.vlgmr.msra.gmra.mrb[10].mxu1 %v547_v35 }
 0x136   :  { %2312 = vmatpush1.bf16.msra.mxu0 %v2838_v19  ;;  %2343 = vmatpush3.bf16.msra.mxu1 %v2909_v42 }
 0x137   :  { %2314 = vmatprep.subr.bf16.mxu0 %v2844_v21  ;;  %2344 = vmatprep.subr.bf16.mxu1 %v3410_v38 }
 0x138   :  { %781 = vmatprep.mubr.f32.mxu0 %v3411_v55  ;;  %2019 = vmatprep.mubr.msk.f32.mxu1 %vm2751_vm1, %v3411_v55 }
 0x13a   :  { %2316 = vmatpush1.bf16.msra.mxu0 %v2860_v26  ;;  %2346 = vmatpush3.bf16.msra.mxu1 %v2942_v53 }
 0x13b   :  { %2318 = vmatprep.subr.bf16.mxu0 %v2870_v29  ;;  %2347 = vmatprep.subr.bf16.mxu1 %v3410_v38 }
 0x13e   :  { %2320 = vmatpush1.bf16.msra.mxu0 %v2885_v34  ;;  %2349 = vmatpush3.bf16.msra.mxu1 %v2972_v62 }
 0x13f   :  { %2322 = vmatprep.subr.bf16.mxu0 %v2894_v37  ;;  %2350 = vmatprep.subr.bf16.mxu1 %v3410_v38 }
 0x142   :  { %2324 = vmatpush1.bf16.msra.mxu0 %v2912_v43  ;;  %2352 = vmatpush3.bf16.msra.mxu1 %v3005_v8 }
 0x143   :  { %2326 = vmatprep.subr.bf16.mxu0 %v2925_v47  ;;  %2353 = vmatprep.subr.bf16.mxu1 %v3410_v38 }
 0x146   :  { %2328 = vmatpush1.bf16.msra.mxu0 %v2946_v54  ;;  %2355 = vmatpush3.bf16.msra.mxu1 %v3030_v17 }
 0x147   :  { %2330 = vmatprep.subr.bf16.mxu0 %v2956_v57  ;;  %2356 = vmatprep.subr.bf16.mxu1 %v3410_v38 }
 0x14a   :  { %2332 = vmatpush1.bf16.msra.mxu0 %v2975_v63  ;;  %2358 = vmatpush3.bf16.msra.mxu1 %v3045_v23 }
 0x14b   :  { %2334 = vmatprep.subr.bf16.mxu0 %v2988_v4  ;;  %2359 = vmatprep.subr.bf16.mxu1 %v3410_v38 }
 0x14e   :  { %2336 = vmatpush1.bf16.msra.mxu0 %v3010_v10  ;;  %2361 = vmatpush3.bf16.msra.mxu1 %v3058_v27 }
 0x14f   :  { %2338 = vmatprep.subr.bf16.mxu0 %v3020_v13  ;;  %2362 = vmatprep.subr.bf16.mxu1 %v3410_v38 }
 0x152   :  { %2340 = vmatpush1.bf16.msra.mxu0 %v3033_v18  ;;  %2364 = vmatpush3.bf16.msra.mxu1 %v3071_v31 }
 0x153   :  { %2366 = vmatprep.subr.bf16.mxu0 %v2824_v14  ;;  %2397 = vmatprep.subr.bf16.mxu1 %v3410_v38 }
 0x208   :  { %v617_v5 = vpop.f32.mrb[18].mxu0  ;;  %v688_v48 = vpop.f32.mrb[10].mxu1 }
 0x209   :  { %v692_v52 = vadd.f32 %v617_v5, %v3112_v46  ;;  %v619_v60 = vpop.f32.mrb[19].mxu0  ;;  %v1986_v2 = vpop.f32.mrb[11].mxu1  ;;  %v706_v50 = vadd.f32 %v3157_v11, %v688_v48 }
 0x20a   :  { %v699_v39 = vadd.f32 %v619_v60, %v3114_v49 }
 0x20b   :  { %v1743_v40 = vmul.f32 -1.442695, %v692_v52 }
 0x20c   :  { %v1744_v41 = vmul.f32 -1.442695, %v699_v39 }
 0x20d   :  { %2679 = vpow2.f32 %v1743_v40 }
 0x20e   :  { %2681 = vpow2.f32 %v1744_v41 }
 0x217   :  { %v2680_v44 = vpop.eup %2679 }
 0x218   :  { %v696_v20 = vadd.f32 1.0, %v2680_v44  ;;  %v2682_v24 = vpop.eup %2681 }
 0x219   :  { %v703_v9 = vadd.f32 1.0, %v2682_v24 }
 0x21a   :  { %2683 = vrcp.f32 %v696_v20 }
 0x21b   :  { %2685 = vrcp.f32 %v703_v9 }
 0x224   :  { %v2684_v28 = vpop.eup %2683 }
 0x225   :  { %v707_v30 = vmul.f32 %v2684_v28, %v706_v50  ;;  %v2686_v45 = vpop.eup %2685 }
 0x226   :  { %v710_v5 = vsub.f32 1.0, %v2686_v45  ;;  %v712_v60 = vmul.f32 %v2686_v45, %v547_v35 }
 0x227   :  { %v708_v46 = vadd.f32 %v707_v30, %v3128_v12 }
 0x229   :  { %2687 = vtanh.f32 %v708_v46 }
 0x233   :  { %v2688_v49 = vpop.eup %2687 }
 0x234   :  { %v711_v52 = vmul.f32 %v2688_v49, %v710_v5 }
 0x236   :  { %v713_v2 = vadd.f32 %v712_v60, %v711_v52 }
 0x238   :  { %782 = vmatmul.mubr.f32.vlgmr.msra.gmra.mrb[20].mxu0 %v713_v2  ;;  %2020 = vmatmul.mubr.f32.vlgmr.msra.gmra.mrb[12].mxu1 %v713_v2 }
 0x239   :  { %2368 = vmatpush1.bf16.msra.mxu0 %v2838_v19  ;;  %2399 = vmatpush3.bf16.msra.mxu1 %v2909_v42 }
 0x23a   :  { %2370 = vmatprep.subr.bf16.mxu0 %v2844_v21  ;;  %2400 = vmatprep.subr.bf16.mxu1 %v3410_v38 }
 0x23b   :  { %947 = vmatprep.mubr.f32.mxu0 %v3411_v55  ;;  %2054 = vmatprep.mubr.msk.f32.mxu1 %vm2751_vm1, %v3411_v55 }
 0x23d   :  { %2372 = vmatpush1.bf16.msra.mxu0 %v2860_v26  ;;  %2402 = vmatpush3.bf16.msra.mxu1 %v2942_v53 }
 0x23e   :  { %2374 = vmatprep.subr.bf16.mxu0 %v2870_v29  ;;  %2403 = vmatprep.subr.bf16.mxu1 %v3410_v38 }
 0x241   :  { %2376 = vmatpush1.bf16.msra.mxu0 %v2885_v34  ;;  %2405 = vmatpush3.bf16.msra.mxu1 %v2972_v62 }
 0x242   :  { %2378 = vmatprep.subr.bf16.mxu0 %v2894_v37  ;;  %2406 = vmatprep.subr.bf16.mxu1 %v3410_v38 }
 0x245   :  { %2380 = vmatpush1.bf16.msra.mxu0 %v2912_v43  ;;  %2408 = vmatpush3.bf16.msra.mxu1 %v3005_v8 }
 0x246   :  { %2382 = vmatprep.subr.bf16.mxu0 %v2925_v47  ;;  %2409 = vmatprep.subr.bf16.mxu1 %v3410_v38 }
 0x249   :  { %2384 = vmatpush1.bf16.msra.mxu0 %v2946_v54  ;;  %2411 = vmatpush3.bf16.msra.mxu1 %v3030_v17 }
 0x24a   :  { %2386 = vmatprep.subr.bf16.mxu0 %v2956_v57  ;;  %2412 = vmatprep.subr.bf16.mxu1 %v3410_v38 }
 0x24d   :  { %2388 = vmatpush1.bf16.msra.mxu0 %v2975_v63  ;;  %2414 = vmatpush3.bf16.msra.mxu1 %v3045_v23 }
 0x24e   :  { %2390 = vmatprep.subr.bf16.mxu0 %v2988_v4  ;;  %2415 = vmatprep.subr.bf16.mxu1 %v3410_v38 }
 0x251   :  { %2392 = vmatpush1.bf16.msra.mxu0 %v3010_v10  ;;  %2417 = vmatpush3.bf16.msra.mxu1 %v3058_v27 }
 0x252   :  { %2394 = vmatprep.subr.bf16.mxu0 %v3020_v13  ;;  %2418 = vmatprep.subr.bf16.mxu1 %v3410_v38 }
 0x255   :  { %2396 = vmatpush1.bf16.msra.mxu0 %v3033_v18  ;;  %2420 = vmatpush3.bf16.msra.mxu1 %v3071_v31 }
 0x256   :  { %2422 = vmatprep.subr.bf16.mxu0 %v2824_v14  ;;  %2453 = vmatprep.subr.bf16.mxu1 %v3410_v38 }
 0x30b   :  { %v783_v12 = vpop.f32.mrb[20].mxu0  ;;  %v854_v35 = vpop.f32.mrb[12].mxu1 }
 0x30c   :  { %v858_v48 = vadd.f32 %v783_v12, %v3116_v56  ;;  %v785_v39 = vpop.f32.mrb[21].mxu0  ;;  %v2021_v40 = vpop.f32.mrb[13].mxu1  ;;  %v872_v30 = vadd.f32 %v3157_v11, %v854_v35 }
 0x30d   :  { %v865_v41 = vadd.f32 %v785_v39, %v3118_v59 }
 0x30e   :  { %v1745_v44 = vmul.f32 -1.442695, %v858_v48 }
 0x30f   :  { %v1746_v20 = vmul.f32 -1.442695, %v865_v41 }
 0x310   :  { %2689 = vpow2.f32 %v1745_v44 }
 0x311   :  { %2691 = vpow2.f32 %v1746_v20 }
 0x31a   :  { %v2690_v24 = vpop.eup %2689 }
 0x31b   :  { %v862_v9 = vadd.f32 1.0, %v2690_v24  ;;  %v2692_v50 = vpop.eup %2691 }
 0x31c   :  { %v869_v28 = vadd.f32 1.0, %v2692_v50 }
 0x31d   :  { %2693 = vrcp.f32 %v862_v9 }
 0x31e   :  { %2695 = vrcp.f32 %v869_v28 }
 0x327   :  { %v2694_v46 = vpop.eup %2693 }
 0x328   :  { %v873_v45 = vmul.f32 %v2694_v46, %v872_v30  ;;  %v2696_v5 = vpop.eup %2695 }
 0x329   :  { %v876_v49 = vsub.f32 1.0, %v2696_v5  ;;  %v878_v60 = vmul.f32 %v2696_v5, %v713_v2 }
 0x32a   :  { %v874_v56 = vadd.f32 %v873_v45, %v3124_v1 }
 0x32c   :  { %2697 = vtanh.f32 %v874_v56 }
 0x336   :  { %v2698_v59 = vpop.eup %2697 }
 0x337   :  { %v877_v52 = vmul.f32 %v2698_v59, %v876_v49 }
 0x339   :  { %v879_v12 = vadd.f32 %v878_v60, %v877_v52 }
 0x33b   :  { %948 = vmatmul.mubr.f32.vlgmr.msra.gmra.mrb[22].mxu0 %v879_v12  ;;  %2055 = vmatmul.mubr.f32.vlgmr.msra.gmra.mrb[14].mxu1 %v879_v12 }
 0x33c   :  { %2424 = vmatpush1.bf16.msra.mxu0 %v2838_v19  ;;  %2455 = vmatpush3.bf16.msra.mxu1 %v2909_v42 }
 0x33d   :  { %2426 = vmatprep.subr.bf16.mxu0 %v2844_v21  ;;  %2456 = vmatprep.subr.bf16.mxu1 %v3410_v38 }
 0x33e   :  { %1113 = vmatprep.mubr.f32.mxu0 %v3411_v55  ;;  %2089 = vmatprep.mubr.msk.f32.mxu1 %vm2751_vm1, %v3411_v55 }
 0x340   :  { %2428 = vmatpush1.bf16.msra.mxu0 %v2860_v26  ;;  %2458 = vmatpush3.bf16.msra.mxu1 %v2942_v53 }
 0x341   :  { %2430 = vmatprep.subr.bf16.mxu0 %v2870_v29  ;;  %2459 = vmatprep.subr.bf16.mxu1 %v3410_v38 }
 0x344   :  { %2432 = vmatpush1.bf16.msra.mxu0 %v2885_v34  ;;  %2461 = vmatpush3.bf16.msra.mxu1 %v2972_v62 }
 0x345   :  { %2434 = vmatprep.subr.bf16.mxu0 %v2894_v37  ;;  %2462 = vmatprep.subr.bf16.mxu1 %v3410_v38 }
 0x348   :  { %2436 = vmatpush1.bf16.msra.mxu0 %v2912_v43  ;;  %2464 = vmatpush3.bf16.msra.mxu1 %v3005_v8 }
 0x349   :  { %2438 = vmatprep.subr.bf16.mxu0 %v2925_v47  ;;  %2465 = vmatprep.subr.bf16.mxu1 %v3410_v38 }
 0x34c   :  { %2440 = vmatpush1.bf16.msra.mxu0 %v2946_v54  ;;  %2467 = vmatpush3.bf16.msra.mxu1 %v3030_v17 }
 0x34d   :  { %2442 = vmatprep.subr.bf16.mxu0 %v2956_v57  ;;  %2468 = vmatprep.subr.bf16.mxu1 %v3410_v38 }
 0x350   :  { %2444 = vmatpush1.bf16.msra.mxu0 %v2975_v63  ;;  %2470 = vmatpush3.bf16.msra.mxu1 %v3045_v23 }
 0x351   :  { %2446 = vmatprep.subr.bf16.mxu0 %v2988_v4  ;;  %2471 = vmatprep.subr.bf16.mxu1 %v3410_v38 }
 0x354   :  { %2448 = vmatpush1.bf16.msra.mxu0 %v3010_v10  ;;  %2473 = vmatpush3.bf16.msra.mxu1 %v3058_v27 }
 0x355   :  { %2450 = vmatprep.subr.bf16.mxu0 %v3020_v13  ;;  %2474 = vmatprep.subr.bf16.mxu1 %v3410_v38 }
 0x358   :  { %2452 = vmatpush1.bf16.msra.mxu0 %v3033_v18  ;;  %2476 = vmatpush3.bf16.msra.mxu1 %v3071_v31 }
 0x359   :  { %2478 = vmatprep.subr.bf16.mxu0 %v2824_v14  ;;  %2509 = vmatprep.subr.bf16.mxu1 %v3410_v38 }
 0x40e   :  { %v949_v1 = vpop.f32.mrb[22].mxu0  ;;  %v1020_v2 = vpop.f32.mrb[14].mxu1 }
 0x40f   :  { %v1024_v35 = vadd.f32 %v949_v1, %v3120_v61  ;;  %v951_v48 = vpop.f32.mrb[23].mxu0  ;;  %v2056_v39 = vpop.f32.mrb[15].mxu1  ;;  %v1038_v28 = vadd.f32 %v3157_v11, %v1020_v2 }
 0x410   :  { %v1031_v40 = vadd.f32 %v951_v48, %v3122_v3 }
 0x411   :  { %v1747_v41 = vmul.f32 -1.442695, %v1024_v35 }
 0x412   :  { %v1748_v44 = vmul.f32 -1.442695, %v1031_v40 }
 0x413   :  { %2699 = vpow2.f32 %v1747_v41 }
 0x414   :  { %2701 = vpow2.f32 %v1748_v44 }
 0x41d   :  { %v2700_v20 = vpop.eup %2699 }
 0x41e   :  { %v1028_v24 = vadd.f32 1.0, %v2700_v20  ;;  %v2702_v9 = vpop.eup %2701 }
 0x41f   :  { %v1035_v50 = vadd.f32 1.0, %v2702_v9 }
 0x420   :  { %2703 = vrcp.f32 %v1028_v24 }
 0x421   :  { %2705 = vrcp.f32 %v1035_v50 }
 0x42a   :  { %v2704_v30 = vpop.eup %2703 }
 0x42b   :  { %v1039_v46 = vmul.f32 %v2704_v30, %v1038_v28  ;;  %v2706_v45 = vpop.eup %2705 }
 0x42c   :  { %v1042_v56 = vsub.f32 1.0, %v2706_v45  ;;  %v1044_v49 = vmul.f32 %v2706_v45, %v879_v12 }
 0x42d   :  { %v1040_v61 = vadd.f32 %v1039_v46, %v3126_v7 }
 0x42f   :  { %2707 = vtanh.f32 %v1040_v61 }
 0x439   :  { %v2708_v3 = vpop.eup %2707 }
 0x43a   :  { %v1043_v5 = vmul.f32 %v2708_v3, %v1042_v56 }
 0x43c   :  { %v1045_v59 = vadd.f32 %v1044_v49, %v1043_v5 }
 0x43e   :  { %1114 = vmatmul.mubr.f32.vlgmr.msra.gmra.mrb[24].mxu0 %v1045_v59  ;;  %2090 = vmatmul.mubr.f32.vlgmr.msra.gmra.mrb[16].mxu1 %v1045_v59 }
 0x43f   :  { %2480 = vmatpush1.bf16.msra.mxu0 %v2838_v19  ;;  %2511 = vmatpush3.bf16.msra.mxu1 %v2909_v42 }
 0x440   :  { %2482 = vmatprep.subr.bf16.mxu0 %v2844_v21  ;;  %2512 = vmatprep.subr.bf16.mxu1 %v3410_v38 }
 0x441   :  { %1279 = vmatprep.mubr.f32.mxu0 %v3411_v55  ;;  %2124 = vmatprep.mubr.msk.f32.mxu1 %vm2751_vm1, %v3411_v55 }
 0x443   :  { %2484 = vmatpush1.bf16.msra.mxu0 %v2860_v26  ;;  %2514 = vmatpush3.bf16.msra.mxu1 %v2942_v53 }
 0x444   :  { %2486 = vmatprep.subr.bf16.mxu0 %v2870_v29  ;;  %2515 = vmatprep.subr.bf16.mxu1 %v3410_v38 }
 0x447   :  { %2488 = vmatpush1.bf16.msra.mxu0 %v2885_v34  ;;  %2517 = vmatpush3.bf16.msra.mxu1 %v2972_v62 }
 0x448   :  { %2490 = vmatprep.subr.bf16.mxu0 %v2894_v37  ;;  %2518 = vmatprep.subr.bf16.mxu1 %v3410_v38 }
 0x44b   :  { %2492 = vmatpush1.bf16.msra.mxu0 %v2912_v43  ;;  %2520 = vmatpush3.bf16.msra.mxu1 %v3005_v8 }
 0x44c   :  { %2494 = vmatprep.subr.bf16.mxu0 %v2925_v47  ;;  %2521 = vmatprep.subr.bf16.mxu1 %v3410_v38 }
 0x44f   :  { %2496 = vmatpush1.bf16.msra.mxu0 %v2946_v54  ;;  %2523 = vmatpush3.bf16.msra.mxu1 %v3030_v17 }
 0x450   :  { %2498 = vmatprep.subr.bf16.mxu0 %v2956_v57  ;;  %2524 = vmatprep.subr.bf16.mxu1 %v3410_v38 }
 0x453   :  { %2500 = vmatpush1.bf16.msra.mxu0 %v2975_v63  ;;  %2526 = vmatpush3.bf16.msra.mxu1 %v3045_v23 }
 0x454   :  { %2502 = vmatprep.subr.bf16.mxu0 %v2988_v4  ;;  %2527 = vmatprep.subr.bf16.mxu1 %v3410_v38 }
 0x457   :  { %2504 = vmatpush1.bf16.msra.mxu0 %v3010_v10  ;;  %2529 = vmatpush3.bf16.msra.mxu1 %v3058_v27 }
 0x458   :  { %2506 = vmatprep.subr.bf16.mxu0 %v3020_v13  ;;  %2530 = vmatprep.subr.bf16.mxu1 %v3410_v38 }
 0x45b   :  { %2508 = vmatpush1.bf16.msra.mxu0 %v3033_v18  ;;  %2532 = vmatpush3.bf16.msra.mxu1 %v3071_v31 }
 0x45c   :  { %2534 = vmatprep.subr.bf16.mxu0 %v2824_v14  ;;  %2565 = vmatprep.subr.bf16.mxu1 %v3410_v38 }
 0x511   :  { %v1115_v7 = vpop.f32.mrb[24].mxu0  ;;  %v1186_v52 = vpop.f32.mrb[16].mxu1 }
 0x512   :  { %v1190_v60 = vadd.f32 %v1115_v7, %v3130_v16  ;;  %v1117_v12 = vpop.f32.mrb[25].mxu0  ;;  %v2091_v1 = vpop.f32.mrb[17].mxu1  ;;  %v1204_v20 = vadd.f32 %v3157_v11, %v1186_v52 }
 0x513   :  { %v1197_v2 = vadd.f32 %v1117_v12, %v3132_v22 }
 0x514   :  { %v1749_v35 = vmul.f32 -1.442695, %v1190_v60 }
 0x515   :  { %v1750_v48 = vmul.f32 -1.442695, %v1197_v2 }
 0x516   :  { %2709 = vpow2.f32 %v1749_v35 }
 0x517   :  { %2711 = vpow2.f32 %v1750_v48 }
 0x520   :  { %v2710_v39 = vpop.eup %2709 }
 0x521   :  { %v1194_v40 = vadd.f32 1.0, %v2710_v39  ;;  %v2712_v41 = vpop.eup %2711 }
 0x522   :  { %v1201_v44 = vadd.f32 1.0, %v2712_v41 }
 0x523   :  { %2713 = vrcp.f32 %v1194_v40 }
 0x524   :  { %2715 = vrcp.f32 %v1201_v44 }
 0x52d   :  { %v2714_v24 = vpop.eup %2713 }
 0x52e   :  { %v1205_v9 = vmul.f32 %v2714_v24, %v1204_v20  ;;  %v2716_v50 = vpop.eup %2715 }
 0x52f   :  { %v1208_v28 = vsub.f32 1.0, %v2716_v50  ;;  %v1210_v46 = vmul.f32 %v2716_v50, %v1045_v59 }
 0x530   :  { %v1206_v16 = vadd.f32 %v1205_v9, %v3140_v36 }
 0x532   :  { %2717 = vtanh.f32 %v1206_v16 }
 0x53c   :  { %v2718_v22 = vpop.eup %2717 }
 0x53d   :  { %v1209_v30 = vmul.f32 %v2718_v22, %v1208_v28 }
 0x53f   :  { %v1211_v61 = vadd.f32 %v1210_v46, %v1209_v30  ;;  %v3412_v46 = vld [vmem:[#allocation4_spill] sm:$0xff] }
 0x541   :  { %1280 = vmatmul.mubr.f32.vlgmr.msra.gmra.mrb[26].mxu0 %v1211_v61  ;;  %2125 = vmatmul.mubr.f32.vlgmr.msra.gmra.mrb[18].mxu1 %v1211_v61 }
 0x542   :  { %2536 = vmatpush1.bf16.msra.mxu0 %v2838_v19  ;;  %2567 = vmatpush3.bf16.msra.mxu1 %v2909_v42 }
 0x543   :  { %2538 = vmatprep.subr.bf16.mxu0 %v2844_v21  ;;  %2568 = vmatprep.subr.bf16.mxu1 %v3410_v38 }
 0x544   :  { %1445 = vmatprep.mubr.f32.mxu0 %v3411_v55  ;;  %2159 = vmatprep.mubr.msk.f32.mxu1 %vm2751_vm1, %v3411_v55 }
 0x546   :  { %2540 = vmatpush1.bf16.msra.mxu0 %v2860_v26  ;;  %2570 = vmatpush3.bf16.msra.mxu1 %v2942_v53 }
 0x547   :  { %2542 = vmatprep.subr.bf16.mxu0 %v2870_v29  ;;  %2571 = vmatprep.subr.bf16.mxu1 %v3410_v38 }
 0x54a   :  { %2544 = vmatpush1.bf16.msra.mxu0 %v2885_v34  ;;  %2573 = vmatpush3.bf16.msra.mxu1 %v2972_v62 }
 0x54b   :  { %2546 = vmatprep.subr.bf16.mxu0 %v2894_v37  ;;  %2574 = vmatprep.subr.bf16.mxu1 %v3410_v38 }
 0x54e   :  { %2548 = vmatpush1.bf16.msra.mxu0 %v2912_v43  ;;  %2576 = vmatpush3.bf16.msra.mxu1 %v3005_v8 }
 0x54f   :  { %2550 = vmatprep.subr.bf16.mxu0 %v2925_v47  ;;  %2577 = vmatprep.subr.bf16.mxu1 %v3410_v38 }
 0x552   :  { %2552 = vmatpush1.bf16.msra.mxu0 %v2946_v54  ;;  %2579 = vmatpush3.bf16.msra.mxu1 %v3030_v17 }
 0x553   :  { %2554 = vmatprep.subr.bf16.mxu0 %v2956_v57  ;;  %2580 = vmatprep.subr.bf16.mxu1 %v3410_v38 }
 0x556   :  { %2556 = vmatpush1.bf16.msra.mxu0 %v2975_v63  ;;  %2582 = vmatpush3.bf16.msra.mxu1 %v3045_v23 }
 0x557   :  { %2558 = vmatprep.subr.bf16.mxu0 %v2988_v4  ;;  %2583 = vmatprep.subr.bf16.mxu1 %v3410_v38 }
 0x55a   :  { %2560 = vmatpush1.bf16.msra.mxu0 %v3010_v10  ;;  %2585 = vmatpush3.bf16.msra.mxu1 %v3058_v27 }
 0x55b   :  { %2562 = vmatprep.subr.bf16.mxu0 %v3020_v13  ;;  %2586 = vmatprep.subr.bf16.mxu1 %v3410_v38 }
 0x55e   :  { %2564 = vmatpush1.bf16.msra.mxu0 %v3033_v18  ;;  %2588 = vmatpush3.bf16.msra.mxu1 %v3071_v31 }
 0x55f   :  { %2590 = vmatprep.subr.bf16.mxu0 %v2824_v14  ;;  %2621 = vmatprep.subr.bf16.mxu1 %v3410_v38 }
 0x614   :  { %v1281_v36 = vpop.f32.mrb[26].mxu0  ;;  %v1352_v45 = vpop.f32.mrb[18].mxu1 }
 0x615   :  { %v1356_v56 = vadd.f32 %v1281_v36, %v3134_v25  ;;  %v1283_v3 = vpop.f32.mrb[27].mxu0  ;;  %v2126_v5 = vpop.f32.mrb[19].mxu1  ;;  %v1370_v14 = vadd.f32 %v3157_v11, %v1352_v45 }
 0x616   :  { %v1363_v49 = vadd.f32 %v1283_v3, %v3136_v32 }
 0x617   :  { %v1751_v59 = vmul.f32 -1.442695, %v1356_v56 }
 0x618   :  { %v1752_v7 = vmul.f32 -1.442695, %v1363_v49 }
 0x619   :  { %2719 = vpow2.f32 %v1751_v59 }
 0x61a   :  { %2721 = vpow2.f32 %v1752_v7 }
 0x623   :  { %v2720_v52 = vpop.eup %2719 }
 0x624   :  { %v1360_v60 = vadd.f32 1.0, %v2720_v52  ;;  %v2722_v12 = vpop.eup %2721 }
 0x625   :  { %v1367_v1 = vadd.f32 1.0, %v2722_v12 }
 0x626   :  { %2723 = vrcp.f32 %v1360_v60 }
 0x627   :  { %2725 = vrcp.f32 %v1367_v1 }
 0x630   :  { %v2724_v2 = vpop.eup %2723 }
 0x631   :  { %v1371_v35 = vmul.f32 %v2724_v2, %v1370_v14  ;;  %v2726_v48 = vpop.eup %2725 }
 0x632   :  { %v1374_v39 = vsub.f32 1.0, %v2726_v48  ;;  %v1376_v41 = vmul.f32 %v2726_v48, %v1211_v61 }
 0x633   :  { %v1372_v25 = vadd.f32 %v1371_v35, %v3144_v51 }
 0x635   :  { %2727 = vtanh.f32 %v1372_v25 }
 0x63f   :  { %v2728_v32 = vpop.eup %2727 }
 0x640   :  { %v1375_v40 = vmul.f32 %v2728_v32, %v1374_v39 }
 0x642   :  { %v1377_v44 = vadd.f32 %v1376_v41, %v1375_v40 }
 0x644   :  { %1446 = vmatmul.mubr.f32.vlgmr.msra.gmra.mrb[28].mxu0 %v1377_v44  ;;  %2160 = vmatmul.mubr.f32.vlgmr.msra.gmra.mrb[20].mxu1 %v1377_v44 }
 0x645   :  { %2592 = vmatpush1.bf16.msra.mxu0 %v2838_v19  ;;  %2623 = vmatpush3.bf16.msra.mxu1 %v2909_v42 }
 0x646   :  { %2594 = vmatprep.subr.bf16.mxu0 %v2844_v21  ;;  %2624 = vmatprep.subr.bf16.mxu1 %v3410_v38 }
 0x647   :  { %1611 = vmatprep.mubr.f32.mxu0 %v3411_v55  ;;  %2194 = vmatprep.mubr.msk.f32.mxu1 %vm2751_vm1, %v3411_v55 }
 0x649   :  { %2596 = vmatpush1.bf16.msra.mxu0 %v2860_v26  ;;  %2626 = vmatpush3.bf16.msra.mxu1 %v2942_v53 }
 0x64a   :  { %2598 = vmatprep.subr.bf16.mxu0 %v2870_v29  ;;  %2627 = vmatprep.subr.bf16.mxu1 %v3410_v38 }
 0x64d   :  { %2600 = vmatpush1.bf16.msra.mxu0 %v2885_v34  ;;  %2629 = vmatpush3.bf16.msra.mxu1 %v2972_v62 }
 0x64e   :  { %2602 = vmatprep.subr.bf16.mxu0 %v2894_v37  ;;  %2630 = vmatprep.subr.bf16.mxu1 %v3410_v38 }
 0x651   :  { %2604 = vmatpush1.bf16.msra.mxu0 %v2912_v43  ;;  %2632 = vmatpush3.bf16.msra.mxu1 %v3005_v8 }
 0x652   :  { %2606 = vmatprep.subr.bf16.mxu0 %v2925_v47  ;;  %2633 = vmatprep.subr.bf16.mxu1 %v3410_v38 }
 0x655   :  { %2608 = vmatpush1.bf16.msra.mxu0 %v2946_v54  ;;  %2635 = vmatpush3.bf16.msra.mxu1 %v3030_v17 }
 0x656   :  { %2610 = vmatprep.subr.bf16.mxu0 %v2956_v57  ;;  %2636 = vmatprep.subr.bf16.mxu1 %v3410_v38 }
 0x659   :  { %2612 = vmatpush1.bf16.msra.mxu0 %v2975_v63  ;;  %2638 = vmatpush3.bf16.msra.mxu1 %v3045_v23 }
 0x65a   :  { %2614 = vmatprep.subr.bf16.mxu0 %v2988_v4  ;;  %2639 = vmatprep.subr.bf16.mxu1 %v3410_v38 }
 0x65d   :  { %2616 = vmatpush1.bf16.msra.mxu0 %v3010_v10  ;;  %2641 = vmatpush3.bf16.msra.mxu1 %v3058_v27 }
 0x65e   :  { %2618 = vmatprep.subr.bf16.mxu0 %v3020_v13  ;;  %2642 = vmatprep.subr.bf16.mxu1 %v3410_v38 }
 0x661   :  { %2620 = vmatpush1.bf16.msra.mxu0 %v3033_v18  ;;  %2644 = vmatpush3.bf16.msra.mxu1 %v3071_v31 }
 0x717   :  { %v1447_v19 = vpop.f32.mrb[28].mxu0  ;;  %v1518_v21 = vpop.f32.mrb[20].mxu1 }
 0x718   :  { %v1522_v26 = vadd.f32 %v1447_v19, %v3146_v58  ;;  %v1449_v29 = vpop.f32.mrb[29].mxu0  ;;  %v2161_v34 = vpop.f32.mrb[21].mxu1  ;;  %v1536_v62 = vadd.f32 %v3157_v11, %v1518_v21 }
 0x719   :  { %v1529_v37 = vadd.f32 %v1449_v29, %v3148_v0 }
 0x71a   :  { %v1753_v42 = vmul.f32 -1.442695, %v1522_v26 }
 0x71b   :  { %v1754_v43 = vmul.f32 -1.442695, %v1529_v37 }
 0x71c   :  { %2729 = vpow2.f32 %v1753_v42 }
 0x71d   :  { %2731 = vpow2.f32 %v1754_v43 }
 0x726   :  { %v2730_v47 = vpop.eup %2729 }
 0x727   :  { %v1526_v53 = vadd.f32 1.0, %v2730_v47  ;;  %v2732_v54 = vpop.eup %2731 }
 0x728   :  { %v1533_v57 = vadd.f32 1.0, %v2732_v54 }
 0x729   :  { %2733 = vrcp.f32 %v1526_v53 }
 0x72a   :  { %2735 = vrcp.f32 %v1533_v57 }
 0x733   :  { %v2734_v63 = vpop.eup %2733 }
 0x734   :  { %v1537_v4 = vmul.f32 %v2734_v63, %v1536_v62  ;;  %v2736_v10 = vpop.eup %2735 }
 0x735   :  { %v1540_v13 = vsub.f32 1.0, %v2736_v10  ;;  %v1542_v23 = vmul.f32 %v2736_v10, %v1377_v44 }
 0x736   :  { %v1538_v8 = vadd.f32 %v1537_v4, %v3138_v33 }
 0x738   :  { %2737 = vtanh.f32 %v1538_v8 }
 0x742   :  { %v2738_v17 = vpop.eup %2737 }
 0x743   :  { %v1541_v18 = vmul.f32 %v2738_v17, %v1540_v13 }
 0x745   :  { %v1543_v27 = vadd.f32 %v1542_v23, %v1541_v18 }
 0x747   :  { %1612 = vmatmul.mubr.f32.vlgmr.msra.gmra.mrb[30].mxu0 %v1543_v27  ;;  %2195 = vmatmul.mubr.f32.vlgmr.msra.gmra.mrb[22].mxu1 %v1543_v27 }
 0x81a   :  { %v1613_v31 = vpop.f32.mrb[30].mxu0  ;;  %v1684_v51 = vpop.f32.mrb[22].mxu1 }
 0x81b   :  { %v1688_v58 = vadd.f32 %v1613_v31, %v3150_v6  ;;  %v1615_v0 = vpop.f32.mrb[31].mxu0  ;;  %v2196_v38 = vpop.f32.mrb[23].mxu1  ;;  %v1702_v28 = vadd.f32 %v3157_v11, %v1684_v51 }
 0x81c   :  { %v1695_v55 = vadd.f32 %v1615_v0, %v3152_v15 }
 0x81d   :  { %v1755_v20 = vmul.f32 -1.442695, %v1688_v58 }
 0x81e   :  { %v1756_v33 = vmul.f32 -1.442695, %v1695_v55 }
 0x81f   :  { %2739 = vpow2.f32 %v1755_v20 }
 0x820   :  { %2741 = vpow2.f32 %v1756_v33 }
 0x829   :  { %v2740_v24 = vpop.eup %2739 }
 0x82a   :  { %v1692_v9 = vadd.f32 1.0, %v2740_v24  ;;  %v2742_v16 = vpop.eup %2741 }
 0x82b   :  { %v1699_v50 = vadd.f32 1.0, %v2742_v16 }
 0x82c   :  { %2743 = vrcp.f32 %v1692_v9 }
 0x82d   :  { %2745 = vrcp.f32 %v1699_v50 }
 0x836   :  { %v2744_v22 = vpop.eup %2743 }
 0x837   :  { %v1703_v30 = vmul.f32 %v2744_v22, %v1702_v28  ;;  %v2746_v61 = vpop.eup %2745 }
 0x838   :  { %v1706_v36 = vsub.f32 1.0, %v2746_v61  ;;  %v1708_v56 = vmul.f32 %v2746_v61, %v1543_v27 }
 0x839   :  { %v1704_v6 = vadd.f32 %v1703_v30, %v3412_v46 }
 0x83b   :  { %2747 = vtanh.f32 %v1704_v6 }
 0x845   :  { %v2748_v15 = vpop.eup %2747 }
 0x846   :  { %v1707_v45 = vmul.f32 %v2748_v15, %v1706_v36 }
 0x848   :  { %v1709_v3 = vadd.f32 %v1708_v56, %v1707_v45 }
 0x84a   :  { %1711 = vst [vmem:[%s3404_s5] sm:$0xff] %v1709_v3 }

</bundles_post_ra>
